<compile_context>
chip_gen: v6e
topology: v6e:2x2x1
jax: 0.10.0
libtpu: 0.0.40
codegen_flags: <defaults>
</compile_context>

<pallas_src>
import functools

import jax
import jax.numpy as jnp
import numpy as np
from jax.experimental import pallas as pl
from jax.experimental.pallas import tpu as pltpu


# --------------------------------------------------------------------------
# fused kernel
# --------------------------------------------------------------------------
def _sepconv_kernel(xr_ref, w1_ref, w2_ref, mask_ref, g1_ref, b1_ref,
                    g2_ref, b2_ref, out_ref, pbuf_ref, pat_ref, z1_ref,
                    *, N, C_in, C_out, H, W, Wp, eps):
    """Whole SepConv forward for the full batch, VMEM-resident.

    Layout: activations are stored row-flattened with row stride Wp = W + 2
    ("padded-row" layout, H*Wp lanes).  Columns j in [W, Wp) of each row are
    junk; they are masked out of all BN statistics and zeroed before being
    written back into the padded buffer, where they land exactly on the
    padded image's border columns.
    """
    HWp = H * Wp
    OFF = Wp + 1                      # flat offset of pixel (0, 0) in pbuf
    M = float(N * H * W)              # BN population (valid pixels only)
    mask = mask_ref[...]              # (1, HWp): 1.0 valid col, 0.0 junk col

    # Zero the padded/flattened activation buffer ONCE.  Every later write
    # covers the same [OFF, OFF + HWp) lane range with junk columns already
    # zeroed, so the 1-pixel zero border is preserved across images/stages.
    pbuf_ref[...] = jnp.zeros_like(pbuf_ref)

    def fill_pbuf(a_flat):            # a_flat: (C_in, HWp), junk cols == 0
        pbuf_ref[:, OFF:OFF + HWp] = a_flat

    def conv(w_ref):
        # im2col: the patch row for tap k = 3*dh + dw is simply the padded
        # buffer shifted by dh*Wp + dw (contiguous lane slice -> no reshape).
        for k in range(9):
            dh, dw = divmod(k, 3)
            off = dh * Wp + dw
            pat_ref[k * C_in:(k + 1) * C_in, :] = pbuf_ref[:, off:off + HWp]
        # One lane-dense MXU matmul: (C_o, 9*C_in) @ (9*C_in, HWp).
        return jnp.dot(w_ref[...], pat_ref[...],
                       preferred_element_type=jnp.float32,
                       precision=jax.lax.Precision.HIGHEST)

    # ---- stage 1: ReLU -> composite dw3x3+1x1 conv, accumulate BN1 sums ----
    sum1 = jnp.zeros((C_in, 1), jnp.float32)
    ssq1 = jnp.zeros((C_in, 1), jnp.float32)
    for n in range(N):                              # tiny N -> unrolled
        fill_pbuf(jnp.maximum(xr_ref[n], 0.0))      # junk cols of xr are 0
        z1 = conv(w1_ref)                           # (C_in, HWp)
        z1_ref[n] = z1                              # keep for stage 2 (no recompute)
        z1m = z1 * mask
        sum1 = sum1 + jnp.sum(z1m, axis=1, keepdims=True)
        ssq1 = ssq1 + jnp.sum(z1m * z1, axis=1, keepdims=True)

    mean1 = sum1 / M
    var1 = ssq1 / M - mean1 * mean1                 # biased var (BN training mode)
    scale1 = g1_ref[...] * jax.lax.rsqrt(var1 + eps)
    shift1 = b1_ref[...] - mean1 * scale1

    # ---- stage 2: BN1 affine -> ReLU -> composite conv2, accumulate BN2 sums
    sum2 = jnp.zeros((C_out, 1), jnp.float32)
    ssq2 = jnp.zeros((C_out, 1), jnp.float32)
    for n in range(N):
        a1 = jnp.maximum(z1_ref[n] * scale1 + shift1, 0.0) * mask  # zero junk
        fill_pbuf(a1)
        z2 = conv(w2_ref)                           # (C_out, HWp)
        out_ref[n] = z2                             # out_ref doubles as z2 storage
        z2m = z2 * mask
        sum2 = sum2 + jnp.sum(z2m, axis=1, keepdims=True)
        ssq2 = ssq2 + jnp.sum(z2m * z2, axis=1, keepdims=True)

    mean2 = sum2 / M
    var2 = ssq2 / M - mean2 * mean2
    scale2 = g2_ref[...] * jax.lax.rsqrt(var2 + eps)
    shift2 = b2_ref[...] - mean2 * scale2

    # ---- BN2 affine applied in place on the VMEM-resident output ----
    for n in range(N):
        out_ref[n] = out_ref[n] * scale2 + shift2


# --------------------------------------------------------------------------
# wrapper
# --------------------------------------------------------------------------
def _matmul_weights(pw, dw):
    """Composite conv weights: w[o, k*C_in + c] = pw[o, c] * dw[c, 0, dh_k, dw_k]."""
    C_o, C_in = pw.shape[0], pw.shape[1]
    w = jnp.einsum("oc,ck->okc", pw.reshape(C_o, C_in), dw.reshape(C_in, 9))
    return w.reshape(C_o, 9 * C_in).astype(jnp.float32)


def sep_conv(x, dw1, pw1, gamma1, beta1, dw2, pw2, gamma2, beta2, *, eps=1e-5):
    """SepConv forward (kernel=3, stride=1, padding=1), BatchNorm in batch-stats mode.

    x  : (N, C_in, H, W) float32, NCHW.
    dw1/dw2: (C_in, 1, 3, 3) depthwise weights.  pw1: (C_in, C_in, 1, 1),
    pw2: (C_out, C_in, 1, 1) pointwise weights.  gamma/beta: BN affine params.
    Returns (N, C_out, H, W) float32.
    """
    N, C_in, H, W = x.shape
    C_out = pw2.shape[0]
    Wp = W + 2
    HWp = H * Wp
    # Padded flat buffer length: must cover the full padded image ((H+2)*Wp)
    # and the largest shifted window read (2*Wp + 2 + HWp); round to 128 lanes.
    PBUF = ((HWp + 2 * Wp + 2 + 127) // 128) * 128

    # Layout plumbing only: right-pad each image row by 2 zero columns so the
    # flattened row stride matches the in-kernel padded buffer (Wp).  The
    # actual 1-pixel spatial zero border lives in the kernel's VMEM scratch.
    xr = jnp.pad(x.astype(jnp.float32),
                 ((0, 0), (0, 0), (0, 0), (0, Wp - W))).reshape(N, C_in, HWp)

    w1m = _matmul_weights(pw1, dw1)                  # (C_in, 9*C_in)
    w2m = _matmul_weights(pw2, dw2)                  # (C_out, 9*C_in)

    # Valid-column mask in the padded-row layout (1 for j < W, 0 for junk cols).
    col = jnp.arange(HWp, dtype=jnp.int32) % Wp
    mask = (col < W).astype(jnp.float32).reshape(1, HWp)

    g1 = gamma1.reshape(C_in, 1).astype(jnp.float32)
    b1 = beta1.reshape(C_in, 1).astype(jnp.float32)
    g2 = gamma2.reshape(C_out, 1).astype(jnp.float32)
    b2 = beta2.reshape(C_out, 1).astype(jnp.float32)

    kernel = functools.partial(_sepconv_kernel, N=N, C_in=C_in, C_out=C_out,
                               H=H, W=W, Wp=Wp, eps=eps)

    # Single grid-less pallas_call: whole arrays land in VMEM, kernel runs once.
    # (At this size a 2-wide parallel grid for v7x's dual TCs would only add
    #  launch/sync overhead; revisit if N or H*W grows.)
    out_flat = pl.pallas_call(
        kernel,
        out_shape=jax.ShapeDtypeStruct((N, C_out, HWp), jnp.float32),
        scratch_shapes=[
            pltpu.VMEM((C_in, PBUF), jnp.float32),      # padded flat activations
            pltpu.VMEM((9 * C_in, HWp), jnp.float32),   # im2col patch matrix
            pltpu.VMEM((N, C_in, HWp), jnp.float32),    # stage-1 conv outputs
        ],
    )(xr, w1m, w2m, mask, g1, b1, g2, b2)

    # Strip the 2 junk columns per row (cheap metadata reshape + tiny slice).
    return out_flat.reshape(N, C_out, H, Wp)[..., :W]


# --------------------------------------------------------------------------
# pure-JAX reference of the PyTorch forward (BatchNorm in training mode)
# --------------------------------------------------------------------------
def _reference(x, dw1, pw1, gamma1, beta1, dw2, pw2, gamma2, beta2, eps=1e-5):
    prec = jax.lax.Precision.HIGHEST

    def dwconv(a, w):
        return jax.lax.conv_general_dilated(
            a, w, window_strides=(1, 1), padding=((1, 1), (1, 1)),
            dimension_numbers=("NCHW", "OIHW", "NCHW"),
            feature_group_count=a.shape[1], precision=prec)

    def pwconv(a, w):
        return jax.lax.conv_general_dilated(
            a, w, window_strides=(1, 1), padding=((0, 0), (0, 0)),
            dimension_numbers=("NCHW", "OIHW", "NCHW"), precision=prec)

    def bn(a, g, b):
        mean = a.mean(axis=(0, 2, 3), keepdims=True)
        var = ((a - mean) ** 2).mean(axis=(0, 2, 3), keepdims=True)
        ahat = (a - mean) * jax.lax.rsqrt(var + eps)
        return ahat * g.reshape(1, -1, 1, 1) + b.reshape(1, -1, 1, 1)

    a = jnp.maximum(x, 0.0)
    a = bn(pwconv(dwconv(a, dw1), pw1), gamma1, beta1)
    a = jnp.maximum(a, 0.0)
    a = bn(pwconv(dwconv(a, dw2), pw2), gamma2, beta2)
    return a


if __name__ == "__main__":
    # SepConv(C_in=4, C_out=8, kernel_size=3, stride=1, padding=1, shape=(16,16))
    N, C_in, H, W = 2, 4, 16, 16
    C_out = 8

    key = jax.random.PRNGKey(0)
    kx, k1, k2, k3, k4, k5, k6, k7, k8 = jax.random.split(key, 9)
    x = jax.random.normal(kx, (N, C_in, H, W), dtype=jnp.float32)

    dw1 = jax.random.normal(k1, (C_in, 1, 3, 3), dtype=jnp.float32) * 0.3
    pw1 = jax.random.normal(k2, (C_in, C_in, 1, 1), dtype=jnp.float32) * 0.3
    dw2 = jax.random.normal(k3, (C_in, 1, 3, 3), dtype=jnp.float32) * 0.3
    pw2 = jax.random.normal(k4, (C_out, C_in, 1, 1), dtype=jnp.float32) * 0.3
    gamma1 = 1.0 + 0.1 * jax.random.normal(k5, (C_in,), dtype=jnp.float32)
    beta1 = 0.1 * jax.random.normal(k6, (C_in,), dtype=jnp.float32)
    gamma2 = 1.0 + 0.1 * jax.random.normal(k7, (C_out,), dtype=jnp.float32)
    beta2 = 0.1 * jax.random.normal(k8, (C_out,), dtype=jnp.float32)

    out = jax.jit(sep_conv)(x, dw1, pw1, gamma1, beta1, dw2, pw2, gamma2, beta2)
    out = jax.block_until_ready(out)

    ref = jax.block_until_ready(
        _reference(x, dw1, pw1, gamma1, beta1, dw2, pw2, gamma2, beta2))
    np.testing.assert_allclose(np.asarray(out), np.asarray(ref),
                               rtol=1e-3, atol=1e-4)
    print("KERNEL_OK")
</pallas_src>

<mosaic_0001>
module attributes {stable_mosaic.version = 11 : i64} {
  func.func @_sepconv_kernel(%arg0: memref<2x4x288xf32, #tpu.memory_space<vmem>>, %arg1: memref<4x36xf32, #tpu.memory_space<vmem>>, %arg2: memref<8x36xf32, #tpu.memory_space<vmem>>, %arg3: memref<1x288xf32, #tpu.memory_space<vmem>>, %arg4: memref<4x1xf32, #tpu.memory_space<vmem>>, %arg5: memref<4x1xf32, #tpu.memory_space<vmem>>, %arg6: memref<8x1xf32, #tpu.memory_space<vmem>>, %arg7: memref<8x1xf32, #tpu.memory_space<vmem>>, %arg8: memref<2x8x288xf32, #tpu.memory_space<vmem>>, %arg9: memref<4x384xf32, #tpu.memory_space<vmem>>, %arg10: memref<36x288xf32, #tpu.memory_space<vmem>>, %arg11: memref<2x4x288xf32, #tpu.memory_space<vmem>>) attributes {dimension_semantics = [], scalar_prefetch = 0 : i64, scratch_operands = 3 : i64, tpu.core_type = #tpu.core_type<tc>} {
    %c0 = arith.constant 0 : index
    %c0_0 = arith.constant 0 : index
    %0 = vector.load %arg3[%c0, %c0_0] : memref<1x288xf32, #tpu.memory_space<vmem>>, vector<1x288xf32>
    %cst = arith.constant 0.000000e+00 : f32
    %1 = vector.broadcast %cst : f32 to vector<4x384xf32>
    %c0_1 = arith.constant 0 : index
    %c0_2 = arith.constant 0 : index
    %2 = vector.load %arg9[%c0_1, %c0_2] : memref<4x384xf32, #tpu.memory_space<vmem>>, vector<4x384xf32>
    tpu.vector_store %arg9[%c0_1, %c0_2], %1 {strides = array<i32>} : memref<4x384xf32, #tpu.memory_space<vmem>>, vector<4x384xf32>,
    %cst_3 = arith.constant 0.000000e+00 : f32
    %3 = vector.broadcast %cst_3 : f32 to vector<4x1xf32>
    %cst_4 = arith.constant 0.000000e+00 : f32
    %4 = vector.broadcast %cst_4 : f32 to vector<4x1xf32>
    %c0_5 = arith.constant 0 : index
    %c0_6 = arith.constant 0 : index
    %c0_7 = arith.constant 0 : index
    %5 = vector.load %arg0[%c0_5, %c0_6, %c0_7] : memref<2x4x288xf32, #tpu.memory_space<vmem>>, vector<1x4x288xf32>
    %6 = vector.shape_cast %5 : vector<1x4x288xf32> to vector<4x288xf32>
    %cst_8 = arith.constant 0.000000e+00 : f32
    %7 = vector.broadcast %cst_8 : f32 to vector<4x288xf32>
    %8 = arith.maximumf %6, %7 : vector<4x288xf32>
    %c0_9 = arith.constant 0 : index
    %c19 = arith.constant 19 : index
    %9 = vector.load %arg9[%c0_9, %c19] : memref<4x384xf32, #tpu.memory_space<vmem>>, vector<4x288xf32>
    tpu.vector_store %arg9[%c0_9, %c19], %8 {strides = array<i32>} : memref<4x384xf32, #tpu.memory_space<vmem>>, vector<4x288xf32>,
    %c0_10 = arith.constant 0 : index
    %c0_11 = arith.constant 0 : index
    %10 = vector.load %arg9[%c0_10, %c0_11] : memref<4x384xf32, #tpu.memory_space<vmem>>, vector<4x288xf32>
    %c0_12 = arith.constant 0 : index
    %c0_13 = arith.constant 0 : index
    %11 = vector.load %arg10[%c0_12, %c0_13] : memref<36x288xf32, #tpu.memory_space<vmem>>, vector<4x288xf32>
    tpu.vector_store %arg10[%c0_12, %c0_13], %10 {strides = array<i32>} : memref<36x288xf32, #tpu.memory_space<vmem>>, vector<4x288xf32>,
    %c0_14 = arith.constant 0 : index
    %c1 = arith.constant 1 : index
    %12 = vector.load %arg9[%c0_14, %c1] : memref<4x384xf32, #tpu.memory_space<vmem>>, vector<4x288xf32>
    %c4 = arith.constant 4 : index
    %c0_15 = arith.constant 0 : index
    %13 = vector.load %arg10[%c4, %c0_15] : memref<36x288xf32, #tpu.memory_space<vmem>>, vector<4x288xf32>
    tpu.vector_store %arg10[%c4, %c0_15], %12 {strides = array<i32>} : memref<36x288xf32, #tpu.memory_space<vmem>>, vector<4x288xf32>,
    %c0_16 = arith.constant 0 : index
    %c2 = arith.constant 2 : index
    %14 = vector.load %arg9[%c0_16, %c2] : memref<4x384xf32, #tpu.memory_space<vmem>>, vector<4x288xf32>
    %c8 = arith.constant 8 : index
    %c0_17 = arith.constant 0 : index
    %15 = vector.load %arg10[%c8, %c0_17] : memref<36x288xf32, #tpu.memory_space<vmem>>, vector<4x288xf32>
    tpu.vector_store %arg10[%c8, %c0_17], %14 {strides = array<i32>} : memref<36x288xf32, #tpu.memory_space<vmem>>, vector<4x288xf32>,
    %c0_18 = arith.constant 0 : index
    %c18 = arith.constant 18 : index
    %16 = vector.load %arg9[%c0_18, %c18] : memref<4x384xf32, #tpu.memory_space<vmem>>, vector<4x288xf32>
    %c12 = arith.constant 12 : index
    %c0_19 = arith.constant 0 : index
    %17 = vector.load %arg10[%c12, %c0_19] : memref<36x288xf32, #tpu.memory_space<vmem>>, vector<4x288xf32>
    tpu.vector_store %arg10[%c12, %c0_19], %16 {strides = array<i32>} : memref<36x288xf32, #tpu.memory_space<vmem>>, vector<4x288xf32>,
    %c0_20 = arith.constant 0 : index
    %c19_21 = arith.constant 19 : index
    %18 = vector.load %arg9[%c0_20, %c19_21] : memref<4x384xf32, #tpu.memory_space<vmem>>, vector<4x288xf32>
    %c16 = arith.constant 16 : index
    %c0_22 = arith.constant 0 : index
    %19 = vector.load %arg10[%c16, %c0_22] : memref<36x288xf32, #tpu.memory_space<vmem>>, vector<4x288xf32>
    tpu.vector_store %arg10[%c16, %c0_22], %18 {strides = array<i32>} : memref<36x288xf32, #tpu.memory_space<vmem>>, vector<4x288xf32>,
    %c0_23 = arith.constant 0 : index
    %c20 = arith.constant 20 : index
    %20 = vector.load %arg9[%c0_23, %c20] : memref<4x384xf32, #tpu.memory_space<vmem>>, vector<4x288xf32>
    %c20_24 = arith.constant 20 : index
    %c0_25 = arith.constant 0 : index
    %21 = vector.load %arg10[%c20_24, %c0_25] : memref<36x288xf32, #tpu.memory_space<vmem>>, vector<4x288xf32>
    tpu.vector_store %arg10[%c20_24, %c0_25], %20 {strides = array<i32>} : memref<36x288xf32, #tpu.memory_space<vmem>>, vector<4x288xf32>,
    %c0_26 = arith.constant 0 : index
    %c36 = arith.constant 36 : index
    %22 = vector.load %arg9[%c0_26, %c36] : memref<4x384xf32, #tpu.memory_space<vmem>>, vector<4x288xf32>
    %c24 = arith.constant 24 : index
    %c0_27 = arith.constant 0 : index
    %23 = vector.load %arg10[%c24, %c0_27] : memref<36x288xf32, #tpu.memory_space<vmem>>, vector<4x288xf32>
    tpu.vector_store %arg10[%c24, %c0_27], %22 {strides = array<i32>} : memref<36x288xf32, #tpu.memory_space<vmem>>, vector<4x288xf32>,
    %c0_28 = arith.constant 0 : index
    %c37 = arith.constant 37 : index
    %24 = vector.load %arg9[%c0_28, %c37] : memref<4x384xf32, #tpu.memory_space<vmem>>, vector<4x288xf32>
    %c28 = arith.constant 28 : index
    %c0_29 = arith.constant 0 : index
    %25 = vector.load %arg10[%c28, %c0_29] : memref<36x288xf32, #tpu.memory_space<vmem>>, vector<4x288xf32>
    tpu.vector_store %arg10[%c28, %c0_29], %24 {strides = array<i32>} : memref<36x288xf32, #tpu.memory_space<vmem>>, vector<4x288xf32>,
    %c0_30 = arith.constant 0 : index
    %c38 = arith.constant 38 : index
    %26 = vector.load %arg9[%c0_30, %c38] : memref<4x384xf32, #tpu.memory_space<vmem>>, vector<4x288xf32>
    %c32 = arith.constant 32 : index
    %c0_31 = arith.constant 0 : index
    %27 = vector.load %arg10[%c32, %c0_31] : memref<36x288xf32, #tpu.memory_space<vmem>>, vector<4x288xf32>
    tpu.vector_store %arg10[%c32, %c0_31], %26 {strides = array<i32>} : memref<36x288xf32, #tpu.memory_space<vmem>>, vector<4x288xf32>,
    %c0_32 = arith.constant 0 : index
    %c0_33 = arith.constant 0 : index
    %28 = vector.load %arg1[%c0_32, %c0_33] : memref<4x36xf32, #tpu.memory_space<vmem>>, vector<4x36xf32>
    %c0_34 = arith.constant 0 : index
    %c0_35 = arith.constant 0 : index
    %29 = vector.load %arg10[%c0_34, %c0_35] : memref<36x288xf32, #tpu.memory_space<vmem>>, vector<36x288xf32>
    %cst_36 = arith.constant dense<0.000000e+00> : vector<4x288xf32>
    %30 = tpu.matmul %28, %29, %cst_36 {dimension_numbers = #tpu.dot_dimension_numbers<[1], [0], [0], [1], [0, 0, 1, 1], [], []>, precision = #tpu.contract_precision<fp32>} : vector<4x36xf32>, vector<36x288xf32>, vector<4x288xf32> -> vector<4x288xf32>
    %c0_37 = arith.constant 0 : index
    %c0_38 = arith.constant 0 : index
    %c0_39 = arith.constant 0 : index
    %31 = vector.load %arg11[%c0_37, %c0_38, %c0_39] : memref<2x4x288xf32, #tpu.memory_space<vmem>>, vector<1x4x288xf32>
    %32 = vector.shape_cast %31 : vector<1x4x288xf32> to vector<4x288xf32>
    %33 = vector.shape_cast %30 : vector<4x288xf32> to vector<1x4x288xf32>
    tpu.vector_store %arg11[%c0_37, %c0_38, %c0_39], %33 {strides = array<i32>} : memref<2x4x288xf32, #tpu.memory_space<vmem>>, vector<1x4x288xf32>,
    %34 = vector.broadcast %0 : vector<1x288xf32> to vector<4x288xf32>
    %35 = arith.mulf %30, %34 : vector<4x288xf32>
    %cst_40 = arith.constant dense<0.000000e+00> : vector<4xf32>
    %36 = vector.multi_reduction <add>, %35, %cst_40 [1] : vector<4x288xf32> to vector<4xf32>
    %37 = vector.shape_cast %36 : vector<4xf32> to vector<4x1xf32>
    %38 = arith.addf %3, %37 : vector<4x1xf32>
    %39 = arith.mulf %35, %30 : vector<4x288xf32>
    %cst_41 = arith.constant dense<0.000000e+00> : vector<4xf32>
    %40 = vector.multi_reduction <add>, %39, %cst_41 [1] : vector<4x288xf32> to vector<4xf32>
    %41 = vector.shape_cast %40 : vector<4xf32> to vector<4x1xf32>
    %42 = arith.addf %4, %41 : vector<4x1xf32>
    %c1_42 = arith.constant 1 : index
    %c0_43 = arith.constant 0 : index
    %c0_44 = arith.constant 0 : index
    %43 = vector.load %arg0[%c1_42, %c0_43, %c0_44] : memref<2x4x288xf32, #tpu.memory_space<vmem>>, vector<1x4x288xf32>
    %44 = vector.shape_cast %43 : vector<1x4x288xf32> to vector<4x288xf32>
    %cst_45 = arith.constant 0.000000e+00 : f32
    %45 = vector.broadcast %cst_45 : f32 to vector<4x288xf32>
    %46 = arith.maximumf %44, %45 : vector<4x288xf32>
    %c0_46 = arith.constant 0 : index
    %c19_47 = arith.constant 19 : index
    %47 = vector.load %arg9[%c0_46, %c19_47] : memref<4x384xf32, #tpu.memory_space<vmem>>, vector<4x288xf32>
    tpu.vector_store %arg9[%c0_46, %c19_47], %46 {strides = array<i32>} : memref<4x384xf32, #tpu.memory_space<vmem>>, vector<4x288xf32>,
    %c0_48 = arith.constant 0 : index
    %c0_49 = arith.constant 0 : index
    %48 = vector.load %arg9[%c0_48, %c0_49] : memref<4x384xf32, #tpu.memory_space<vmem>>, vector<4x288xf32>
    %c0_50 = arith.constant 0 : index
    %c0_51 = arith.constant 0 : index
    %49 = vector.load %arg10[%c0_50, %c0_51] : memref<36x288xf32, #tpu.memory_space<vmem>>, vector<4x288xf32>
    tpu.vector_store %arg10[%c0_50, %c0_51], %48 {strides = array<i32>} : memref<36x288xf32, #tpu.memory_space<vmem>>, vector<4x288xf32>,
    %c0_52 = arith.constant 0 : index
    %c1_53 = arith.constant 1 : index
    %50 = vector.load %arg9[%c0_52, %c1_53] : memref<4x384xf32, #tpu.memory_space<vmem>>, vector<4x288xf32>
    %c4_54 = arith.constant 4 : index
    %c0_55 = arith.constant 0 : index
    %51 = vector.load %arg10[%c4_54, %c0_55] : memref<36x288xf32, #tpu.memory_space<vmem>>, vector<4x288xf32>
    tpu.vector_store %arg10[%c4_54, %c0_55], %50 {strides = array<i32>} : memref<36x288xf32, #tpu.memory_space<vmem>>, vector<4x288xf32>,
    %c0_56 = arith.constant 0 : index
    %c2_57 = arith.constant 2 : index
    %52 = vector.load %arg9[%c0_56, %c2_57] : memref<4x384xf32, #tpu.memory_space<vmem>>, vector<4x288xf32>
    %c8_58 = arith.constant 8 : index
    %c0_59 = arith.constant 0 : index
    %53 = vector.load %arg10[%c8_58, %c0_59] : memref<36x288xf32, #tpu.memory_space<vmem>>, vector<4x288xf32>
    tpu.vector_store %arg10[%c8_58, %c0_59], %52 {strides = array<i32>} : memref<36x288xf32, #tpu.memory_space<vmem>>, vector<4x288xf32>,
    %c0_60 = arith.constant 0 : index
    %c18_61 = arith.constant 18 : index
    %54 = vector.load %arg9[%c0_60, %c18_61] : memref<4x384xf32, #tpu.memory_space<vmem>>, vector<4x288xf32>
    %c12_62 = arith.constant 12 : index
    %c0_63 = arith.constant 0 : index
    %55 = vector.load %arg10[%c12_62, %c0_63] : memref<36x288xf32, #tpu.memory_space<vmem>>, vector<4x288xf32>
    tpu.vector_store %arg10[%c12_62, %c0_63], %54 {strides = array<i32>} : memref<36x288xf32, #tpu.memory_space<vmem>>, vector<4x288xf32>,
    %c0_64 = arith.constant 0 : index
    %c19_65 = arith.constant 19 : index
    %56 = vector.load %arg9[%c0_64, %c19_65] : memref<4x384xf32, #tpu.memory_space<vmem>>, vector<4x288xf32>
    %c16_66 = arith.constant 16 : index
    %c0_67 = arith.constant 0 : index
    %57 = vector.load %arg10[%c16_66, %c0_67] : memref<36x288xf32, #tpu.memory_space<vmem>>, vector<4x288xf32>
    tpu.vector_store %arg10[%c16_66, %c0_67], %56 {strides = array<i32>} : memref<36x288xf32, #tpu.memory_space<vmem>>, vector<4x288xf32>,
    %c0_68 = arith.constant 0 : index
    %c20_69 = arith.constant 20 : index
    %58 = vector.load %arg9[%c0_68, %c20_69] : memref<4x384xf32, #tpu.memory_space<vmem>>, vector<4x288xf32>
    %c20_70 = arith.constant 20 : index
    %c0_71 = arith.constant 0 : index
    %59 = vector.load %arg10[%c20_70, %c0_71] : memref<36x288xf32, #tpu.memory_space<vmem>>, vector<4x288xf32>
    tpu.vector_store %arg10[%c20_70, %c0_71], %58 {strides = array<i32>} : memref<36x288xf32, #tpu.memory_space<vmem>>, vector<4x288xf32>,
    %c0_72 = arith.constant 0 : index
    %c36_73 = arith.constant 36 : index
    %60 = vector.load %arg9[%c0_72, %c36_73] : memref<4x384xf32, #tpu.memory_space<vmem>>, vector<4x288xf32>
    %c24_74 = arith.constant 24 : index
    %c0_75 = arith.constant 0 : index
    %61 = vector.load %arg10[%c24_74, %c0_75] : memref<36x288xf32, #tpu.memory_space<vmem>>, vector<4x288xf32>
    tpu.vector_store %arg10[%c24_74, %c0_75], %60 {strides = array<i32>} : memref<36x288xf32, #tpu.memory_space<vmem>>, vector<4x288xf32>,
    %c0_76 = arith.constant 0 : index
    %c37_77 = arith.constant 37 : index
    %62 = vector.load %arg9[%c0_76, %c37_77] : memref<4x384xf32, #tpu.memory_space<vmem>>, vector<4x288xf32>
    %c28_78 = arith.constant 28 : index
    %c0_79 = arith.constant 0 : index
    %63 = vector.load %arg10[%c28_78, %c0_79] : memref<36x288xf32, #tpu.memory_space<vmem>>, vector<4x288xf32>
    tpu.vector_store %arg10[%c28_78, %c0_79], %62 {strides = array<i32>} : memref<36x288xf32, #tpu.memory_space<vmem>>, vector<4x288xf32>,
    %c0_80 = arith.constant 0 : index
    %c38_81 = arith.constant 38 : index
    %64 = vector.load %arg9[%c0_80, %c38_81] : memref<4x384xf32, #tpu.memory_space<vmem>>, vector<4x288xf32>
    %c32_82 = arith.constant 32 : index
    %c0_83 = arith.constant 0 : index
    %65 = vector.load %arg10[%c32_82, %c0_83] : memref<36x288xf32, #tpu.memory_space<vmem>>, vector<4x288xf32>
    tpu.vector_store %arg10[%c32_82, %c0_83], %64 {strides = array<i32>} : memref<36x288xf32, #tpu.memory_space<vmem>>, vector<4x288xf32>,
    %c0_84 = arith.constant 0 : index
    %c0_85 = arith.constant 0 : index
    %66 = vector.load %arg1[%c0_84, %c0_85] : memref<4x36xf32, #tpu.memory_space<vmem>>, vector<4x36xf32>
    %c0_86 = arith.constant 0 : index
    %c0_87 = arith.constant 0 : index
    %67 = vector.load %arg10[%c0_86, %c0_87] : memref<36x288xf32, #tpu.memory_space<vmem>>, vector<36x288xf32>
    %cst_88 = arith.constant dense<0.000000e+00> : vector<4x288xf32>
    %68 = tpu.matmul %66, %67, %cst_88 {dimension_numbers = #tpu.dot_dimension_numbers<[1], [0], [0], [1], [0, 0, 1, 1], [], []>, precision = #tpu.contract_precision<fp32>} : vector<4x36xf32>, vector<36x288xf32>, vector<4x288xf32> -> vector<4x288xf32>
    %c1_89 = arith.constant 1 : index
    %c0_90 = arith.constant 0 : index
    %c0_91 = arith.constant 0 : index
    %69 = vector.load %arg11[%c1_89, %c0_90, %c0_91] : memref<2x4x288xf32, #tpu.memory_space<vmem>>, vector<1x4x288xf32>
    %70 = vector.shape_cast %69 : vector<1x4x288xf32> to vector<4x288xf32>
    %71 = vector.shape_cast %68 : vector<4x288xf32> to vector<1x4x288xf32>
    tpu.vector_store %arg11[%c1_89, %c0_90, %c0_91], %71 {strides = array<i32>} : memref<2x4x288xf32, #tpu.memory_space<vmem>>, vector<1x4x288xf32>,
    %72 = vector.broadcast %0 : vector<1x288xf32> to vector<4x288xf32>
    %73 = arith.mulf %68, %72 : vector<4x288xf32>
    %cst_92 = arith.constant dense<0.000000e+00> : vector<4xf32>
    %74 = vector.multi_reduction <add>, %73, %cst_92 [1] : vector<4x288xf32> to vector<4xf32>
    %75 = vector.shape_cast %74 : vector<4xf32> to vector<4x1xf32>
    %76 = arith.addf %38, %75 : vector<4x1xf32>
    %77 = arith.mulf %73, %68 : vector<4x288xf32>
    %cst_93 = arith.constant dense<0.000000e+00> : vector<4xf32>
    %78 = vector.multi_reduction <add>, %77, %cst_93 [1] : vector<4x288xf32> to vector<4xf32>
    %79 = vector.shape_cast %78 : vector<4xf32> to vector<4x1xf32>
    %80 = arith.addf %42, %79 : vector<4x1xf32>
    %cst_94 = arith.constant 5.120000e+02 : f32
    %81 = vector.broadcast %cst_94 : f32 to vector<4x1xf32>
    %82 = arith.divf %76, %81 : vector<4x1xf32>
    %cst_95 = arith.constant 5.120000e+02 : f32
    %83 = vector.broadcast %cst_95 : f32 to vector<4x1xf32>
    %84 = arith.divf %80, %83 : vector<4x1xf32>
    %85 = arith.mulf %82, %82 : vector<4x1xf32>
    %86 = arith.subf %84, %85 : vector<4x1xf32>
    %c0_96 = arith.constant 0 : index
    %c0_97 = arith.constant 0 : index
    %87 = vector.load %arg4[%c0_96, %c0_97] : memref<4x1xf32, #tpu.memory_space<vmem>>, vector<4x1xf32>
    %cst_98 = arith.constant 9.99999974E-6 : f32
    %88 = vector.broadcast %cst_98 : f32 to vector<4x1xf32>
    %89 = arith.addf %86, %88 : vector<4x1xf32>
    %90 = math.rsqrt %89 : vector<4x1xf32>
    %91 = arith.mulf %87, %90 : vector<4x1xf32>
    %c0_99 = arith.constant 0 : index
    %c0_100 = arith.constant 0 : index
    %92 = vector.load %arg5[%c0_99, %c0_100] : memref<4x1xf32, #tpu.memory_space<vmem>>, vector<4x1xf32>
    %93 = arith.mulf %82, %91 : vector<4x1xf32>
    %94 = arith.subf %92, %93 : vector<4x1xf32>
    %cst_101 = arith.constant 0.000000e+00 : f32
    %95 = vector.broadcast %cst_101 : f32 to vector<8x1xf32>
    %cst_102 = arith.constant 0.000000e+00 : f32
    %96 = vector.broadcast %cst_102 : f32 to vector<8x1xf32>
    %c0_103 = arith.constant 0 : index
    %c0_104 = arith.constant 0 : index
    %c0_105 = arith.constant 0 : index
    %97 = vector.load %arg11[%c0_103, %c0_104, %c0_105] : memref<2x4x288xf32, #tpu.memory_space<vmem>>, vector<1x4x288xf32>
    %98 = vector.shape_cast %97 : vector<1x4x288xf32> to vector<4x288xf32>
    %99 = vector.broadcast %91 : vector<4x1xf32> to vector<4x288xf32>
    %100 = arith.mulf %98, %99 : vector<4x288xf32>
    %101 = vector.broadcast %94 : vector<4x1xf32> to vector<4x288xf32>
    %102 = arith.addf %100, %101 : vector<4x288xf32>
    %cst_106 = arith.constant 0.000000e+00 : f32
    %103 = vector.broadcast %cst_106 : f32 to vector<4x288xf32>
    %104 = arith.maximumf %102, %103 : vector<4x288xf32>
    %105 = vector.broadcast %0 : vector<1x288xf32> to vector<4x288xf32>
    %106 = arith.mulf %104, %105 : vector<4x288xf32>
    %c0_107 = arith.constant 0 : index
    %c19_108 = arith.constant 19 : index
    %107 = vector.load %arg9[%c0_107, %c19_108] : memref<4x384xf32, #tpu.memory_space<vmem>>, vector<4x288xf32>
    tpu.vector_store %arg9[%c0_107, %c19_108], %106 {strides = array<i32>} : memref<4x384xf32, #tpu.memory_space<vmem>>, vector<4x288xf32>,
    %c0_109 = arith.constant 0 : index
    %c0_110 = arith.constant 0 : index
    %108 = vector.load %arg9[%c0_109, %c0_110] : memref<4x384xf32, #tpu.memory_space<vmem>>, vector<4x288xf32>
    %c0_111 = arith.constant 0 : index
    %c0_112 = arith.constant 0 : index
    %109 = vector.load %arg10[%c0_111, %c0_112] : memref<36x288xf32, #tpu.memory_space<vmem>>, vector<4x288xf32>
    tpu.vector_store %arg10[%c0_111, %c0_112], %108 {strides = array<i32>} : memref<36x288xf32, #tpu.memory_space<vmem>>, vector<4x288xf32>,
    %c0_113 = arith.constant 0 : index
    %c1_114 = arith.constant 1 : index
    %110 = vector.load %arg9[%c0_113, %c1_114] : memref<4x384xf32, #tpu.memory_space<vmem>>, vector<4x288xf32>
    %c4_115 = arith.constant 4 : index
    %c0_116 = arith.constant 0 : index
    %111 = vector.load %arg10[%c4_115, %c0_116] : memref<36x288xf32, #tpu.memory_space<vmem>>, vector<4x288xf32>
    tpu.vector_store %arg10[%c4_115, %c0_116], %110 {strides = array<i32>} : memref<36x288xf32, #tpu.memory_space<vmem>>, vector<4x288xf32>,
    %c0_117 = arith.constant 0 : index
    %c2_118 = arith.constant 2 : index
    %112 = vector.load %arg9[%c0_117, %c2_118] : memref<4x384xf32, #tpu.memory_space<vmem>>, vector<4x288xf32>
    %c8_119 = arith.constant 8 : index
    %c0_120 = arith.constant 0 : index
    %113 = vector.load %arg10[%c8_119, %c0_120] : memref<36x288xf32, #tpu.memory_space<vmem>>, vector<4x288xf32>
    tpu.vector_store %arg10[%c8_119, %c0_120], %112 {strides = array<i32>} : memref<36x288xf32, #tpu.memory_space<vmem>>, vector<4x288xf32>,
    %c0_121 = arith.constant 0 : index
    %c18_122 = arith.constant 18 : index
    %114 = vector.load %arg9[%c0_121, %c18_122] : memref<4x384xf32, #tpu.memory_space<vmem>>, vector<4x288xf32>
    %c12_123 = arith.constant 12 : index
    %c0_124 = arith.constant 0 : index
    %115 = vector.load %arg10[%c12_123, %c0_124] : memref<36x288xf32, #tpu.memory_space<vmem>>, vector<4x288xf32>
    tpu.vector_store %arg10[%c12_123, %c0_124], %114 {strides = array<i32>} : memref<36x288xf32, #tpu.memory_space<vmem>>, vector<4x288xf32>,
    %c0_125 = arith.constant 0 : index
    %c19_126 = arith.constant 19 : index
    %116 = vector.load %arg9[%c0_125, %c19_126] : memref<4x384xf32, #tpu.memory_space<vmem>>, vector<4x288xf32>
    %c16_127 = arith.constant 16 : index
    %c0_128 = arith.constant 0 : index
    %117 = vector.load %arg10[%c16_127, %c0_128] : memref<36x288xf32, #tpu.memory_space<vmem>>, vector<4x288xf32>
    tpu.vector_store %arg10[%c16_127, %c0_128], %116 {strides = array<i32>} : memref<36x288xf32, #tpu.memory_space<vmem>>, vector<4x288xf32>,
    %c0_129 = arith.constant 0 : index
    %c20_130 = arith.constant 20 : index
    %118 = vector.load %arg9[%c0_129, %c20_130] : memref<4x384xf32, #tpu.memory_space<vmem>>, vector<4x288xf32>
    %c20_131 = arith.constant 20 : index
    %c0_132 = arith.constant 0 : index
    %119 = vector.load %arg10[%c20_131, %c0_132] : memref<36x288xf32, #tpu.memory_space<vmem>>, vector<4x288xf32>
    tpu.vector_store %arg10[%c20_131, %c0_132], %118 {strides = array<i32>} : memref<36x288xf32, #tpu.memory_space<vmem>>, vector<4x288xf32>,
    %c0_133 = arith.constant 0 : index
    %c36_134 = arith.constant 36 : index
    %120 = vector.load %arg9[%c0_133, %c36_134] : memref<4x384xf32, #tpu.memory_space<vmem>>, vector<4x288xf32>
    %c24_135 = arith.constant 24 : index
    %c0_136 = arith.constant 0 : index
    %121 = vector.load %arg10[%c24_135, %c0_136] : memref<36x288xf32, #tpu.memory_space<vmem>>, vector<4x288xf32>
    tpu.vector_store %arg10[%c24_135, %c0_136], %120 {strides = array<i32>} : memref<36x288xf32, #tpu.memory_space<vmem>>, vector<4x288xf32>,
    %c0_137 = arith.constant 0 : index
    %c37_138 = arith.constant 37 : index
    %122 = vector.load %arg9[%c0_137, %c37_138] : memref<4x384xf32, #tpu.memory_space<vmem>>, vector<4x288xf32>
    %c28_139 = arith.constant 28 : index
    %c0_140 = arith.constant 0 : index
    %123 = vector.load %arg10[%c28_139, %c0_140] : memref<36x288xf32, #tpu.memory_space<vmem>>, vector<4x288xf32>
    tpu.vector_store %arg10[%c28_139, %c0_140], %122 {strides = array<i32>} : memref<36x288xf32, #tpu.memory_space<vmem>>, vector<4x288xf32>,
    %c0_141 = arith.constant 0 : index
    %c38_142 = arith.constant 38 : index
    %124 = vector.load %arg9[%c0_141, %c38_142] : memref<4x384xf32, #tpu.memory_space<vmem>>, vector<4x288xf32>
    %c32_143 = arith.constant 32 : index
    %c0_144 = arith.constant 0 : index
    %125 = vector.load %arg10[%c32_143, %c0_144] : memref<36x288xf32, #tpu.memory_space<vmem>>, vector<4x288xf32>
    tpu.vector_store %arg10[%c32_143, %c0_144], %124 {strides = array<i32>} : memref<36x288xf32, #tpu.memory_space<vmem>>, vector<4x288xf32>,
    %c0_145 = arith.constant 0 : index
    %c0_146 = arith.constant 0 : index
    %126 = vector.load %arg2[%c0_145, %c0_146] : memref<8x36xf32, #tpu.memory_space<vmem>>, vector<8x36xf32>
    %c0_147 = arith.constant 0 : index
    %c0_148 = arith.constant 0 : index
    %127 = vector.load %arg10[%c0_147, %c0_148] : memref<36x288xf32, #tpu.memory_space<vmem>>, vector<36x288xf32>
    %cst_149 = arith.constant dense<0.000000e+00> : vector<8x288xf32>
    %128 = tpu.matmul %126, %127, %cst_149 {dimension_numbers = #tpu.dot_dimension_numbers<[1], [0], [0], [1], [0, 0, 1, 1], [], []>, precision = #tpu.contract_precision<fp32>} : vector<8x36xf32>, vector<36x288xf32>, vector<8x288xf32> -> vector<8x288xf32>
    %c0_150 = arith.constant 0 : index
    %c0_151 = arith.constant 0 : index
    %c0_152 = arith.constant 0 : index
    %129 = vector.load %arg8[%c0_150, %c0_151, %c0_152] : memref<2x8x288xf32, #tpu.memory_space<vmem>>, vector<1x8x288xf32>
    %130 = vector.shape_cast %129 : vector<1x8x288xf32> to vector<8x288xf32>
    %131 = vector.shape_cast %128 : vector<8x288xf32> to vector<1x8x288xf32>
    tpu.vector_store %arg8[%c0_150, %c0_151, %c0_152], %131 {strides = array<i32>} : memref<2x8x288xf32, #tpu.memory_space<vmem>>, vector<1x8x288xf32>,
    %132 = vector.broadcast %0 : vector<1x288xf32> to vector<8x288xf32>
    %133 = arith.mulf %128, %132 : vector<8x288xf32>
    %cst_153 = arith.constant dense<0.000000e+00> : vector<8xf32>
    %134 = vector.multi_reduction <add>, %133, %cst_153 [1] : vector<8x288xf32> to vector<8xf32>
    %135 = vector.shape_cast %134 : vector<8xf32> to vector<8x1xf32>
    %136 = arith.addf %95, %135 : vector<8x1xf32>
    %137 = arith.mulf %133, %128 : vector<8x288xf32>
    %cst_154 = arith.constant dense<0.000000e+00> : vector<8xf32>
    %138 = vector.multi_reduction <add>, %137, %cst_154 [1] : vector<8x288xf32> to vector<8xf32>
    %139 = vector.shape_cast %138 : vector<8xf32> to vector<8x1xf32>
    %140 = arith.addf %96, %139 : vector<8x1xf32>
    %c1_155 = arith.constant 1 : index
    %c0_156 = arith.constant 0 : index
    %c0_157 = arith.constant 0 : index
    %141 = vector.load %arg11[%c1_155, %c0_156, %c0_157] : memref<2x4x288xf32, #tpu.memory_space<vmem>>, vector<1x4x288xf32>
    %142 = vector.shape_cast %141 : vector<1x4x288xf32> to vector<4x288xf32>
    %143 = vector.broadcast %91 : vector<4x1xf32> to vector<4x288xf32>
    %144 = arith.mulf %142, %143 : vector<4x288xf32>
    %145 = vector.broadcast %94 : vector<4x1xf32> to vector<4x288xf32>
    %146 = arith.addf %144, %145 : vector<4x288xf32>
    %cst_158 = arith.constant 0.000000e+00 : f32
    %147 = vector.broadcast %cst_158 : f32 to vector<4x288xf32>
    %148 = arith.maximumf %146, %147 : vector<4x288xf32>
    %149 = vector.broadcast %0 : vector<1x288xf32> to vector<4x288xf32>
    %150 = arith.mulf %148, %149 : vector<4x288xf32>
    %c0_159 = arith.constant 0 : index
    %c19_160 = arith.constant 19 : index
    %151 = vector.load %arg9[%c0_159, %c19_160] : memref<4x384xf32, #tpu.memory_space<vmem>>, vector<4x288xf32>
    tpu.vector_store %arg9[%c0_159, %c19_160], %150 {strides = array<i32>} : memref<4x384xf32, #tpu.memory_space<vmem>>, vector<4x288xf32>,
    %c0_161 = arith.constant 0 : index
    %c0_162 = arith.constant 0 : index
    %152 = vector.load %arg9[%c0_161, %c0_162] : memref<4x384xf32, #tpu.memory_space<vmem>>, vector<4x288xf32>
    %c0_163 = arith.constant 0 : index
    %c0_164 = arith.constant 0 : index
    %153 = vector.load %arg10[%c0_163, %c0_164] : memref<36x288xf32, #tpu.memory_space<vmem>>, vector<4x288xf32>
    tpu.vector_store %arg10[%c0_163, %c0_164], %152 {strides = array<i32>} : memref<36x288xf32, #tpu.memory_space<vmem>>, vector<4x288xf32>,
    %c0_165 = arith.constant 0 : index
    %c1_166 = arith.constant 1 : index
    %154 = vector.load %arg9[%c0_165, %c1_166] : memref<4x384xf32, #tpu.memory_space<vmem>>, vector<4x288xf32>
    %c4_167 = arith.constant 4 : index
    %c0_168 = arith.constant 0 : index
    %155 = vector.load %arg10[%c4_167, %c0_168] : memref<36x288xf32, #tpu.memory_space<vmem>>, vector<4x288xf32>
    tpu.vector_store %arg10[%c4_167, %c0_168], %154 {strides = array<i32>} : memref<36x288xf32, #tpu.memory_space<vmem>>, vector<4x288xf32>,
    %c0_169 = arith.constant 0 : index
    %c2_170 = arith.constant 2 : index
    %156 = vector.load %arg9[%c0_169, %c2_170] : memref<4x384xf32, #tpu.memory_space<vmem>>, vector<4x288xf32>
    %c8_171 = arith.constant 8 : index
    %c0_172 = arith.constant 0 : index
    %157 = vector.load %arg10[%c8_171, %c0_172] : memref<36x288xf32, #tpu.memory_space<vmem>>, vector<4x288xf32>
    tpu.vector_store %arg10[%c8_171, %c0_172], %156 {strides = array<i32>} : memref<36x288xf32, #tpu.memory_space<vmem>>, vector<4x288xf32>,
    %c0_173 = arith.constant 0 : index
    %c18_174 = arith.constant 18 : index
    %158 = vector.load %arg9[%c0_173, %c18_174] : memref<4x384xf32, #tpu.memory_space<vmem>>, vector<4x288xf32>
    %c12_175 = arith.constant 12 : index
    %c0_176 = arith.constant 0 : index
    %159 = vector.load %arg10[%c12_175, %c0_176] : memref<36x288xf32, #tpu.memory_space<vmem>>, vector<4x288xf32>
    tpu.vector_store %arg10[%c12_175, %c0_176], %158 {strides = array<i32>} : memref<36x288xf32, #tpu.memory_space<vmem>>, vector<4x288xf32>,
    %c0_177 = arith.constant 0 : index
    %c19_178 = arith.constant 19 : index
    %160 = vector.load %arg9[%c0_177, %c19_178] : memref<4x384xf32, #tpu.memory_space<vmem>>, vector<4x288xf32>
    %c16_179 = arith.constant 16 : index
    %c0_180 = arith.constant 0 : index
    %161 = vector.load %arg10[%c16_179, %c0_180] : memref<36x288xf32, #tpu.memory_space<vmem>>, vector<4x288xf32>
    tpu.vector_store %arg10[%c16_179, %c0_180], %160 {strides = array<i32>} : memref<36x288xf32, #tpu.memory_space<vmem>>, vector<4x288xf32>,
    %c0_181 = arith.constant 0 : index
    %c20_182 = arith.constant 20 : index
    %162 = vector.load %arg9[%c0_181, %c20_182] : memref<4x384xf32, #tpu.memory_space<vmem>>, vector<4x288xf32>
    %c20_183 = arith.constant 20 : index
    %c0_184 = arith.constant 0 : index
    %163 = vector.load %arg10[%c20_183, %c0_184] : memref<36x288xf32, #tpu.memory_space<vmem>>, vector<4x288xf32>
    tpu.vector_store %arg10[%c20_183, %c0_184], %162 {strides = array<i32>} : memref<36x288xf32, #tpu.memory_space<vmem>>, vector<4x288xf32>,
    %c0_185 = arith.constant 0 : index
    %c36_186 = arith.constant 36 : index
    %164 = vector.load %arg9[%c0_185, %c36_186] : memref<4x384xf32, #tpu.memory_space<vmem>>, vector<4x288xf32>
    %c24_187 = arith.constant 24 : index
    %c0_188 = arith.constant 0 : index
    %165 = vector.load %arg10[%c24_187, %c0_188] : memref<36x288xf32, #tpu.memory_space<vmem>>, vector<4x288xf32>
    tpu.vector_store %arg10[%c24_187, %c0_188], %164 {strides = array<i32>} : memref<36x288xf32, #tpu.memory_space<vmem>>, vector<4x288xf32>,
    %c0_189 = arith.constant 0 : index
    %c37_190 = arith.constant 37 : index
    %166 = vector.load %arg9[%c0_189, %c37_190] : memref<4x384xf32, #tpu.memory_space<vmem>>, vector<4x288xf32>
    %c28_191 = arith.constant 28 : index
    %c0_192 = arith.constant 0 : index
    %167 = vector.load %arg10[%c28_191, %c0_192] : memref<36x288xf32, #tpu.memory_space<vmem>>, vector<4x288xf32>
    tpu.vector_store %arg10[%c28_191, %c0_192], %166 {strides = array<i32>} : memref<36x288xf32, #tpu.memory_space<vmem>>, vector<4x288xf32>,
    %c0_193 = arith.constant 0 : index
    %c38_194 = arith.constant 38 : index
    %168 = vector.load %arg9[%c0_193, %c38_194] : memref<4x384xf32, #tpu.memory_space<vmem>>, vector<4x288xf32>
    %c32_195 = arith.constant 32 : index
    %c0_196 = arith.constant 0 : index
    %169 = vector.load %arg10[%c32_195, %c0_196] : memref<36x288xf32, #tpu.memory_space<vmem>>, vector<4x288xf32>
    tpu.vector_store %arg10[%c32_195, %c0_196], %168 {strides = array<i32>} : memref<36x288xf32, #tpu.memory_space<vmem>>, vector<4x288xf32>,
    %c0_197 = arith.constant 0 : index
    %c0_198 = arith.constant 0 : index
    %170 = vector.load %arg2[%c0_197, %c0_198] : memref<8x36xf32, #tpu.memory_space<vmem>>, vector<8x36xf32>
    %c0_199 = arith.constant 0 : index
    %c0_200 = arith.constant 0 : index
    %171 = vector.load %arg10[%c0_199, %c0_200] : memref<36x288xf32, #tpu.memory_space<vmem>>, vector<36x288xf32>
    %cst_201 = arith.constant dense<0.000000e+00> : vector<8x288xf32>
    %172 = tpu.matmul %170, %171, %cst_201 {dimension_numbers = #tpu.dot_dimension_numbers<[1], [0], [0], [1], [0, 0, 1, 1], [], []>, precision = #tpu.contract_precision<fp32>} : vector<8x36xf32>, vector<36x288xf32>, vector<8x288xf32> -> vector<8x288xf32>
    %c1_202 = arith.constant 1 : index
    %c0_203 = arith.constant 0 : index
    %c0_204 = arith.constant 0 : index
    %173 = vector.load %arg8[%c1_202, %c0_203, %c0_204] : memref<2x8x288xf32, #tpu.memory_space<vmem>>, vector<1x8x288xf32>
    %174 = vector.shape_cast %173 : vector<1x8x288xf32> to vector<8x288xf32>
    %175 = vector.shape_cast %172 : vector<8x288xf32> to vector<1x8x288xf32>
    tpu.vector_store %arg8[%c1_202, %c0_203, %c0_204], %175 {strides = array<i32>} : memref<2x8x288xf32, #tpu.memory_space<vmem>>, vector<1x8x288xf32>,
    %176 = vector.broadcast %0 : vector<1x288xf32> to vector<8x288xf32>
    %177 = arith.mulf %172, %176 : vector<8x288xf32>
    %cst_205 = arith.constant dense<0.000000e+00> : vector<8xf32>
    %178 = vector.multi_reduction <add>, %177, %cst_205 [1] : vector<8x288xf32> to vector<8xf32>
    %179 = vector.shape_cast %178 : vector<8xf32> to vector<8x1xf32>
    %180 = arith.addf %136, %179 : vector<8x1xf32>
    %181 = arith.mulf %177, %172 : vector<8x288xf32>
    %cst_206 = arith.constant dense<0.000000e+00> : vector<8xf32>
    %182 = vector.multi_reduction <add>, %181, %cst_206 [1] : vector<8x288xf32> to vector<8xf32>
    %183 = vector.shape_cast %182 : vector<8xf32> to vector<8x1xf32>
    %184 = arith.addf %140, %183 : vector<8x1xf32>
    %cst_207 = arith.constant 5.120000e+02 : f32
    %185 = vector.broadcast %cst_207 : f32 to vector<8x1xf32>
    %186 = arith.divf %180, %185 : vector<8x1xf32>
    %cst_208 = arith.constant 5.120000e+02 : f32
    %187 = vector.broadcast %cst_208 : f32 to vector<8x1xf32>
    %188 = arith.divf %184, %187 : vector<8x1xf32>
    %189 = arith.mulf %186, %186 : vector<8x1xf32>
    %190 = arith.subf %188, %189 : vector<8x1xf32>
    %c0_209 = arith.constant 0 : index
    %c0_210 = arith.constant 0 : index
    %191 = vector.load %arg6[%c0_209, %c0_210] : memref<8x1xf32, #tpu.memory_space<vmem>>, vector<8x1xf32>
    %cst_211 = arith.constant 9.99999974E-6 : f32
    %192 = vector.broadcast %cst_211 : f32 to vector<8x1xf32>
    %193 = arith.addf %190, %192 : vector<8x1xf32>
    %194 = math.rsqrt %193 : vector<8x1xf32>
    %195 = arith.mulf %191, %194 : vector<8x1xf32>
    %c0_212 = arith.constant 0 : index
    %c0_213 = arith.constant 0 : index
    %196 = vector.load %arg7[%c0_212, %c0_213] : memref<8x1xf32, #tpu.memory_space<vmem>>, vector<8x1xf32>
    %197 = arith.mulf %186, %195 : vector<8x1xf32>
    %198 = arith.subf %196, %197 : vector<8x1xf32>
    %c0_214 = arith.constant 0 : index
    %c0_215 = arith.constant 0 : index
    %c0_216 = arith.constant 0 : index
    %199 = vector.load %arg8[%c0_214, %c0_215, %c0_216] : memref<2x8x288xf32, #tpu.memory_space<vmem>>, vector<1x8x288xf32>
    %200 = vector.shape_cast %199 : vector<1x8x288xf32> to vector<8x288xf32>
    %201 = vector.broadcast %195 : vector<8x1xf32> to vector<8x288xf32>
    %202 = arith.mulf %200, %201 : vector<8x288xf32>
    %203 = vector.broadcast %198 : vector<8x1xf32> to vector<8x288xf32>
    %204 = arith.addf %202, %203 : vector<8x288xf32>
    %c0_217 = arith.constant 0 : index
    %c0_218 = arith.constant 0 : index
    %c0_219 = arith.constant 0 : index
    %205 = vector.load %arg8[%c0_217, %c0_218, %c0_219] : memref<2x8x288xf32, #tpu.memory_space<vmem>>, vector<1x8x288xf32>
    %206 = vector.shape_cast %205 : vector<1x8x288xf32> to vector<8x288xf32>
    %207 = vector.shape_cast %204 : vector<8x288xf32> to vector<1x8x288xf32>
    tpu.vector_store %arg8[%c0_217, %c0_218, %c0_219], %207 {strides = array<i32>} : memref<2x8x288xf32, #tpu.memory_space<vmem>>, vector<1x8x288xf32>,
    %c1_220 = arith.constant 1 : index
    %c0_221 = arith.constant 0 : index
    %c0_222 = arith.constant 0 : index
    %208 = vector.load %arg8[%c1_220, %c0_221, %c0_222] : memref<2x8x288xf32, #tpu.memory_space<vmem>>, vector<1x8x288xf32>
    %209 = vector.shape_cast %208 : vector<1x8x288xf32> to vector<8x288xf32>
    %210 = vector.broadcast %195 : vector<8x1xf32> to vector<8x288xf32>
    %211 = arith.mulf %209, %210 : vector<8x288xf32>
    %212 = vector.broadcast %198 : vector<8x1xf32> to vector<8x288xf32>
    %213 = arith.addf %211, %212 : vector<8x288xf32>
    %c1_223 = arith.constant 1 : index
    %c0_224 = arith.constant 0 : index
    %c0_225 = arith.constant 0 : index
    %214 = vector.load %arg8[%c1_223, %c0_224, %c0_225] : memref<2x8x288xf32, #tpu.memory_space<vmem>>, vector<1x8x288xf32>
    %215 = vector.shape_cast %214 : vector<1x8x288xf32> to vector<8x288xf32>
    %216 = vector.shape_cast %213 : vector<8x288xf32> to vector<1x8x288xf32>
    tpu.vector_store %arg8[%c1_223, %c0_224, %c0_225], %216 {strides = array<i32>} : memref<2x8x288xf32, #tpu.memory_space<vmem>>, vector<1x8x288xf32>,
    return
  }
}

</mosaic_0001>

<bundles_post_ra>
// kernel: sep_conv.1
= control target key start
LH: loop header
LB: loop body
LE: loop exit
PB: predicated region body
PF: predicated region fallthrough
CT: control target
= control target key end

     0   :  { %v5878_v3 = vmov 0.0   ;;  %s5879_s13 = smov 19   ;;  %vm48_vm0 = vcmask 1043608   ;;  %vm49_vm1 = vcmask 1047556   ;;  %vm43_vm2 = vcmask 154624   ;;  %s5881_s14 = smov 92   ;;  %s7651_s0 = inlined_call_operand.vmem [shape: f32[2,4,288], index: 0, kind: input, shape index: {}]   ;;  %s7652_s1 = inlined_call_operand.vmem [shape: f32[4,36], index: 1, kind: input, shape index: {}]   ;;  %s7653_s3 = inlined_call_operand.vmem [shape: f32[1,288], index: 3, kind: input, shape index: {}]   ;;  %s7654_s4 = inlined_call_operand.vmem [shape: f32[4,1], index: 4, kind: input, shape index: {}]   ;;  %s7655_s5 = inlined_call_operand.vmem [shape: f32[4,1], index: 5, kind: input, shape index: {}]   ;;  %s7656_s2 = inlined_call_operand.vmem [shape: f32[8,36], index: 2, kind: input, shape index: {}]   ;;  %s7657_s8 = inlined_call_operand.vmem [shape: f32[2,8,288], index: 8, kind: output, shape index: {}]   ;;  %s7658_s6 = inlined_call_operand.vmem [shape: f32[8,1], index: 6, kind: input, shape index: {}]   ;;  %s7659_s7 = inlined_call_operand.vmem [shape: f32[8,1], index: 7, kind: input, shape index: {}]  }
   0x1   :  { %v32_v0 = vld [vmem:[%s7651_s0] sm:$0xff]  ;;  %v33_v1 = vld [vmem:[%s7651_s0 + $0x8] sm:$0xf]  ;;  %v5370_v2 = vld [vmem:[%s7651_s0 + $0xc] sm:$0xff]  ;;  %30 = vst [vmem:[#allocation2] sm:$0xff] %v5878_v3  ;;  %332 = vmatprep.mubr.f32.mxu0 %v5878_v3  ;;  %458 = vmatprep.mubr.f32.mxu1 %v5878_v3  ;;  %vm52_vm4 = vcmask 412672  }
   0x2   :  { %31 = vst [vmem:[#allocation2 + $0x8] sm:$0xf] %v5878_v3  ;;  %v34_v4 = vmax.f32 %v32_v0, 0.0  ;;  %v1372_v5 = vmax.f32 %v5370_v2, 0.0  ;;  %v5371_v6 = vld [vmem:[%s7651_s0 + $0x14] sm:$0xf]  ;;  %vm5956_vm3 = vmor %vm49_vm1, %vm48_vm0 }
   0x3   :  { %v35_v7 = vmax.f32 %v33_v1, 0.0  ;;  %v1373_v8 = vmax.f32 %v5371_v6, 0.0  ;;  %vm61_vm5 = vcmask 257024   ;;  %s5880_s0 = smov 90   ;;  %s5882_s15 = smov 91   ;;  %vm219_vm6 = vcmask 736256  }
   0x4   :  { %38 = vrot.lane.b32.xlu0 %v34_v4, %s5879_s13  ;;  %1376 = vrot.lane.b32.xlu1 %v1372_v5, %s5879_s13  ;;  %s5883_s16 = smov 109   ;;  %s5884_s17 = smov 126   ;;  %vm83_vm7 = vcmask 261124   ;;  %vm199_vm8 = vcmask 744448   ;;  %vm248_vm9 = vcmask 1043456   ;;  %vm158_vm10 = vcmask 883712  }
   0x5   :  { %s5885_s18 = smov 108   ;;  %s5886_s19 = smov 110   ;;  %vm178_vm11 = vcmask 752640   ;;  %vm244_vm12 = vcmask 293888   ;;  %vm117_vm13 = vcmask 900096   ;;  %vm137_vm14 = vcmask 891904  }
   0x6   :  { %s5887_s20 = smov 127   ;;  %vm96_vm15 = vcmask 1031168   ;;  %vm75_vm0 = vcmask 1039360   ;;  %vm5888_vm1 = vmmov 0  }
   0x8   :  { %40 = vrot.lane.b32.xlu0 %v35_v7, %s5879_s13  ;;  %1378 = vrot.lane.b32.xlu1 %v1373_v8, %s5879_s13 }
  0x76   :  { %v39_v9 = vpop.permute.xlu0 %38  ;;  %v1377_v12 = vpop.permute.xlu1 %1376 }
  0x77   :  { %v42_v11 = vrot.slane %v39_v9, 4  ;;  %v1380_v16 = vrot.slane %v1377_v12, 4 }
  0x79   :  { %v44_v13 = vsel %vm43_vm2, %v42_v11, %v39_v9  ;;  %v1381_v17 = vsel %vm43_vm2, %v1380_v16, %v1377_v12 }
  0x7a   :  { %51 = vst.msk [vmem:[#allocation2] sm:$0xff] %vm5956_vm3, %v44_v13  ;;  %v41_v14 = vpop.permute.xlu0 %40  ;;  %v1379_v20 = vpop.permute.xlu1 %1378 }
  0x7b   :  { %v45_v15 = vsel %vm43_vm2, %v42_v11, %v41_v14  ;;  %v1382_v26 = vsel %vm43_vm2, %v1380_v16, %v1379_v20  ;;  %v228_v16 = vld [vmem:[%s7652_s1] sm:$0xf] }
  0x7c   :  { %53 = vst.msk [vmem:[#allocation2 + $0x8] sm:$0xf] %vm52_vm4, %v45_v15 }
  0x81   :  { %v54_v18 = vld [vmem:[#allocation2] sm:$0xff] }
  0x82   :  { %v57_v19 = vcombine.high %v54_v18, %v54_v18  ;;  %59 = vst [vmem:[#allocation3] sm:$0xf] %v54_v18  ;;  %213 = vrot.lane.b32.xlu0 %v54_v18, %s5880_s0  ;;  %1385 = vst.msk [vmem:[#allocation2] sm:$0xff] %vm5956_vm3, %v1381_v17  ;;  %v191_v31 = vcombine.low %v54_v18, %v54_v18 }
  0x83   :  { %v55_v21 = vld [vmem:[#allocation2 + $0x8] sm:$0xf] }
  0x84   :  { %v209_v22 = vld [vmem:[#allocation2 + $0x8] sm:$0xf]  ;;  %60 = vst [vmem:[#allocation3 + $0x8] sm:$0xf] %v57_v19  ;;  %62 = vst.msk [vmem:[#allocation3 + $0x10] sm:$0xf] %vm61_vm5, %v55_v21 }
  0x85   :  { %217 = vrot.lane.b32.xlu1 %v209_v22, %s5880_s0  ;;  %v168_v23 = vld [vmem:[#allocation2 + $0x8] sm:$0xf] }
  0x86   :  { %v127_v24 = vld [vmem:[#allocation2 + $0x8] sm:$0xf]  ;;  %176 = vrot.lane.b32.xlu0 %v168_v23, %s5881_s14  ;;  %v246_v23 = vsel %vm244_vm12, %v228_v16, 0 }
  0x87   :  { %v86_v25 = vld [vmem:[#allocation2 + $0x8] sm:$0xf] }
  0x88   :  { %v5853_v27 = vld [vmem:[#allocation2 + $0x8] ss:$0 sps:$4 sm:$0xff]  }
  0x89   :  { %v5854_v28 = vld [vmem:[#allocation2 + $0x8] ss:$0 sps:$4 sm:$0xff]   ;;  %195 = vrot.lane.b32.xlu1 %v54_v18, %s5882_s15  ;;  %v5994_v32 = vld [vmem:[#allocation2] sm:$0xff] }
  0x8a   :  { %v5855_v29 = vld [vmem:[#allocation2 + $0x8] ss:$0 sps:$4 sm:$0xff]   ;;  %135 = vrot.lane.b32.xlu0 %v127_v24, %s5883_s16  ;;  %v6011_v37 = vcombine.high %v5994_v32, %v5994_v32  ;;  %v1516_v39 = vcombine.low %v5994_v32, %v5994_v32 }
  0x8b   :  { %v5856_v30 = vld [vmem:[#allocation2 + $0x8] ss:$0 sps:$4 sm:$0xff]  }
  0x8c   :  { %1386 = vst.msk [vmem:[#allocation2 + $0x8] sm:$0xf] %vm52_vm4, %v1382_v26 }
  0x8d   :  { %172 = vrot.lane.b32.xlu1 %v54_v18, %s5881_s14 }
  0x8e   :  { %94 = vrot.lane.b32.xlu0 %v86_v25, %s5884_s17 }
  0x91   :  { %154 = vrot.lane.b32.xlu1 %v54_v18, %s5885_s18 }
  0x92   :  { %215 = vrot.lane.b32.xlu0 %v57_v19, %s5880_s0 }
  0x93   :  { %v1533_v33 = vld [vmem:[#allocation2 + $0x8] sm:$0xf] }
  0x94   :  { %v1494_v34 = vld [vmem:[#allocation2 + $0x8] sm:$0xf] }
  0x95   :  { %131 = vrot.lane.b32.xlu1 %v54_v18, %s5883_s16  ;;  %v1455_v35 = vld [vmem:[#allocation2 + $0x8] sm:$0xf] }
  0x96   :  { %197 = vrot.lane.b32.xlu0 %v5853_v27, %s5882_s15  ;;  %v1416_v36 = vld [vmem:[#allocation2 + $0x8] sm:$0xf] }
  0x97   :  { %v5858_v38 = vld [vmem:[#allocation2 + $0x8] ss:$0 sps:$4 sm:$0xff]  }
  0x98   :  { %v5860_v40 = vld [vmem:[#allocation2 + $0x8] ss:$0 sps:$4 sm:$0xff]  }
  0x99   :  { %113 = vrot.lane.b32.xlu1 %v54_v18, %s5886_s19  ;;  %v5861_v41 = vld [vmem:[#allocation2 + $0x8] ss:$0 sps:$4 sm:$0xff]  }
  0x9a   :  { %193 = vrot.lane.b32.xlu0 %v191_v31, %s5882_s15  ;;  %v5862_v42 = vld [vmem:[#allocation2 + $0x8] ss:$0 sps:$4 sm:$0xff]  }
  0x9d   :  { %90 = vrot.lane.b32.xlu1 %v54_v18, %s5884_s17 }
  0x9e   :  { %156 = vrot.lane.b32.xlu0 %v5854_v28, %s5885_s18  ;;  %v6090_v28 = vand.u32 4294901760, %v246_v23 }
  0xa1   :  { %71 = vrot.lane.b32.xlu1 %v54_v18, %s5887_s20 }
  0xa2   :  { %152 = vrot.lane.b32.xlu0 %v191_v31, %s5885_s18 }
  0xa5   :  { %174 = vrot.lane.b32.xlu1 %v57_v19, %s5881_s14 }
  0xa6   :  { %115 = vrot.lane.b32.xlu0 %v5855_v29, %s5886_s19 }
  0xa9   :  { %133 = vrot.lane.b32.xlu1 %v57_v19, %s5883_s16 }
  0xaa   :  { %111 = vrot.lane.b32.xlu0 %v191_v31, %s5886_s19 }
  0xad   :  { %92 = vrot.lane.b32.xlu1 %v57_v19, %s5884_s17 }
  0xae   :  { %73 = vrot.lane.b32.xlu0 %v5856_v30, %s5887_s20 }
  0xb1   :  { %69 = vrot.lane.b32.xlu1 %v191_v31, %s5887_s20 }
  0xb2   :  { %1537 = vrot.lane.b32.xlu0 %v5994_v32, %s5880_s0 }
  0xb5   :  { %1541 = vrot.lane.b32.xlu1 %v1533_v33, %s5880_s0 }
  0xb6   :  { %1502 = vrot.lane.b32.xlu0 %v1494_v34, %s5881_s14 }
  0xb9   :  { %1520 = vrot.lane.b32.xlu1 %v5994_v32, %s5882_s15 }
  0xba   :  { %1463 = vrot.lane.b32.xlu0 %v1455_v35, %s5883_s16 }
  0xbd   :  { %1498 = vrot.lane.b32.xlu1 %v5994_v32, %s5881_s14 }
  0xbe   :  { %1424 = vrot.lane.b32.xlu0 %v1416_v36, %s5884_s17 }
  0xc1   :  { %1481 = vrot.lane.b32.xlu1 %v5994_v32, %s5885_s18 }
  0xc2   :  { %1539 = vrot.lane.b32.xlu0 %v6011_v37, %s5880_s0 }
  0xc5   :  { %1459 = vrot.lane.b32.xlu1 %v5994_v32, %s5883_s16 }
  0xc6   :  { %1522 = vrot.lane.b32.xlu0 %v5858_v38, %s5882_s15  ;;  %v6097_v38 = vsub.f32 %v246_v23, %v6090_v28 }
  0xc9   :  { %1442 = vrot.lane.b32.xlu1 %v5994_v32, %s5886_s19 }
  0xca   :  { %1518 = vrot.lane.b32.xlu0 %v1516_v39, %s5882_s15 }
  0xcd   :  { %1420 = vrot.lane.b32.xlu1 %v5994_v32, %s5884_s17 }
  0xce   :  { %1483 = vrot.lane.b32.xlu0 %v5860_v40, %s5885_s18 }
  0xd1   :  { %1403 = vrot.lane.b32.xlu1 %v5994_v32, %s5887_s20 }
  0xd2   :  { %1479 = vrot.lane.b32.xlu0 %v1516_v39, %s5885_s18 }
  0xd5   :  { %1500 = vrot.lane.b32.xlu1 %v6011_v37, %s5881_s14 }
  0xd6   :  { %1444 = vrot.lane.b32.xlu0 %v5861_v41, %s5886_s19 }
  0xd9   :  { %1461 = vrot.lane.b32.xlu1 %v6011_v37, %s5883_s16 }
  0xda   :  { %1440 = vrot.lane.b32.xlu0 %v1516_v39, %s5886_s19 }
  0xdd   :  { %1422 = vrot.lane.b32.xlu1 %v6011_v37, %s5884_s17 }
  0xde   :  { %1405 = vrot.lane.b32.xlu0 %v5862_v42, %s5887_s20 }
  0xe1   :  { %1401 = vrot.lane.b32.xlu1 %v1516_v39, %s5887_s20 }
  0xf4   :  { %v214_v43 = vpop.permute.xlu0 %213 }
  0xf7   :  { %v218_v44 = vpop.permute.xlu1 %217 }
  0xf8   :  { %227 = vst.msk [vmem:[#allocation3 + $0x70] sm:$0xf] %vm61_vm5, %v218_v44  ;;  %v177_v45 = vpop.permute.xlu0 %176 }
  0xf9   :  { %186 = vst.msk [vmem:[#allocation3 + $0x58] sm:$0xf] %vm61_vm5, %v177_v45 }
  0xfb   :  { %v196_v46 = vpop.permute.xlu1 %195 }
  0xfc   :  { %v6041_v47 = vpop.permute.xlu0 %135 }
  0xfd   :  { %145 = vst.msk [vmem:[#allocation3 + $0x40] sm:$0xf] %vm61_vm5, %v6041_v47 }
  0xff   :  { %v173_v48 = vpop.permute.xlu1 %172 }
 0x100   :  { %v6045_v49 = vpop.permute.xlu0 %94 }
 0x101   :  { %104 = vst.msk [vmem:[#allocation3 + $0x28] sm:$0xf] %vm61_vm5, %v6045_v49 }
 0x103   :  { %v155_v50 = vpop.permute.xlu1 %154 }
 0x104   :  { %v216_v51 = vpop.permute.xlu0 %215 }
 0x105   :  { %v220_v52 = vsel %vm219_vm6, %v214_v43, %v216_v51  ;;  %v221_v53 = vsel %vm219_vm6, %v216_v51, %v218_v44 }
 0x106   :  { %225 = vst [vmem:[#allocation3 + $0x60] sm:$0xf] %v220_v52  ;;  %226 = vst [vmem:[#allocation3 + $0x68] sm:$0xf] %v221_v53 }
 0x107   :  { %v132_v54 = vpop.permute.xlu1 %131 }
 0x108   :  { %v198_v55 = vpop.permute.xlu0 %197 }
 0x109   :  { %v201_v56 = vsel %vm199_vm8, %v196_v46, %v198_v55  ;;  %207 = vst.msk [vmem:[#allocation3 + $0x58] sm:$0xf0] %vm83_vm7, %v198_v55  ;;  %v6125_v55 = vld [vmem:[#allocation3 + $0x70] sm:$0xf] }
 0x10a   :  { %206 = vst [vmem:[#allocation3 + $0x50] sm:$0xf0] %v201_v56 }
 0x10b   :  { %v114_v57 = vpop.permute.xlu1 %113 }
 0x10c   :  { %v194_v58 = vpop.permute.xlu0 %193 }
 0x10d   :  { %v200_v59 = vsel %vm199_vm8, %v194_v58, %v196_v46  ;;  %v242_v60 = vld [vmem:[#allocation3 + $0x68] sm:$0xf]  ;;  %v241_v61 = vld [vmem:[#allocation3 + $0x60] sm:$0xf] }
 0x10e   :  { %205 = vst [vmem:[#allocation3 + $0x48] sm:$0xf0] %v200_v59  ;;  %v253_v63 = vsel %vm248_vm9, %v242_v60, 0  ;;  %v250_v0 = vsel %vm248_vm9, %v241_v61, 0 }
 0x10f   :  { %v91_v62 = vpop.permute.xlu1 %90  ;;  %v6056_v1 = vand.u32 4294901760, %v253_v63  ;;  %v6058_v2 = vand.u32 4294901760, %v250_v0 }
 0x110   :  { %v157_v4 = vpop.permute.xlu0 %156 }
 0x111   :  { %v160_v5 = vsel %vm158_vm10, %v155_v50, %v157_v4  ;;  %166 = vst.msk [vmem:[#allocation3 + $0x40] sm:$0xf0] %vm83_vm7, %v157_v4  ;;  %281 = vmatprep.subr.mxu0 %v6056_v1  ;;  %v6064_v6 = vsub.f32 %v253_v63, %v6056_v1  ;;  %v6067_v7 = vsub.f32 %v250_v0, %v6058_v2  ;;  %v1388_v0 = vld [vmem:[#allocation2 + $0x8] sm:$0xf] }
 0x112   :  { %165 = vst [vmem:[#allocation3 + $0x38] sm:$0xf0] %v160_v5  ;;  %283 = vmatpush1.msra.mxu0 %v6058_v2  ;;  %v6147_v4 = vld [vmem:[#allocation3 + $0x58] sm:$0xff] }
 0x113   :  { %v72_v8 = vpop.permute.xlu1 %71  ;;  %v368_v9 = vand.u32 4294901760, %v6064_v6  ;;  %v374_v11 = vand.u32 4294901760, %v6067_v7 }
 0x114   :  { %v153_v12 = vpop.permute.xlu0 %152 }
 0x115   :  { %v159_v13 = vsel %vm158_vm10, %v153_v12, %v155_v50  ;;  %v369_v14 = vsub.f32 %v6064_v6, %v368_v9  ;;  %v375_v15 = vsub.f32 %v6067_v7, %v374_v11 }
 0x116   :  { %164 = vst [vmem:[#allocation3 + $0x30] sm:$0xf0] %v159_v13 }
 0x117   :  { %v175_v17 = vpop.permute.xlu1 %174  ;;  %v370_v20 = vand.u32 4294901760, %v369_v14  ;;  %v376_v21 = vand.u32 4294901760, %v375_v15 }
 0x118   :  { %v179_v18 = vsel %vm178_vm11, %v173_v48, %v175_v17  ;;  %v180_v19 = vsel %vm178_vm11, %v175_v17, %v177_v45  ;;  %v116_v22 = vpop.permute.xlu0 %115 }
 0x119   :  { %184 = vst [vmem:[#allocation3 + $0x48] sm:$0xf] %v179_v18  ;;  %185 = vst [vmem:[#allocation3 + $0x50] sm:$0xf] %v180_v19  ;;  %v119_v24 = vsel %vm117_vm13, %v114_v57, %v116_v22  ;;  %371 = vmatprep.subr.mxu1 %v370_v20 }
 0x11a   :  { %125 = vst.msk [vmem:[#allocation3 + $0x28] sm:$0xf0] %vm83_vm7, %v116_v22  ;;  %124 = vst [vmem:[#allocation3 + $0x20] sm:$0xf0] %v119_v24  ;;  %377 = vmatpush1.msra.mxu1 %v376_v21 }
 0x11b   :  { %v134_v25 = vpop.permute.xlu1 %133 }
 0x11c   :  { %v138_v26 = vsel %vm137_vm14, %v132_v54, %v134_v25  ;;  %v139_v27 = vsel %vm137_vm14, %v134_v25, %v6041_v47  ;;  %v112_v29 = vpop.permute.xlu0 %111 }
 0x11d   :  { %143 = vst [vmem:[#allocation3 + $0x30] sm:$0xf] %v138_v26  ;;  %144 = vst [vmem:[#allocation3 + $0x38] sm:$0xf] %v139_v27  ;;  %v118_v30 = vsel %vm117_vm13, %v112_v29, %v114_v57 }
 0x11e   :  { %123 = vst [vmem:[#allocation3 + $0x18] sm:$0xf0] %v118_v30 }
 0x11f   :  { %v93_v31 = vpop.permute.xlu1 %92 }
 0x120   :  { %v97_v33 = vsel %vm96_vm15, %v91_v62, %v93_v31  ;;  %v98_v34 = vsel %vm96_vm15, %v93_v31, %v6045_v49  ;;  %v239_v35 = vld [vmem:[#allocation3 + $0x50] sm:$0xff]  ;;  %v238_v36 = vld [vmem:[#allocation3 + $0x48] sm:$0xff]  ;;  %v74_v39 = vpop.permute.xlu0 %73  ;;  %v6115_v49 = vand.u32 4294901760, %v6097_v38 }
 0x121   :  { %102 = vst [vmem:[#allocation3 + $0x18] sm:$0xf] %v97_v33  ;;  %103 = vst [vmem:[#allocation3 + $0x20] sm:$0xf] %v98_v34  ;;  %v6099_v40 = vand.u32 4294901760, %v239_v35  ;;  %v6101_v41 = vand.u32 4294901760, %v238_v36  ;;  %v77_v42 = vsel %vm75_vm0, %v72_v8, %v74_v39 }
 0x122   :  { %84 = vst.msk [vmem:[#allocation3 + $0x10] sm:$0xf0] %vm83_vm7, %v74_v39  ;;  %82 = vst [vmem:[#allocation3 + $0x8] sm:$0xf0] %v77_v42  ;;  %v336_v63 = vsub.f32 %v6097_v38, %v6115_v49 }
 0x123   :  { %v70_v43 = vpop.permute.xlu1 %69  ;;  %285 = vmatprep.subr.mxu0 %v6099_v40  ;;  %v6107_v44 = vsub.f32 %v239_v35, %v6099_v40  ;;  %v6110_v45 = vsub.f32 %v238_v36, %v6101_v41 }
 0x124   :  { %v76_v46 = vsel %vm75_vm0, %v70_v43, %v72_v8  ;;  %287 = vmatpush1.msra.mxu0 %v6101_v41  ;;  %v236_v47 = vld [vmem:[#allocation3 + $0x38] sm:$0xff]  ;;  %v235_v48 = vld [vmem:[#allocation3 + $0x30] sm:$0xff]  ;;  %v6117_v50 = vpop.permute.xlu0 %1537  ;;  %v6181_v26 = vand.u32 4294901760, %v336_v63 }
 0x125   :  { %81 = vst [vmem:[#allocation3] sm:$0xf0] %v76_v46  ;;  %v6119_v51 = vand.u32 4294901760, %v236_v47  ;;  %v6121_v52 = vand.u32 4294901760, %v235_v48  ;;  %v380_v53 = vand.u32 4294901760, %v6107_v44  ;;  %v386_v54 = vand.u32 4294901760, %v6110_v45 }
 0x126   :  { %v6213_v46 = vld [vmem:[#allocation3 + $0x28] sm:$0xff] }
 0x127   :  { %v6127_v56 = vpop.permute.xlu1 %1541  ;;  %289 = vmatprep.subr.mxu0 %v6119_v51  ;;  %v381_v57 = vsub.f32 %v6107_v44, %v380_v53  ;;  %v387_v58 = vsub.f32 %v6110_v45, %v386_v54  ;;  %v6137_v59 = vsub.f32 %v236_v47, %v6119_v51  ;;  %v6140_v60 = vsub.f32 %v235_v48, %v6121_v52 }
 0x128   :  { %1550 = vst.msk [vmem:[#allocation3 + $0x70] sm:$0xf] %vm61_vm5, %v6127_v56  ;;  %291 = vmatpush1.msra.mxu0 %v6121_v52  ;;  %v233_v61 = vld [vmem:[#allocation3 + $0x20] sm:$0xff]  ;;  %v232_v62 = vld [vmem:[#allocation3 + $0x18] sm:$0xff]  ;;  %v6149_v5 = vpop.permute.xlu0 %1502 }
 0x129   :  { %v6151_v8 = vand.u32 4294901760, %v233_v61  ;;  %v382_v12 = vand.u32 4294901760, %v381_v57  ;;  %v6153_v13 = vand.u32 4294901760, %v232_v62  ;;  %v388_v14 = vand.u32 4294901760, %v387_v58  ;;  %v6155_v15 = vld [vmem:[#allocation3 + $0x10] sm:$0xff]  ;;  %v230_v16 = vld [vmem:[#allocation3 + $0x8] sm:$0xff] }
 0x12a   :  { %1511 = vst.msk [vmem:[#allocation3 + $0x58] sm:$0xf] %vm61_vm5, %v6149_v5  ;;  %v392_v17 = vand.u32 4294901760, %v6137_v59  ;;  %v398_v18 = vand.u32 4294901760, %v6140_v60  ;;  %1394 = vst.msk [vmem:[#allocation3 + $0x10] sm:$0xf] %vm61_vm5, %v1388_v0 }
 0x12b   :  { %v6162_v19 = vpop.permute.xlu1 %1520  ;;  %293 = vmatprep.subr.mxu0 %v6151_v8  ;;  %383 = vmatprep.subr.mxu1 %v382_v12  ;;  %v6165_v20 = vand.u32 4294901760, %v230_v16  ;;  %1393 = vst [vmem:[#allocation3 + $0x8] sm:$0xf] %v6011_v37  ;;  %v6169_v21 = vsub.f32 %v233_v61, %v6151_v8  ;;  %v6172_v22 = vsub.f32 %v232_v62, %v6153_v13  ;;  %v6184_v37 = vld [vmem:[#allocation3 + $0x40] sm:$0xff] }
 0x12c   :  { %295 = vmatpush1.msra.mxu0 %v6153_v13  ;;  %389 = vmatpush1.msra.mxu1 %v388_v14  ;;  %v229_v23 = vld [vmem:[#allocation3] sm:$0xff]  ;;  %v393_v24 = vsub.f32 %v6137_v59, %v392_v17  ;;  %v399_v25 = vsub.f32 %v6140_v60, %v398_v18  ;;  %v6186_v27 = vpop.permute.xlu0 %1463 }
 0x12d   :  { %297 = vmatprep.subr.mxu0 %v6165_v20  ;;  %v6188_v29 = vand.u32 4294901760, %v229_v23  ;;  %1392 = vst [vmem:[#allocation3] sm:$0xf] %v5994_v32  ;;  %v404_v30 = vand.u32 4294901760, %v6169_v21  ;;  %v410_v31 = vand.u32 4294901760, %v6172_v22  ;;  %v6194_v33 = vsub.f32 %v230_v16, %v6165_v20 }
 0x12e   :  { %1472 = vst.msk [vmem:[#allocation3 + $0x40] sm:$0xf] %vm61_vm5, %v6186_v27  ;;  %v394_v34 = vand.u32 4294901760, %v393_v24  ;;  %v400_v35 = vand.u32 4294901760, %v399_v25 }
 0x12f   :  { %v6198_v36 = vpop.permute.xlu1 %1498  ;;  %299 = vmatpush1.msra.mxu0 %v6188_v29  ;;  %v405_v32 = vsub.f32 %v6169_v21, %v404_v30  ;;  %v411_v39 = vsub.f32 %v6172_v22, %v410_v31  ;;  %v416_v42 = vand.u32 4294901760, %v6194_v33  ;;  %v6209_v43 = vsub.f32 %v229_v23, %v6188_v29 }
 0x130   :  { %395 = vmatprep.subr.mxu1 %v394_v34  ;;  %490 = vmatprep.subr.mxu0 %v6064_v6  ;;  %v6215_v47 = vpop.permute.xlu0 %1424  ;;  %v256_v34 = vsel %vm248_vm9, %v6125_v55, 0  ;;  %v6301_v55 = vand.u32 4294901760, %v6184_v37 }
 0x131   :  { %401 = vmatpush1.msra.mxu1 %v400_v35  ;;  %338 = vmatmul.mubr.f32.vlgmr.msra.gmra.mxu0 %v6181_v26  ;;  %v406_v48 = vand.u32 4294901760, %v405_v32  ;;  %v412_v57 = vand.u32 4294901760, %v411_v39  ;;  %v417_v58 = vsub.f32 %v6194_v33, %v416_v42  ;;  %v422_v61 = vand.u32 4294901760, %v6209_v43  ;;  %1433 = vst.msk [vmem:[#allocation3 + $0x28] sm:$0xf] %vm61_vm5, %v6215_v47 }
 0x132   :  { %493 = vmatpush1.msra.mxu0 %v6067_v7  ;;  %550 = vmatprep.mubr.f32.mxu0 %v5878_v3  ;;  %v6272_v7 = vand.u32 4294901760, %v256_v34 }
 0x133   :  { %496 = vmatprep.subr.mxu0 %v6107_v44  ;;  %v6226_v62 = vpop.permute.xlu1 %1481  ;;  %407 = vmatprep.subr.mxu1 %v406_v48  ;;  %v418_v63 = vand.u32 4294901760, %v417_v58  ;;  %v423_v0 = vsub.f32 %v6209_v43, %v422_v61 }
 0x134   :  { %499 = vmatpush1.msra.mxu0 %v6110_v45  ;;  %413 = vmatpush1.msra.mxu1 %v412_v57  ;;  %v1540_v12 = vpop.permute.xlu0 %1539  ;;  %v6287_v45 = vand.u32 4294901760, %v6147_v4 }
 0x135   :  { %502 = vmatprep.subr.mxu0 %v6137_v59  ;;  %419 = vmatprep.subr.mxu1 %v418_v63  ;;  %v424_v14 = vand.u32 4294901760, %v423_v0  ;;  %v1543_v16 = vsel %vm219_vm6, %v6117_v50, %v1540_v12  ;;  %v1544_v23 = vsel %vm219_vm6, %v1540_v12, %v6127_v56 }
 0x136   :  { %505 = vmatpush1.msra.mxu0 %v6140_v60  ;;  %1548 = vst [vmem:[#allocation3 + $0x60] sm:$0xf] %v1543_v16  ;;  %1549 = vst [vmem:[#allocation3 + $0x68] sm:$0xf] %v1544_v23 }
 0x137   :  { %508 = vmatprep.subr.mxu0 %v6169_v21  ;;  %v6239_v24 = vpop.permute.xlu1 %1459  ;;  %425 = vmatpush1.msra.mxu1 %v424_v14  ;;  %v1551_v14 = vld [vmem:[%s7652_s1] sm:$0xf] }
 0x138   :  { %511 = vmatpush1.msra.mxu0 %v6172_v22  ;;  %460 = vmatmul.mubr.f32.vlgmr.msra.gmra.mxu1 %v6090_v28  ;;  %v1523_v25 = vpop.permute.xlu0 %1522 }
 0x139   :  { %514 = vmatprep.subr.mxu0 %v6194_v33  ;;  %582 = vmatprep.subr.mxu1 %v6056_v1  ;;  %v1525_v50 = vsel %vm199_vm8, %v6162_v19, %v1523_v25  ;;  %1531 = vst.msk [vmem:[#allocation3 + $0x58] sm:$0xf0] %vm83_vm7, %v1523_v25  ;;  %v1568_v25 = vsel %vm244_vm12, %v1551_v14, 0 }
 0x13a   :  { %517 = vmatpush1.msra.mxu0 %v6209_v43  ;;  %584 = vmatpush1.msra.mxu1 %v6058_v2  ;;  %1530 = vst [vmem:[#allocation3 + $0x50] sm:$0xf0] %v1525_v50 }
 0x13b   :  { %553 = vmatmul.mubr.f32.vlgmr.msra.gmra.mxu0 %v6097_v38  ;;  %586 = vmatprep.subr.mxu1 %v6099_v40  ;;  %v6252_v56 = vpop.permute.xlu1 %1442 }
 0x13c   :  { %668 = vmatprep.subr.mxu0 %v368_v9  ;;  %588 = vmatpush1.msra.mxu1 %v6101_v41  ;;  %v1519_v35 = vpop.permute.xlu0 %1518 }
 0x13d   :  { %672 = vmatpush1.msra.mxu0 %v374_v11  ;;  %590 = vmatprep.subr.mxu1 %v6119_v51  ;;  %v1524_v6 = vsel %vm199_vm8, %v1519_v35, %v6162_v19  ;;  %v1565_v12 = vld [vmem:[#allocation3 + $0x68] sm:$0xf]  ;;  %v1564_v16 = vld [vmem:[#allocation3 + $0x60] sm:$0xf] }
 0x13e   :  { %676 = vmatprep.subr.mxu0 %v380_v53  ;;  %592 = vmatpush1.msra.mxu1 %v6121_v52  ;;  %1529 = vst [vmem:[#allocation3 + $0x48] sm:$0xf0] %v1524_v6  ;;  %v1574_v23 = vsel %vm248_vm9, %v1565_v12, 0  ;;  %v6444_v6 = vand.u32 4294901760, %v1568_v25 }
 0x13f   :  { %680 = vmatpush1.msra.mxu0 %v386_v54  ;;  %594 = vmatprep.subr.mxu1 %v6151_v8  ;;  %v6270_v9 = vpop.permute.xlu1 %1420  ;;  %v6295_v54 = vsub.f32 %v256_v34, %v6272_v7  ;;  %v6438_v50 = vand.u32 4294901760, %v1574_v23 }
 0x140   :  { %684 = vmatprep.subr.mxu0 %v392_v17  ;;  %596 = vmatpush1.msra.mxu1 %v6153_v13  ;;  %v1484_v11 = vpop.permute.xlu0 %1483  ;;  %v6311_v17 = vand.u32 4294901760, %v6213_v46 }
 0x141   :  { %688 = vmatpush1.msra.mxu0 %v398_v18  ;;  %598 = vmatprep.subr.mxu1 %v6165_v20  ;;  %v1486_v44 = vsel %vm158_vm10, %v6226_v62, %v1484_v11  ;;  %1492 = vst.msk [vmem:[#allocation3 + $0x40] sm:$0xf0] %vm83_vm7, %v1484_v11  ;;  %v6315_v18 = vsub.f32 %v6147_v4, %v6287_v45  ;;  %v932_v19 = vand.u32 4294901760, %v6295_v54  ;;  %v6327_v4 = vand.u32 4294901760, %v6155_v15 }
 0x142   :  { %692 = vmatprep.subr.mxu0 %v404_v30  ;;  %600 = vmatpush1.msra.mxu1 %v6188_v29  ;;  %1491 = vst [vmem:[#allocation3 + $0x38] sm:$0xf0] %v1486_v44 }
 0x143   :  { %633 = vmatprep.mubr.f32.mxu1 %v5878_v3  ;;  %696 = vmatpush1.msra.mxu0 %v410_v31  ;;  %v6292_v53 = vpop.permute.xlu1 %1403  ;;  %v939_v22 = vand.u32 4294901760, %v6315_v18 }
 0x144   :  { %637 = vmatmul.mubr.f32.vlgmr.msra.gmra.mxu1 %v6115_v49  ;;  %700 = vmatprep.subr.mxu0 %v416_v42  ;;  %v1480_v59 = vpop.permute.xlu0 %1479 }
 0x145   :  { %768 = vmatprep.subr.mxu1 %v6056_v1  ;;  %704 = vmatpush1.msra.mxu0 %v422_v61  ;;  %v1485_v60 = vsel %vm158_vm10, %v1480_v59, %v6226_v62 }
 0x146   :  { %737 = vmatprep.mubr.f32.mxu0 %v5878_v3  ;;  %770 = vmatpush1.msra.mxu1 %v6058_v2  ;;  %1490 = vst [vmem:[#allocation3 + $0x30] sm:$0xf0] %v1485_v60  ;;  %v6462_v60 = vsub.f32 %v1574_v23, %v6438_v50 }
 0x147   :  { %739 = vmatmul.mubr.f32.vlgmr.msra.gmra.mxu0 %v6090_v28  ;;  %772 = vmatprep.subr.mxu1 %v6099_v40  ;;  %v1501_v1 = vpop.permute.xlu1 %1500  ;;  %v6331_v40 = vsub.f32 %v6184_v37, %v6301_v55  ;;  %v6343_v37 = vsub.f32 %v6213_v46, %v6311_v17 }
 0x148   :  { %5525 = vmatprep.subr.mxu0 %v5878_v3  ;;  %774 = vmatpush1.msra.mxu1 %v6101_v41  ;;  %v1504_v2 = vsel %vm178_vm11, %v6198_v36, %v1501_v1  ;;  %v1505_v21 = vsel %vm178_vm11, %v1501_v1, %v6149_v5  ;;  %v1445_v41 = vpop.permute.xlu0 %1444 }
 0x149   :  { %5526 = vmatpush3.msra.mxu0 %v6272_v7  ;;  %776 = vmatprep.subr.mxu1 %v6119_v51  ;;  %1509 = vst [vmem:[#allocation3 + $0x48] sm:$0xf] %v1504_v2  ;;  %1510 = vst [vmem:[#allocation3 + $0x50] sm:$0xf] %v1505_v21  ;;  %v1447_v5 = vsel %vm117_vm13, %v6252_v56, %v1445_v41  ;;  %v946_v33 = vand.u32 4294901760, %v6331_v40  ;;  %v6472_v2 = vsub.f32 %v1568_v25, %v6444_v6 }
 0x14a   :  { %5527 = vmatprep.subr.mxu0 %v5878_v3  ;;  %778 = vmatpush1.msra.mxu1 %v6121_v52  ;;  %1453 = vst.msk [vmem:[#allocation3 + $0x28] sm:$0xf0] %vm83_vm7, %v1445_v41  ;;  %1452 = vst [vmem:[#allocation3 + $0x20] sm:$0xf0] %v1447_v5  ;;  %v933_v52 = vsub.f32 %v6295_v54, %v932_v19 }
 0x14b   :  { %5528 = vmatpush3.msra.mxu0 %v6287_v45  ;;  %780 = vmatprep.subr.mxu1 %v6151_v8  ;;  %v1462_v51 = vpop.permute.xlu1 %1461  ;;  %v6359_v8 = vsub.f32 %v6155_v15, %v6327_v4  ;;  %v953_v15 = vand.u32 4294901760, %v6343_v37  ;;  %v947_v42 = vsub.f32 %v6331_v40, %v946_v33 }
 0x14c   :  { %5529 = vmatprep.subr.mxu0 %v5878_v3  ;;  %782 = vmatpush1.msra.mxu1 %v6153_v13  ;;  %v1465_v30 = vsel %vm137_vm14, %v6239_v24, %v1462_v51  ;;  %v1466_v31 = vsel %vm137_vm14, %v1462_v51, %v6186_v27  ;;  %v1441_v36 = vpop.permute.xlu0 %1440  ;;  %v940_v27 = vsub.f32 %v6315_v18, %v939_v22  ;;  %v1571_v24 = vsel %vm248_vm9, %v1564_v16, 0 }
 0x14d   :  { %5530 = vmatpush3.msra.mxu0 %v6301_v55  ;;  %784 = vmatprep.subr.mxu1 %v6165_v20  ;;  %1470 = vst [vmem:[#allocation3 + $0x30] sm:$0xf] %v1465_v30  ;;  %1471 = vst [vmem:[#allocation3 + $0x38] sm:$0xf] %v1466_v31  ;;  %v1446_v13 = vsel %vm117_vm13, %v1441_v36, %v6252_v56  ;;  %v934_v20 = vand.u32 4294901760, %v933_v52  ;;  %v960_v43 = vand.u32 4294901760, %v6359_v8 }
 0x14e   :  { %5531 = vmatprep.subr.mxu0 %v5878_v3  ;;  %786 = vmatpush1.msra.mxu1 %v6188_v29  ;;  %1451 = vst [vmem:[#allocation3 + $0x18] sm:$0xf0] %v1446_v13  ;;  %v941_v48 = vand.u32 4294901760, %v940_v27  ;;  %v954_v57 = vsub.f32 %v6343_v37, %v953_v15  ;;  %v948_v61 = vand.u32 4294901760, %v947_v42  ;;  %v6442_v34 = vand.u32 4294901760, %v1571_v24 }
 0x14f   :  { %819 = vmatprep.mubr.f32.mxu1 %v5878_v3  ;;  %5532 = vmatpush3.msra.mxu0 %v6311_v17  ;;  %v1423_v32 = vpop.permute.xlu1 %1422  ;;  %v961_v63 = vsub.f32 %v6359_v8, %v960_v43  ;;  %v6504_v30 = vand.u32 4294901760, %v6472_v2 }
 0x150   :  { %821 = vmatmul.mubr.f32.vlgmr.msra.gmra.mxu1 %v6090_v28  ;;  %5533 = vmatprep.subr.mxu0 %v5878_v3  ;;  %v1426_v29 = vsel %vm96_vm15, %v6270_v9, %v1423_v32  ;;  %v1427_v39 = vsel %vm96_vm15, %v1423_v32, %v6215_v47  ;;  %v1406_v46 = vpop.permute.xlu0 %1405  ;;  %v955_v0 = vand.u32 4294901760, %v954_v57  ;;  %v1561_v56 = vld [vmem:[#allocation3 + $0x48] sm:$0xff] }
 0x151   :  { %5538 = vmatprep.subr.mxu1 %v5878_v3  ;;  %5534 = vmatpush3.msra.mxu0 %v6327_v4  ;;  %1431 = vst [vmem:[#allocation3 + $0x18] sm:$0xf] %v1426_v29  ;;  %1432 = vst [vmem:[#allocation3 + $0x20] sm:$0xf] %v1427_v39  ;;  %v1408_v47 = vsel %vm75_vm0, %v6292_v53, %v1406_v46  ;;  %v6453_v44 = vand.u32 4294901760, %v1561_v56 }
 0x152   :  { %5539 = vmatpush3.msra.mxu1 %v934_v20  ;;  %5535 = vmatprep.mubr.msk.f32.mxu0 %vm5888_vm1, %v5878_v3  ;;  %1414 = vst.msk [vmem:[#allocation3 + $0x10] sm:$0xf0] %vm83_vm7, %v1406_v46  ;;  %1413 = vst [vmem:[#allocation3 + $0x8] sm:$0xf0] %v1408_v47  ;;  %v1657_v20 = vsub.f32 %v6472_v2, %v6504_v30 }
 0x153   :  { %5540 = vmatprep.subr.mxu1 %v5878_v3  ;;  %5551 = vmatprep.subr.mxu0 %v5878_v3  ;;  %v1402_v58 = vpop.permute.xlu1 %1401  ;;  %v6488_v5 = vsub.f32 %v1561_v56, %v6453_v44  ;;  %v1566_v56 = vld [vmem:[#allocation3 + $0x70] sm:$0xf] }
 0x154   :  { %5536 = vmatmul.mubr.f32.vlgmr.msra.gmra.mxu0 %v6181_v26  ;;  %5541 = vmatpush3.msra.mxu1 %v941_v48  ;;  %v1407_v62 = vsel %vm75_vm0, %v1402_v58, %v6292_v53  ;;  %v962_v26 = vand.u32 4294901760, %v961_v63  ;;  %v1559_v35 = vld [vmem:[#allocation3 + $0x38] sm:$0xff]  ;;  %v1558_v11 = vld [vmem:[#allocation3 + $0x30] sm:$0xff]  ;;  %v6562_v57 = vand.u32 4294901760, %v1657_v20 }
 0x155   :  { %5552 = vmatpush3.msra.mxu0 %v6295_v54  ;;  %5542 = vmatprep.subr.mxu1 %v5878_v3  ;;  %1412 = vst [vmem:[#allocation3] sm:$0xf0] %v1407_v62  ;;  %v6459_v54 = vand.u32 4294901760, %v1559_v35  ;;  %v6469_v1 = vand.u32 4294901760, %v1558_v11 }
 0x156   :  { %5553 = vmatprep.subr.mxu0 %v5878_v3  ;;  %5543 = vmatpush3.msra.mxu1 %v948_v61 }
 0x157   :  { %5554 = vmatpush3.msra.mxu0 %v6315_v18  ;;  %5544 = vmatprep.subr.mxu1 %v5878_v3  ;;  %v6467_v18 = vsub.f32 %v1571_v24, %v6442_v34  ;;  %v6496_v51 = vsub.f32 %v1559_v35, %v6459_v54  ;;  %v6507_v31 = vsub.f32 %v1558_v11, %v6469_v1  ;;  %v1577_v35 = vsel %vm248_vm9, %v1566_v56, 0  ;;  %v1563_v11 = vld [vmem:[#allocation3 + $0x58] sm:$0xff] }
 0x158   :  { %5555 = vmatprep.subr.mxu0 %v5878_v3  ;;  %5545 = vmatpush3.msra.mxu1 %v955_v0  ;;  %v1556_v53 = vld [vmem:[#allocation3 + $0x20] sm:$0xff]  ;;  %v1555_v59 = vld [vmem:[#allocation3 + $0x18] sm:$0xff] }
 0x159   :  { %5556 = vmatpush3.msra.mxu0 %v6331_v40  ;;  %5546 = vmatprep.subr.mxu1 %v5878_v3  ;;  %v6477_v21 = vand.u32 4294901760, %v1556_v53  ;;  %v6485_v41 = vand.u32 4294901760, %v1555_v59  ;;  %v1695_v52 = vand.u32 4294901760, %v6467_v18  ;;  %v1713_v27 = vand.u32 4294901760, %v6496_v51 }
 0x15a   :  { %5557 = vmatprep.subr.mxu0 %v5878_v3  ;;  %5547 = vmatpush3.msra.mxu1 %v962_v26  ;;  %v1719_v32 = vand.u32 4294901760, %v6507_v31 }
 0x15b   :  { %5548 = vmatprep.mubr.msk.f32.mxu1 %vm5888_vm1, %v5878_v3  ;;  %5558 = vmatpush3.msra.mxu0 %v6343_v37  ;;  %v1689_v37 = vand.u32 4294901760, %v6462_v60  ;;  %v6519_v36 = vsub.f32 %v1555_v59, %v6485_v41  ;;  %v1714_v48 = vsub.f32 %v6496_v51, %v1713_v27  ;;  %v1560_v59 = vld [vmem:[#allocation3 + $0x40] sm:$0xff] }
 0x15c   :  { %5549 = vmatmul.mubr.f32.vlgmr.msra.gmra.mxu1 %v6090_v28  ;;  %5559 = vmatprep.subr.mxu0 %v5878_v3  ;;  %v1552_v40 = vld [vmem:[#allocation3] sm:$0xff]  ;;  %v1720_v58 = vsub.f32 %v6507_v31, %v1719_v32 }
 0x15d   :  { %5564 = vmatprep.subr.mxu1 %v5878_v3  ;;  %5560 = vmatpush3.msra.mxu0 %v6359_v8  ;;  %v6513_v8 = vsub.f32 %v1556_v53, %v6477_v21  ;;  %v1690_v13 = vsub.f32 %v6462_v60, %v1689_v37  ;;  %v1715_v26 = vand.u32 4294901760, %v1714_v48  ;;  %v6616_v53 = vand.u32 4294901760, %v1577_v35 }
 0x15e   :  { %5561 = vmatprep.mubr.msk.f32.mxu0 %vm5888_vm1, %v5878_v3  ;;  %5565 = vmatpush3.msra.mxu1 %v6272_v7  ;;  %v1721_v14 = vand.u32 4294901760, %v1720_v58 }
 0x15f   :  { %5562 = vmatmul.mubr.f32.vlgmr.msra.gmra.mxu0 %v6097_v38  ;;  %5566 = vmatprep.subr.mxu1 %v5878_v3  ;;  %v1562_v38 = vld [vmem:[#allocation3 + $0x50] sm:$0xff]  ;;  %v1725_v39 = vand.u32 4294901760, %v6513_v8  ;;  %v1691_v46 = vand.u32 4294901760, %v1690_v13 }
 0x160   :  { %5577 = vmatprep.subr.mxu0 %v5878_v3  ;;  %5567 = vmatpush3.msra.mxu1 %v6287_v45  ;;  %v6449_v9 = vand.u32 4294901760, %v1562_v38 }
 0x161   :  { %5578 = vmatpush3.msra.mxu0 %v932_v19  ;;  %5568 = vmatprep.subr.mxu1 %v5878_v3  ;;  %v1553_v19 = vld [vmem:[#allocation3 + $0x8] sm:$0xff]  ;;  %v1726_v63 = vsub.f32 %v6513_v8, %v1725_v39 }
 0x162   :  { %5579 = vmatprep.subr.mxu0 %v5878_v3  ;;  %5569 = vmatpush3.msra.mxu1 %v6301_v55 }
 0x163   :  { %5580 = vmatpush3.msra.mxu0 %v939_v22  ;;  %5570 = vmatprep.subr.mxu1 %v5878_v3  ;;  %v6492_v22 = vand.u32 4294901760, %v1553_v19  ;;  %v1727_v23 = vand.u32 4294901760, %v1726_v63 }
 0x164   :  { %5581 = vmatprep.subr.mxu0 %v5878_v3  ;;  %5571 = vmatpush3.msra.mxu1 %v6311_v17 }
 0x165   :  { %5582 = vmatpush3.msra.mxu0 %v946_v33  ;;  %5572 = vmatprep.subr.mxu1 %v5878_v3 }
 0x166   :  { %5583 = vmatprep.subr.mxu0 %v5878_v3  ;;  %5573 = vmatpush3.msra.mxu1 %v6327_v4 }
 0x167   :  { %5574 = vmatprep.mubr.msk.f32.mxu1 %vm5888_vm1, %v5878_v3  ;;  %5584 = vmatpush3.msra.mxu0 %v953_v15  ;;  %v6528_v15 = vsub.f32 %v1553_v19, %v6492_v22  ;;  %v6633_v19 = vsub.f32 %v1577_v35, %v6616_v53 }
 0x168   :  { %5575 = vmatmul.mubr.f32.vlgmr.msra.gmra.mxu1 %v6115_v49  ;;  %5585 = vmatprep.subr.mxu0 %v5878_v3  ;;  %v6480_v49 = vsub.f32 %v1562_v38, %v6449_v9 }
 0x169   :  { %5590 = vmatprep.subr.mxu1 %v5878_v3  ;;  %5586 = vmatpush3.msra.mxu0 %v960_v43  ;;  %v1731_v43 = vand.u32 4294901760, %v6519_v36  ;;  %v1737_v47 = vand.u32 4294901760, %v6528_v15 }
 0x16a   :  { %5587 = vmatprep.mubr.msk.f32.mxu0 %vm5888_vm1, %v5878_v3  ;;  %5591 = vmatpush3.msra.mxu1 %v6272_v7  ;;  %v6500_v7 = vand.u32 4294901760, %v1552_v40  ;;  %v1701_v33 = vand.u32 4294901760, %v6480_v49 }
 0x16b   :  { %5588 = vmatmul.mubr.f32.vlgmr.msra.gmra.mxu0 %v6090_v28  ;;  %5592 = vmatprep.subr.mxu1 %v5878_v3  ;;  %v1732_v0 = vsub.f32 %v6519_v36, %v1731_v43  ;;  %v1738_v12 = vsub.f32 %v6528_v15, %v1737_v47 }
 0x16c   :  { %1602 = vmatprep.subr.mxu0 %v6438_v50  ;;  %5593 = vmatpush3.msra.mxu1 %v6287_v45  ;;  %v1707_v45 = vand.u32 4294901760, %v6488_v5  ;;  %v6539_v29 = vsub.f32 %v1552_v40, %v6500_v7  ;;  %v6635_v40 = vand.u32 4294901760, %v1560_v59 }
 0x16d   :  { %1604 = vmatpush1.msra.mxu0 %v6442_v34  ;;  %5594 = vmatprep.subr.mxu1 %v5878_v3  ;;  %v1733_v24 = vand.u32 4294901760, %v1732_v0  ;;  %v1739_v25 = vand.u32 4294901760, %v1738_v12 }
 0x16e   :  { %1606 = vmatprep.subr.mxu0 %v6449_v9  ;;  %5595 = vmatpush3.msra.mxu1 %v6301_v55  ;;  %v1696_v55 = vsub.f32 %v6467_v18, %v1695_v52  ;;  %v1708_v42 = vsub.f32 %v6488_v5, %v1707_v45  ;;  %v1743_v61 = vand.u32 4294901760, %v6539_v29 }
 0x16f   :  { %1608 = vmatpush1.msra.mxu0 %v6453_v44  ;;  %5596 = vmatprep.subr.mxu1 %v5878_v3 }
 0x170   :  { %1610 = vmatprep.subr.mxu0 %v6459_v54  ;;  %5597 = vmatpush3.msra.mxu1 %v6311_v17  ;;  %v1702_v17 = vsub.f32 %v6480_v49, %v1701_v33  ;;  %v1744_v16 = vsub.f32 %v6539_v29, %v1743_v61 }
 0x171   :  { %1612 = vmatpush1.msra.mxu0 %v6469_v1  ;;  %5598 = vmatprep.subr.mxu1 %v5878_v3 }
 0x172   :  { %1614 = vmatprep.subr.mxu0 %v6477_v21  ;;  %5599 = vmatpush3.msra.mxu1 %v6327_v4  ;;  %v1697_v4 = vand.u32 4294901760, %v1696_v55  ;;  %v1703_v62 = vand.u32 4294901760, %v1702_v17  ;;  %v1745_v38 = vand.u32 4294901760, %v1744_v16 }
 0x173   :  { %5600 = vmatprep.mubr.msk.f32.mxu1 %vm5888_vm1, %v5878_v3  ;;  %1616 = vmatpush1.msra.mxu0 %v6485_v41 }
 0x174   :  { %5601 = vmatmul.mubr.f32.vlgmr.msra.gmra.mxu1 %v6090_v28  ;;  %1618 = vmatprep.subr.mxu0 %v6492_v22  ;;  %v1709_v28 = vand.u32 4294901760, %v1708_v42 }
 0x175   :  { %1692 = vmatprep.subr.mxu1 %v1691_v46  ;;  %1620 = vmatpush1.msra.mxu0 %v6500_v7 }
 0x176   :  { %1698 = vmatpush1.msra.mxu1 %v1697_v4  ;;  %1653 = vmatprep.mubr.f32.mxu0 %v5878_v3 }
 0x177   :  { %1704 = vmatprep.subr.mxu1 %v1703_v62  ;;  %1811 = vmatprep.subr.mxu0 %v6462_v60  ;;  %v6624_v60 = vand.u32 4294901760, %v1563_v11 }
 0x178   :  { %1659 = vmatmul.mubr.f32.vlgmr.msra.gmra.mxu0 %v6562_v57  ;;  %1710 = vmatpush1.msra.mxu1 %v1709_v28 }
 0x179   :  { %1814 = vmatpush1.msra.mxu0 %v6467_v18  ;;  %1716 = vmatprep.subr.mxu1 %v1715_v26  ;;  %v1557_v18 = vld [vmem:[#allocation3 + $0x28] sm:$0xff] }
 0x17a   :  { %1817 = vmatprep.subr.mxu0 %v6480_v49  ;;  %1722 = vmatpush1.msra.mxu1 %v1721_v14  ;;  %v1554_v49 = vld [vmem:[#allocation3 + $0x10] sm:$0xff] }
 0x17b   :  { %1820 = vmatpush1.msra.mxu0 %v6488_v5  ;;  %1728 = vmatprep.subr.mxu1 %v1727_v23  ;;  %v6642_v5 = vand.u32 4294901760, %v1557_v18 }
 0x17c   :  { %1823 = vmatprep.subr.mxu0 %v6496_v51  ;;  %1734 = vmatpush1.msra.mxu1 %v1733_v24  ;;  %v2253_v51 = vand.u32 4294901760, %v6633_v19 }
 0x17d   :  { %1826 = vmatpush1.msra.mxu0 %v6507_v31  ;;  %1740 = vmatprep.subr.mxu1 %v1739_v25  ;;  %v1332_v25 = vlaneseq }
 0x17e   :  { %1829 = vmatprep.subr.mxu0 %v6513_v8  ;;  %1746 = vmatpush1.msra.mxu1 %v1745_v38 }
 0x17f   :  { %1779 = vmatprep.mubr.f32.mxu1 %v5878_v3  ;;  %1832 = vmatpush1.msra.mxu0 %v6519_v36  ;;  %v6763_v38 = vshrl.u32 %v1332_v25, 7 }
 0x180   :  { %1781 = vmatmul.mubr.f32.vlgmr.msra.gmra.mxu1 %v6444_v6  ;;  %1835 = vmatprep.subr.mxu0 %v6528_v15 }
 0x181   :  { %1903 = vmatprep.subr.mxu1 %v6438_v50  ;;  %1838 = vmatpush1.msra.mxu0 %v6539_v29  ;;  %v1338_v35 = vsub.s32 1, %v6763_v38 }
 0x182   :  { %1871 = vmatprep.mubr.f32.mxu0 %v5878_v3  ;;  %1905 = vmatpush1.msra.mxu1 %v6442_v34 }
 0x183   :  { %1874 = vmatmul.mubr.f32.vlgmr.msra.gmra.mxu0 %v6472_v2  ;;  %1907 = vmatprep.subr.mxu1 %v6449_v9 }
 0x184   :  { %1989 = vmatprep.subr.mxu0 %v1689_v37  ;;  %1909 = vmatpush1.msra.mxu1 %v6453_v44  ;;  %v6645_v37 = vsub.f32 %v1563_v11, %v6624_v60 }
 0x185   :  { %1993 = vmatpush1.msra.mxu0 %v1695_v52  ;;  %1911 = vmatprep.subr.mxu1 %v6459_v54  ;;  %v6655_v52 = vsub.f32 %v1560_v59, %v6635_v40  ;;  %v1334_v59 = vsub.s32 0, %v6763_v38 }
 0x186   :  { %1997 = vmatprep.subr.mxu0 %v1701_v33  ;;  %1913 = vmatpush1.msra.mxu1 %v6469_v1 }
 0x187   :  { %2001 = vmatpush1.msra.mxu0 %v1707_v45  ;;  %1915 = vmatprep.subr.mxu1 %v6477_v21 }
 0x188   :  { %2005 = vmatprep.subr.mxu0 %v1713_v27  ;;  %1917 = vmatpush1.msra.mxu1 %v6485_v41 }
 0x189   :  { %2009 = vmatpush1.msra.mxu0 %v1719_v32  ;;  %1919 = vmatprep.subr.mxu1 %v6492_v22 }
 0x18a   :  { %2013 = vmatprep.subr.mxu0 %v1725_v39  ;;  %1921 = vmatpush1.msra.mxu1 %v6500_v7 }
 0x18b   :  { %1954 = vmatprep.mubr.f32.mxu1 %v5878_v3  ;;  %2017 = vmatpush1.msra.mxu0 %v1731_v43 }
 0x18c   :  { %1958 = vmatmul.mubr.f32.vlgmr.msra.gmra.mxu1 %v6504_v30  ;;  %2021 = vmatprep.subr.mxu0 %v1737_v47 }
 0x18d   :  { %2089 = vmatprep.subr.mxu1 %v6438_v50  ;;  %2025 = vmatpush1.msra.mxu0 %v1743_v61  ;;  %v6651_v50 = vand.u32 4294901760, %v1554_v49 }
 0x18e   :  { %2058 = vmatprep.mubr.f32.mxu0 %v5878_v3  ;;  %2091 = vmatpush1.msra.mxu1 %v6442_v34  ;;  %v2260_v34 = vand.u32 4294901760, %v6645_v37 }
 0x18f   :  { %2060 = vmatmul.mubr.f32.vlgmr.msra.gmra.mxu0 %v6444_v6  ;;  %2093 = vmatprep.subr.mxu1 %v6449_v9  ;;  %v6663_v9 = vsub.f32 %v1557_v18, %v6642_v5  ;;  %v29_v18 = vld [vmem:[%s7653_s3] sm:$0x7] }
 0x190   :  { %5603 = vmatprep.subr.mxu0 %v5878_v3  ;;  %2095 = vmatpush1.msra.mxu1 %v6453_v44  ;;  %v2254_v44 = vsub.f32 %v6633_v19, %v2253_v51 }
 0x191   :  { %5604 = vmatpush3.msra.mxu0 %v6616_v53  ;;  %2097 = vmatprep.subr.mxu1 %v6459_v54  ;;  %v2267_v54 = vand.u32 4294901760, %v6655_v52 }
 0x192   :  { %5605 = vmatprep.subr.mxu0 %v5878_v3  ;;  %2099 = vmatpush1.msra.mxu1 %v6469_v1  ;;  %v6674_v1 = vsub.f32 %v1554_v49, %v6651_v50  ;;  %v2255_v31 = vand.u32 4294901760, %v2254_v44 }
 0x193   :  { %5606 = vmatpush3.msra.mxu0 %v6624_v60  ;;  %2101 = vmatprep.subr.mxu1 %v6477_v21  ;;  %v2261_v21 = vsub.f32 %v6645_v37, %v2260_v34 }
 0x194   :  { %5607 = vmatprep.subr.mxu0 %v5878_v3  ;;  %2103 = vmatpush1.msra.mxu1 %v6485_v41  ;;  %v2274_v41 = vand.u32 4294901760, %v6663_v9  ;;  %v2281_v33 = vand.u32 4294901760, %v6674_v1 }
 0x195   :  { %5608 = vmatpush3.msra.mxu0 %v6635_v40  ;;  %2105 = vmatprep.subr.mxu1 %v6492_v22  ;;  %v2268_v22 = vsub.f32 %v6655_v52, %v2267_v54 }
 0x196   :  { %5609 = vmatprep.subr.mxu0 %v5878_v3  ;;  %2107 = vmatpush1.msra.mxu1 %v6500_v7  ;;  %v2262_v7 = vand.u32 4294901760, %v2261_v21  ;;  %v2275_v8 = vsub.f32 %v6663_v9, %v2274_v41  ;;  %v2282_v36 = vsub.f32 %v6674_v1, %v2281_v33 }
 0x197   :  { %2140 = vmatprep.mubr.f32.mxu1 %v5878_v3  ;;  %5610 = vmatpush3.msra.mxu0 %v6642_v5  ;;  %v2269_v45 = vand.u32 4294901760, %v2268_v22 }
 0x198   :  { %2142 = vmatmul.mubr.f32.vlgmr.msra.gmra.mxu1 %v6444_v6  ;;  %5611 = vmatprep.subr.mxu0 %v5878_v3  ;;  %v2276_v13 = vand.u32 4294901760, %v2275_v8  ;;  %v2283_v27 = vand.u32 4294901760, %v2282_v36 }
 0x199   :  { %5616 = vmatprep.subr.mxu1 %v5878_v3  ;;  %5612 = vmatpush3.msra.mxu0 %v6651_v50 }
 0x19a   :  { %5617 = vmatpush3.msra.mxu1 %v2255_v31  ;;  %5613 = vmatprep.mubr.msk.f32.mxu0 %vm5888_vm1, %v5878_v3 }
 0x19b   :  { %5618 = vmatprep.subr.mxu1 %v5878_v3  ;;  %5629 = vmatprep.subr.mxu0 %v5878_v3 }
 0x19c   :  { %5614 = vmatmul.mubr.f32.vlgmr.msra.gmra.mxu0 %v6562_v57  ;;  %5619 = vmatpush3.msra.mxu1 %v2262_v7 }
 0x19d   :  { %5630 = vmatpush3.msra.mxu0 %v6633_v19  ;;  %5620 = vmatprep.subr.mxu1 %v5878_v3  ;;  %v6770_v19 = vrot.slane %v29_v18, %v1338_v35 }
 0x19e   :  { %5631 = vmatprep.subr.mxu0 %v5878_v3  ;;  %5621 = vmatpush3.msra.mxu1 %v2269_v45 }
 0x19f   :  { %5632 = vmatpush3.msra.mxu0 %v6645_v37  ;;  %5622 = vmatprep.subr.mxu1 %v5878_v3  ;;  %v1342_v37 = vsub.s32 2, %v6763_v38 }
 0x1a0   :  { %5633 = vmatprep.subr.mxu0 %v5878_v3  ;;  %5623 = vmatpush3.msra.mxu1 %v2276_v13 }
 0x1a1   :  { %5634 = vmatpush3.msra.mxu0 %v6655_v52  ;;  %5624 = vmatprep.subr.mxu1 %v5878_v3  ;;  %v6777_v52 = vrot.slane %v29_v18, %v1342_v37 }
 0x1a2   :  { %5635 = vmatprep.subr.mxu0 %v5878_v3  ;;  %5625 = vmatpush3.msra.mxu1 %v2283_v27 }
 0x1a3   :  { %5626 = vmatprep.mubr.msk.f32.mxu1 %vm5888_vm1, %v5878_v3  ;;  %5636 = vmatpush3.msra.mxu0 %v6663_v9 }
 0x1a4   :  { %5627 = vmatmul.mubr.f32.vlgmr.msra.gmra.mxu1 %v6444_v6  ;;  %5637 = vmatprep.subr.mxu0 %v5878_v3 }
 0x1a5   :  { %5642 = vmatprep.subr.mxu1 %v5878_v3  ;;  %5638 = vmatpush3.msra.mxu0 %v6674_v1 }
 0x1a6   :  { %5639 = vmatprep.mubr.msk.f32.mxu0 %vm5888_vm1, %v5878_v3  ;;  %5643 = vmatpush3.msra.mxu1 %v6616_v53 }
 0x1a7   :  { %5640 = vmatmul.mubr.f32.vlgmr.msra.gmra.mxu0 %v6472_v2  ;;  %5644 = vmatprep.subr.mxu1 %v5878_v3 }
 0x1a8   :  { %5655 = vmatprep.subr.mxu0 %v5878_v3  ;;  %5645 = vmatpush3.msra.mxu1 %v6624_v60 }
 0x1a9   :  { %5656 = vmatpush3.msra.mxu0 %v2253_v51  ;;  %5646 = vmatprep.subr.mxu1 %v5878_v3 }
 0x1aa   :  { %5657 = vmatprep.subr.mxu0 %v5878_v3  ;;  %5647 = vmatpush3.msra.mxu1 %v6635_v40 }
 0x1ab   :  { %5658 = vmatpush3.msra.mxu0 %v2260_v34  ;;  %5648 = vmatprep.subr.mxu1 %v5878_v3 }
 0x1ac   :  { %5659 = vmatprep.subr.mxu0 %v5878_v3  ;;  %5649 = vmatpush3.msra.mxu1 %v6642_v5 }
 0x1ad   :  { %5660 = vmatpush3.msra.mxu0 %v2267_v54  ;;  %5650 = vmatprep.subr.mxu1 %v5878_v3 }
 0x1ae   :  { %5661 = vmatprep.subr.mxu0 %v5878_v3  ;;  %5651 = vmatpush3.msra.mxu1 %v6651_v50 }
 0x1af   :  { %5652 = vmatprep.mubr.msk.f32.mxu1 %vm5888_vm1, %v5878_v3  ;;  %5662 = vmatpush3.msra.mxu0 %v2274_v41 }
 0x1b0   :  { %5653 = vmatmul.mubr.f32.vlgmr.msra.gmra.mxu1 %v6504_v30  ;;  %5663 = vmatprep.subr.mxu0 %v5878_v3 }
 0x1b1   :  { %5668 = vmatprep.subr.mxu1 %v5878_v3  ;;  %5664 = vmatpush3.msra.mxu0 %v2281_v33 }
 0x1b2   :  { %5665 = vmatprep.mubr.msk.f32.mxu0 %vm5888_vm1, %v5878_v3  ;;  %5669 = vmatpush3.msra.mxu1 %v6616_v53 }
 0x1b3   :  { %5666 = vmatmul.mubr.f32.vlgmr.msra.gmra.mxu0 %v6444_v6  ;;  %5670 = vmatprep.subr.mxu1 %v5878_v3 }
 0x1b4   :  { %5671 = vmatpush3.msra.mxu1 %v6624_v60  ;;  %5678 = vmatprep.mubr.msk.f32.mxu1 %vm5888_vm1, %v5878_v3 }
 0x1b5   :  { %5672 = vmatprep.subr.mxu1 %v5878_v3  ;;  %3002 = vmatprep.mubr.f32.mxu0 %v5878_v3 }
 0x1b6   :  { %5673 = vmatpush3.msra.mxu1 %v6635_v40 }
 0x1b7   :  { %5674 = vmatprep.subr.mxu1 %v5878_v3 }
 0x1b8   :  { %5675 = vmatpush3.msra.mxu1 %v6642_v5  ;;  %v6772_v5 = vrot.slane %v29_v18, %v1334_v59 }
 0x1b9   :  { %5676 = vmatprep.subr.mxu1 %v5878_v3 }
 0x1ba   :  { %5677 = vmatpush3.msra.mxu1 %v6651_v50 }
 0x1bb   :  { %5679 = vmatmul.mubr.f32.vlgmr.msra.gmra.mxu1 %v6444_v6 }
 0x1bc   :  { %3128 = vmatprep.mubr.f32.mxu1 %v5878_v3 }
 0x1f1   :  { %v339_v2 = vpop.f32.mrf.mxu0 }
 0x1f3   :  { %v341_v30 = vpop.f32.mrf.mxu0 }
 0x1f8   :  { %v461_v15 = vpop.f32.mrf.mxu1 }
 0x1f9   :  { %v462_v29 = vadd.f32 %v461_v15, %v339_v2 }
 0x1fa   :  { %v463_v55 = vpop.f32.mrf.mxu1 }
 0x1fb   :  { %v554_v20 = vpop.f32.mrf.mxu0  ;;  %v464_v17 = vadd.f32 %v463_v55, %v341_v30 }
 0x1fc   :  { %v555_v46 = vadd.f32 %v554_v20, %v462_v29 }
 0x1fd   :  { %v556_v39 = vpop.f32.mrf.mxu0 }
 0x1fe   :  { %v557_v48 = vadd.f32 %v556_v39, %v464_v17 }
 0x204   :  { %v638_v32 = vpop.f32.mrf.mxu1 }
 0x205   :  { %v639_v47 = vadd.f32 %v638_v32, %v555_v46 }
 0x206   :  { %v640_v42 = vpop.f32.mrf.mxu1 }
 0x207   :  { %v740_v43 = vpop.f32.mrf.mxu0  ;;  %v641_v4 = vadd.f32 %v640_v42, %v557_v48 }
 0x208   :  { %v741_v6 = vadd.f32 %v740_v43, %v639_v47 }
 0x209   :  { %v742_v57 = vpop.f32.mrf.mxu0 }
 0x20a   :  { %v743_v61 = vadd.f32 %v742_v57, %v641_v4 }
 0x210   :  { %v822_v58 = vpop.f32.mrf.mxu1 }
 0x211   :  { %v6757_v63 = vadd.f32 %v822_v58, %v741_v6 }
 0x212   :  { %v824_v62 = vpop.f32.mrf.mxu1 }
 0x213   :  { %v6759_v28 = vadd.f32 %v824_v62, %v743_v61  ;;  %v1347_v34 = vmul.f32 %v6772_v5, %v6757_v63 }
 0x214   :  { %v903_v0 = vpop.f32.mrf.mxu0 }
 0x215   :  { %v1327_v26 = vcombine.low %v6757_v63, %v6759_v28  ;;  %v1348_v51 = vmul.f32 %v6770_v19, %v6759_v28  ;;  %v1358_v31 = vmul.f32 %v1347_v34, %v6757_v63  ;;  %v1350_v33 = vsel %vm248_vm9, %v1347_v34, 0.0 }
 0x216   :  { %v5537_v12 = vpop.f32.mrf.mxu0 }
 0x217   :  { %v1359_v54 = vmul.f32 %v1348_v51, %v6759_v28  ;;  %v1351_v21 = vsel %vm248_vm9, %v1348_v51, 0.0  ;;  %v1361_v27 = vsel %vm248_vm9, %v1358_v31, 0.0 }
 0x218   :  { %v1352_v7 = vadd.f32 %v1351_v21, %v1350_v33 }
 0x219   :  { %v1362_v36 = vsel %vm248_vm9, %v1359_v54, 0.0 }
 0x21a   :  { %v1363_v30 = vadd.f32 %v1362_v36, %v1361_v27 }
 0x21c   :  { %v999_v14 = vpop.f32.mrf.mxu1 }
 0x21d   :  { %v1000_v11 = vadd.f32 %v999_v14, %v903_v0 }
 0x21e   :  { %v5550_v16 = vpop.f32.mrf.mxu1 }
 0x21f   :  { %v1081_v23 = vpop.f32.mrf.mxu0 }
 0x220   :  { %v1082_v40 = vadd.f32 %v1081_v23, %v1000_v11 }
 0x221   :  { %v5563_v24 = vpop.f32.mrf.mxu0 }
 0x228   :  { %v1159_v56 = vpop.f32.mrf.mxu1 }
 0x229   :  { %v1160_v50 = vadd.f32 %v1159_v56, %v1082_v40 }
 0x22a   :  { %v5576_v53 = vpop.f32.mrf.mxu1 }
 0x22b   :  { %v1245_v60 = vpop.f32.mrf.mxu0 }
 0x22c   :  { %v1246_v9 = vadd.f32 %v1245_v60, %v1160_v50 }
 0x22d   :  { %v5589_v49 = vpop.f32.mrf.mxu0 }
 0x234   :  { %v1321_v44 = vpop.f32.mrf.mxu1 }
 0x235   :  { %v1322_v1 = vadd.f32 %v1321_v44, %v1246_v9 }
 0x236   :  { %v5602_v41 = vpop.f32.mrf.mxu1 }
 0x237   :  { %1330 = vst.msk [vmem:[#allocation4 + $0x8] sm:$0xf] %vm61_vm5, %v1322_v1  ;;  %v1349_v22 = vmul.f32 %v6777_v52, %v1322_v1 }
 0x238   :  { %v1660_v55 = vpop.f32.mrf.mxu0 }
 0x239   :  { %v1353_v8 = vsel %vm61_vm5, %v1349_v22, 0.0  ;;  %v1360_v45 = vmul.f32 %v1349_v22, %v1322_v1 }
 0x23a   :  { %v1354_v13 = vadd.f32 %v1353_v8, %v1352_v7  ;;  %v1662_v20 = vpop.f32.mrf.mxu0 }
 0x23b   :  { %v1364_v2 = vsel %vm61_vm5, %v1360_v45, 0.0 }
 0x23c   :  { %1355 = vadd.xlane.f32.xlu0 %v1354_v13  ;;  %v1365_v15 = vadd.f32 %v1364_v2, %v1363_v30 }
 0x240   :  { %1366 = vadd.xlane.f32.xlu0 %v1365_v15  ;;  %v1782_v32 = vpop.f32.mrf.mxu1 }
 0x241   :  { %v1783_v42 = vadd.f32 %v1782_v32, %v1660_v55 }
 0x242   :  { %v1784_v29 = vpop.f32.mrf.mxu1 }
 0x243   :  { %v1875_v17 = vpop.f32.mrf.mxu0  ;;  %v1785_v43 = vadd.f32 %v1784_v29, %v1662_v20  ;;  %v5889_v20 = vmov 0  }
 0x244   :  { %v1876_v4 = vadd.f32 %v1875_v17, %v1783_v42  ;;  %5850 = vset.pattern.permute.xlu1 %v5889_v20  ;;  %5851 = vset.pattern.permute.xlu0 %v5889_v20 }
 0x245   :  { %v1877_v46 = vpop.f32.mrf.mxu0 }
 0x246   :  { %v1878_v57 = vadd.f32 %v1877_v46, %v1785_v43 }
 0x24c   :  { %v1959_v39 = vpop.f32.mrf.mxu1 }
 0x24d   :  { %v1960_v58 = vadd.f32 %v1959_v39, %v1876_v4 }
 0x24e   :  { %v1961_v48 = vpop.f32.mrf.mxu1 }
 0x24f   :  { %v2061_v47 = vpop.f32.mrf.mxu0  ;;  %v1962_v6 = vadd.f32 %v1961_v48, %v1878_v57 }
 0x250   :  { %v2062_v0 = vadd.f32 %v2061_v47, %v1960_v58  ;;  %v2680_v58 = vld [vmem:[%s7654_s4] sm:$0xf] }
 0x251   :  { %v2063_v61 = vpop.f32.mrf.mxu0 }
 0x252   :  { %v2064_v12 = vadd.f32 %v2063_v61, %v1962_v6 }
 0x258   :  { %v2143_v62 = vpop.f32.mrf.mxu1 }
 0x259   :  { %v6791_v16 = vadd.f32 %v2143_v62, %v2062_v0  ;;  %v2684_v62 = vld [vmem:[%s7655_s5] sm:$0xf] }
 0x25a   :  { %v2145_v14 = vpop.f32.mrf.mxu1 }
 0x25b   :  { %v6793_v23 = vadd.f32 %v2145_v14, %v2064_v12  ;;  %v2653_v9 = vmul.f32 %v6791_v16, %v6772_v5  ;;  %v5890_v14 = vmov 839922192  }
 0x25c   :  { %v2224_v24 = vpop.f32.mrf.mxu0 }
 0x25d   :  { %v2648_v25 = vcombine.low %v6791_v16, %v6793_v23  ;;  %v2654_v51 = vmul.f32 %v6793_v23, %v6770_v19  ;;  %v2664_v21 = vmul.f32 %v2653_v9, %v6791_v16  ;;  %v2656_v7 = vsel %vm248_vm9, %v2653_v9, 0.0 }
 0x25e   :  { %v5615_v56 = vpop.f32.mrf.mxu0 }
 0x25f   :  { %v2665_v44 = vmul.f32 %v2654_v51, %v6793_v23  ;;  %v2657_v31 = vsel %vm248_vm9, %v2654_v51, 0.0  ;;  %v2667_v27 = vsel %vm248_vm9, %v2664_v21, 0.0 }
 0x260   :  { %v2658_v45 = vadd.f32 %v2657_v31, %v2656_v7 }
 0x261   :  { %v2668_v8 = vsel %vm248_vm9, %v2665_v44, 0.0 }
 0x262   :  { %v2669_v30 = vadd.f32 %v2668_v8, %v2667_v27 }
 0x264   :  { %v2320_v35 = vpop.f32.mrf.mxu1 }
 0x265   :  { %v2321_v60 = vadd.f32 %v2320_v35, %v2224_v24  ;;  %v2694_v24 = vunpack.c.l.s4 %v5890_v14 }
 0x266   :  { %v5628_v11 = vpop.f32.mrf.mxu1 }
 0x267   :  { %v2402_v53 = vpop.f32.mrf.mxu0  ;;  %v2695_v56 = vunpack.c.0.s8 %v2694_v24 }
 0x268   :  { %v2403_v37 = vadd.f32 %v2402_v53, %v2321_v60  ;;  %v2688_v60 = vld [vmem:[#allocation4 + $0x8] sm:$0xf] }
 0x269   :  { %v5641_v59 = vpop.f32.mrf.mxu0  ;;  %v2698_v35 = vsub.s32 %v2695_v56, %v6763_v38 }
 0x270   :  { %v2480_v18 = vpop.f32.mrf.mxu1 }
 0x271   :  { %v2481_v34 = vadd.f32 %v2480_v18, %v2403_v37 }
 0x272   :  { %v5654_v40 = vpop.f32.mrf.mxu1 }
 0x273   :  { %v2566_v49 = vpop.f32.mrf.mxu0 }
 0x274   :  { %v2567_v54 = vadd.f32 %v2566_v49, %v2481_v34 }
 0x275   :  { %v5667_v50 = vpop.f32.mrf.mxu0 }
 0x276   :  { %v2719_v50 = vcombine.low %v6772_v5, %v6770_v19 }
 0x27b   :  { %v2642_v1 = vpop.f32.mrf.mxu1 }
 0x27c   :  { %v2643_v41 = vadd.f32 %v2642_v1, %v2567_v54 }
 0x27d   :  { %v5680_v22 = vpop.f32.mrf.mxu1 }
 0x27e   :  { %2652 = vst.msk [vmem:[#allocation4 + $0x14] sm:$0xf] %vm61_vm5, %v2643_v41  ;;  %v2655_v33 = vmul.f32 %v2643_v41, %v6777_v52 }
 0x280   :  { %v2659_v36 = vsel %vm61_vm5, %v2655_v33, 0.0  ;;  %v2666_v13 = vmul.f32 %v2655_v33, %v2643_v41 }
 0x281   :  { %v2660_v2 = vadd.f32 %v2659_v36, %v2658_v45 }
 0x282   :  { %v2670_v15 = vsel %vm61_vm5, %v2666_v13, 0.0 }
 0x283   :  { %2661 = vadd.xlane.f32.xlu1 %v2660_v2  ;;  %v2671_v55 = vadd.f32 %v2670_v15, %v2669_v30 }
 0x285   :  { %2672 = vadd.xlane.f32.xlu0 %v2671_v55  ;;  %v4018_v1 = vld [vmem:[#allocation4 + $0x14] sm:$0xf] }
 0x2c5   :  { %v1356_v32 = vpop.xlane.xlu0 %1355 }
 0x2c9   :  { %v1367_v29 = vpop.xlane.xlu0 %1366 }
 0x30c   :  { %v2662_v17 = vpop.xlane.xlu1 %2661 }
 0x30d   :  { %v2663_v39 = vadd.f32 %v2662_v17, %v1356_v32 }
 0x30e   :  { %v2673_v42 = vpop.xlane.xlu0 %2672 }
 0x30f   :  { %v2676_v43 = vmul.f32 0.001953125, %v2663_v39  ;;  %v2674_v46 = vadd.f32 %v2673_v42, %v1367_v29 }
 0x311   :  { %v2678_v48 = vmul.f32 %v2676_v43, %v2676_v43  ;;  %v2677_v47 = vmul.f32 0.001953125, %v2674_v46 }
 0x313   :  { %v2679_v4 = vsub.f32 %v2677_v47, %v2678_v48 }
 0x315   :  { %v2681_v57 = vadd.f32 1e-05, %v2679_v4 }
 0x317   :  { %5874 = vrsqrt.f32 %v2681_v57 }
 0x324   :  { %v5875_v6 = vpop.eup %5874 }
 0x325   :  { %v2683_v61 = vmul.f32 %v5875_v6, %v2680_v58 }
 0x327   :  { %2691 = vperm.xlu1 %5850, %v2683_v61   ;;  %v2685_v0 = vmul.f32 %v2683_v61, %v2676_v43 }
 0x329   :  { %v2686_v12 = vsub.f32 %v2684_v62, %v2685_v0 }
 0x32b   :  { %2705 = vperm.xlu0 %5851, %v2686_v12  }
 0x3a2   :  { %v2692_v11 = vpop.permute.xlu1 %2691 }
 0x3a3   :  { %v2699_v53 = vrot.slane %v2692_v11, %v2698_v35 }
 0x3a5   :  { %v2701_v40 = vmul.f32 %v2699_v53, %v1327_v26  ;;  %v2702_v49 = vmul.f32 %v2699_v53, %v2688_v60  ;;  %v4019_v38 = vmul.f32 %v2699_v53, %v2648_v25  ;;  %v4020_v21 = vmul.f32 %v4018_v1, %v2699_v53 }
 0x3a6   :  { %v2706_v59 = vpop.permute.xlu0 %2705 }
 0x3a7   :  { %v2713_v18 = vrot.slane %v2706_v59, %v2698_v35 }
 0x3a9   :  { %v2715_v37 = vadd.f32 %v2713_v18, %v2701_v40  ;;  %v2716_v51 = vadd.f32 %v2713_v18, %v2702_v49  ;;  %v4021_v54 = vadd.f32 %v4019_v38, %v2713_v18  ;;  %v4022_v26 = vadd.f32 %v4020_v21, %v2713_v18 }
 0x3ab   :  { %v2717_v34 = vmax.f32 %v2715_v37, 0.0  ;;  %v2718_v44 = vmax.f32 %v2716_v51, 0.0  ;;  %v4023_v28 = vmax.f32 %v4021_v54, 0.0  ;;  %v4024_v31 = vmax.f32 %v4022_v26, 0.0 }
 0x3ad   :  { %v2721_v9 = vmul.f32 %v2719_v50, %v2717_v34  ;;  %v2722_v63 = vmul.f32 %v2718_v44, %v6777_v52  ;;  %v4025_v41 = vmul.f32 %v4023_v28, %v2719_v50  ;;  %v4026_v16 = vmul.f32 %v4024_v31, %v6777_v52 }
 0x3af   :  { %2725 = vrot.lane.b32.xlu1 %v2721_v9, %s5879_s13 }
 0x3b3   :  { %2727 = vrot.lane.b32.xlu1 %v2722_v63, %s5879_s13 }
 0x3b7   :  { %4029 = vrot.lane.b32.xlu1 %v4025_v41, %s5879_s13 }
 0x3bb   :  { %4031 = vrot.lane.b32.xlu1 %v4026_v16, %s5879_s13 }
 0x421   :  { %v2726_v23 = vpop.permute.xlu1 %2725 }
 0x422   :  { %v2729_v25 = vrot.slane %v2726_v23, 4 }
 0x424   :  { %v2730_v22 = vsel %vm43_vm2, %v2729_v25, %v2726_v23 }
 0x425   :  { %2734 = vst.msk [vmem:[#allocation2] sm:$0xff] %vm5956_vm3, %v2730_v22  ;;  %v2728_v33 = vpop.permute.xlu1 %2727  ;;  %v2900_v22 = vld [vmem:[%s7656_s2] sm:$0xff] }
 0x426   :  { %v2731_v7 = vsel %vm43_vm2, %v2729_v25, %v2728_v33 }
 0x427   :  { %2735 = vst.msk [vmem:[#allocation2 + $0x8] sm:$0xf] %vm52_vm4, %v2731_v7 }
 0x429   :  { %v4030_v8 = vpop.permute.xlu1 %4029 }
 0x42a   :  { %v4033_v45 = vrot.slane %v4030_v8, 4 }
 0x42c   :  { %v4034_v36 = vsel %vm43_vm2, %v4033_v45, %v4030_v8  ;;  %v2736_v13 = vld [vmem:[#allocation2] sm:$0xff] }
 0x42d   :  { %v4032_v27 = vpop.permute.xlu1 %4031  ;;  %2741 = vst [vmem:[#allocation3] sm:$0xf] %v2736_v13  ;;  %4038 = vst.msk [vmem:[#allocation2] sm:$0xff] %vm5956_vm3, %v4034_v36  ;;  %v2885_v2 = vcombine.high %v2736_v13, %v2736_v13  ;;  %v2865_v43 = vcombine.low %v2736_v13, %v2736_v13  ;;  %v2917_v36 = vsel %vm244_vm12, %v2900_v22, 0 }
 0x42e   :  { %v2737_v30 = vld [vmem:[#allocation2 + $0x8] sm:$0xf]  ;;  %v4035_v29 = vsel %vm43_vm2, %v4033_v45, %v4032_v27  ;;  %vm3997_vm2 = vcmask 261120  }
 0x42f   :  { %v2882_v15 = vld [vmem:[#allocation2 + $0x8] sm:$0xf]  ;;  %2743 = vst.msk [vmem:[#allocation3 + $0x10] sm:$0xf] %vm61_vm5, %v2737_v30  ;;  %2742 = vst [vmem:[#allocation3 + $0x8] sm:$0xf] %v2885_v2 }
 0x430   :  { %v2843_v55 = vld [vmem:[#allocation2 + $0x8] sm:$0xf]  ;;  %2890 = vrot.lane.b32.xlu1 %v2882_v15, %s5880_s0  ;;  %v6946_v30 = vand.u32 4294901760, %v2917_v36 }
 0x431   :  { %2851 = vrot.lane.b32.xlu0 %v2843_v55, %s5881_s14  ;;  %v2804_v20 = vld [vmem:[#allocation2 + $0x8] sm:$0xf] }
 0x432   :  { %v2765_v32 = vld [vmem:[#allocation2 + $0x8] sm:$0xf] }
 0x433   :  { %v5863_v17 = vld [vmem:[#allocation2 + $0x8] ss:$0 sps:$4 sm:$0xff]  }
 0x434   :  { %v5865_v39 = vld [vmem:[#allocation2 + $0x8] ss:$0 sps:$4 sm:$0xff]   ;;  %2886 = vrot.lane.b32.xlu1 %v2736_v13, %s5880_s0  ;;  %v6863_v46 = vld [vmem:[#allocation2] sm:$0xff] }
 0x435   :  { %v5866_v42 = vld [vmem:[#allocation2 + $0x8] ss:$0 sps:$4 sm:$0xff]   ;;  %2812 = vrot.lane.b32.xlu0 %v2804_v20, %s5883_s16  ;;  %v6876_v57 = vcombine.high %v6863_v46, %v6863_v46  ;;  %v4169_v61 = vcombine.low %v6863_v46, %v6863_v46 }
 0x436   :  { %v5867_v10 = vld [vmem:[#allocation2 + $0x8] ss:$0 sps:$4 sm:$0xff]  }
 0x437   :  { %4039 = vst.msk [vmem:[#allocation2 + $0x8] sm:$0xf] %vm52_vm4, %v4035_v29 }
 0x438   :  { %2869 = vrot.lane.b32.xlu1 %v2736_v13, %s5882_s15 }
 0x439   :  { %2773 = vrot.lane.b32.xlu0 %v2765_v32, %s5884_s17 }
 0x43c   :  { %2847 = vrot.lane.b32.xlu1 %v2736_v13, %s5881_s14 }
 0x43d   :  { %2871 = vrot.lane.b32.xlu0 %v5863_v17, %s5882_s15 }
 0x43e   :  { %v4147_v48 = vld [vmem:[#allocation2 + $0x8] sm:$0xf] }
 0x43f   :  { %v4108_v47 = vld [vmem:[#allocation2 + $0x8] sm:$0xf] }
 0x440   :  { %2830 = vrot.lane.b32.xlu1 %v2736_v13, %s5885_s18  ;;  %v4069_v4 = vld [vmem:[#allocation2 + $0x8] sm:$0xf] }
 0x441   :  { %2867 = vrot.lane.b32.xlu0 %v2865_v43, %s5882_s15  ;;  %v4186_v58 = vld [vmem:[#allocation2 + $0x8] sm:$0xf] }
 0x442   :  { %v5870_v6 = vld [vmem:[#allocation2 + $0x8] ss:$0 sps:$4 sm:$0xff]  }
 0x443   :  { %v5871_v62 = vld [vmem:[#allocation2 + $0x8] ss:$0 sps:$4 sm:$0xff]  }
 0x444   :  { %2808 = vrot.lane.b32.xlu1 %v2736_v13, %s5883_s16  ;;  %v5872_v0 = vld [vmem:[#allocation2 + $0x8] ss:$0 sps:$4 sm:$0xff]  }
 0x445   :  { %2832 = vrot.lane.b32.xlu0 %v5865_v39, %s5885_s18  ;;  %v5873_v12 = vld [vmem:[#allocation2 + $0x8] ss:$0 sps:$4 sm:$0xff]  }
 0x446   :  { %v4041_v55 = vld [vmem:[#allocation2 + $0x8] sm:$0xf] }
 0x448   :  { %2791 = vrot.lane.b32.xlu1 %v2736_v13, %s5886_s19 }
 0x449   :  { %2828 = vrot.lane.b32.xlu0 %v2865_v43, %s5885_s18 }
 0x44c   :  { %2769 = vrot.lane.b32.xlu1 %v2736_v13, %s5884_s17 }
 0x44d   :  { %2793 = vrot.lane.b32.xlu0 %v5866_v42, %s5886_s19 }
 0x450   :  { %2752 = vrot.lane.b32.xlu1 %v2736_v13, %s5887_s20 }
 0x451   :  { %2789 = vrot.lane.b32.xlu0 %v2865_v43, %s5886_s19 }
 0x454   :  { %2888 = vrot.lane.b32.xlu1 %v2885_v2, %s5880_s0 }
 0x455   :  { %2754 = vrot.lane.b32.xlu0 %v5867_v10, %s5887_s20 }
 0x458   :  { %2849 = vrot.lane.b32.xlu1 %v2885_v2, %s5881_s14 }
 0x459   :  { %4190 = vrot.lane.b32.xlu0 %v6863_v46, %s5880_s0 }
 0x45c   :  { %2810 = vrot.lane.b32.xlu1 %v2885_v2, %s5883_s16 }
 0x45d   :  { %4155 = vrot.lane.b32.xlu0 %v4147_v48, %s5881_s14 }
 0x460   :  { %2771 = vrot.lane.b32.xlu1 %v2885_v2, %s5884_s17 }
 0x461   :  { %4116 = vrot.lane.b32.xlu0 %v4108_v47, %s5883_s16 }
 0x464   :  { %2750 = vrot.lane.b32.xlu1 %v2865_v43, %s5887_s20 }
 0x465   :  { %4077 = vrot.lane.b32.xlu0 %v4069_v4, %s5884_s17 }
 0x468   :  { %4194 = vrot.lane.b32.xlu1 %v4186_v58, %s5880_s0 }
 0x469   :  { %4192 = vrot.lane.b32.xlu0 %v6876_v57, %s5880_s0 }
 0x46c   :  { %4173 = vrot.lane.b32.xlu1 %v6863_v46, %s5882_s15 }
 0x46d   :  { %4175 = vrot.lane.b32.xlu0 %v5870_v6, %s5882_s15  ;;  %v6967_v6 = vsub.f32 %v2917_v36, %v6946_v30 }
 0x470   :  { %4151 = vrot.lane.b32.xlu1 %v6863_v46, %s5881_s14 }
 0x471   :  { %4171 = vrot.lane.b32.xlu0 %v4169_v61, %s5882_s15 }
 0x474   :  { %4134 = vrot.lane.b32.xlu1 %v6863_v46, %s5885_s18 }
 0x475   :  { %4136 = vrot.lane.b32.xlu0 %v5871_v62, %s5885_s18 }
 0x478   :  { %4112 = vrot.lane.b32.xlu1 %v6863_v46, %s5883_s16 }
 0x479   :  { %4132 = vrot.lane.b32.xlu0 %v4169_v61, %s5885_s18 }
 0x47c   :  { %4095 = vrot.lane.b32.xlu1 %v6863_v46, %s5886_s19 }
 0x47d   :  { %4097 = vrot.lane.b32.xlu0 %v5872_v0, %s5886_s19 }
 0x480   :  { %4073 = vrot.lane.b32.xlu1 %v6863_v46, %s5884_s17 }
 0x481   :  { %4093 = vrot.lane.b32.xlu0 %v4169_v61, %s5886_s19 }
 0x484   :  { %4056 = vrot.lane.b32.xlu1 %v6863_v46, %s5887_s20 }
 0x485   :  { %4058 = vrot.lane.b32.xlu0 %v5873_v12, %s5887_s20 }
 0x488   :  { %4153 = vrot.lane.b32.xlu1 %v6876_v57, %s5881_s14 }
 0x48c   :  { %4114 = vrot.lane.b32.xlu1 %v6876_v57, %s5883_s16 }
 0x490   :  { %4075 = vrot.lane.b32.xlu1 %v6876_v57, %s5884_s17 }
 0x494   :  { %4054 = vrot.lane.b32.xlu1 %v4169_v61, %s5887_s20 }
 0x4a2   :  { %v2891_v24 = vpop.permute.xlu1 %2890 }
 0x4a3   :  { %v2852_v14 = vpop.permute.xlu0 %2851  ;;  %2899 = vst.msk [vmem:[#allocation3 + $0x70] sm:$0xf] %vm61_vm5, %v2891_v24 }
 0x4a4   :  { %2860 = vst.msk [vmem:[#allocation3 + $0x58] sm:$0xf] %vm61_vm5, %v2852_v14 }
 0x4a6   :  { %v2887_v35 = vpop.permute.xlu1 %2886 }
 0x4a7   :  { %v2813_v56 = vpop.permute.xlu0 %2812 }
 0x4a8   :  { %2821 = vst.msk [vmem:[#allocation3 + $0x40] sm:$0xf] %vm61_vm5, %v2813_v56 }
 0x4aa   :  { %v2870_v53 = vpop.permute.xlu1 %2869 }
 0x4ab   :  { %v6914_v11 = vpop.permute.xlu0 %2773 }
 0x4ac   :  { %2782 = vst.msk [vmem:[#allocation3 + $0x28] sm:$0xf] %vm61_vm5, %v6914_v11 }
 0x4ae   :  { %v2848_v60 = vpop.permute.xlu1 %2847 }
 0x4af   :  { %v2872_v59 = vpop.permute.xlu0 %2871 }
 0x4b0   :  { %v2874_v18 = vsel %vm199_vm8, %v2870_v53, %v2872_v59  ;;  %2880 = vst.msk [vmem:[#allocation3 + $0x58] sm:$0xf0] %vm83_vm7, %v2872_v59 }
 0x4b1   :  { %2879 = vst [vmem:[#allocation3 + $0x50] sm:$0xf0] %v2874_v18 }
 0x4b2   :  { %v2831_v49 = vpop.permute.xlu1 %2830 }
 0x4b3   :  { %v2868_v40 = vpop.permute.xlu0 %2867 }
 0x4b4   :  { %v2873_v37 = vsel %vm199_vm8, %v2868_v40, %v2870_v53 }
 0x4b5   :  { %2878 = vst [vmem:[#allocation3 + $0x48] sm:$0xf0] %v2873_v37 }
 0x4b6   :  { %v2809_v51 = vpop.permute.xlu1 %2808 }
 0x4b7   :  { %v2833_v50 = vpop.permute.xlu0 %2832  ;;  %v6942_v13 = vld [vmem:[#allocation3 + $0x58] sm:$0xff] }
 0x4b8   :  { %v2835_v34 = vsel %vm158_vm10, %v2831_v49, %v2833_v50  ;;  %2841 = vst.msk [vmem:[#allocation3 + $0x40] sm:$0xf0] %vm83_vm7, %v2833_v50 }
 0x4b9   :  { %2840 = vst [vmem:[#allocation3 + $0x38] sm:$0xf0] %v2835_v34 }
 0x4ba   :  { %v2792_v9 = vpop.permute.xlu1 %2791 }
 0x4bb   :  { %v2829_v38 = vpop.permute.xlu0 %2828 }
 0x4bc   :  { %v2834_v44 = vsel %vm158_vm10, %v2829_v38, %v2831_v49 }
 0x4bd   :  { %2839 = vst [vmem:[#allocation3 + $0x30] sm:$0xf0] %v2834_v44 }
 0x4be   :  { %v2770_v1 = vpop.permute.xlu1 %2769 }
 0x4bf   :  { %v2794_v54 = vpop.permute.xlu0 %2793  ;;  %v6962_v47 = vld [vmem:[#allocation3 + $0x40] sm:$0xff] }
 0x4c0   :  { %v2796_v21 = vsel %vm117_vm13, %v2792_v9, %v2794_v54  ;;  %2802 = vst.msk [vmem:[#allocation3 + $0x28] sm:$0xf0] %vm83_vm7, %v2794_v54 }
 0x4c1   :  { %2801 = vst [vmem:[#allocation3 + $0x20] sm:$0xf0] %v2796_v21 }
 0x4c2   :  { %v6926_v28 = vpop.permute.xlu1 %2752 }
 0x4c3   :  { %v2790_v63 = vpop.permute.xlu0 %2789 }
 0x4c4   :  { %v2795_v26 = vsel %vm117_vm13, %v2790_v63, %v2792_v9  ;;  %v7013_v9 = vand.u32 4294901760, %v6967_v6 }
 0x4c5   :  { %2800 = vst [vmem:[#allocation3 + $0x18] sm:$0xf0] %v2795_v26 }
 0x4c6   :  { %v2889_v31 = vpop.permute.xlu1 %2888 }
 0x4c7   :  { %v2755_v41 = vpop.permute.xlu0 %2754  ;;  %v2892_v23 = vsel %vm219_vm6, %v2887_v35, %v2889_v31  ;;  %v2893_v25 = vsel %vm219_vm6, %v2889_v31, %v2891_v24  ;;  %v6990_v59 = vld [vmem:[#allocation3 + $0x28] sm:$0xff]  ;;  %v7025_v31 = vld [vmem:[#allocation3 + $0x70] sm:$0xf] }
 0x4c8   :  { %v2757_v16 = vsel %vm75_vm0, %v6926_v28, %v2755_v41  ;;  %2763 = vst.msk [vmem:[#allocation3 + $0x10] sm:$0xf0] %vm83_vm7, %v2755_v41  ;;  %2897 = vst [vmem:[#allocation3 + $0x60] sm:$0xf] %v2892_v23 }
 0x4c9   :  { %2762 = vst [vmem:[#allocation3 + $0x8] sm:$0xf0] %v2757_v16  ;;  %2898 = vst [vmem:[#allocation3 + $0x68] sm:$0xf] %v2893_v25 }
 0x4ca   :  { %v2850_v7 = vpop.permute.xlu1 %2849 }
 0x4cb   :  { %v6937_v33 = vpop.permute.xlu0 %4190  ;;  %v2853_v8 = vsel %vm178_vm11, %v2848_v60, %v2850_v7  ;;  %v2854_v45 = vsel %vm178_vm11, %v2850_v7, %v2852_v14 }
 0x4cc   :  { %2858 = vst [vmem:[#allocation3 + $0x48] sm:$0xf] %v2853_v8  ;;  %2859 = vst [vmem:[#allocation3 + $0x50] sm:$0xf] %v2854_v45 }
 0x4ce   :  { %v2811_v2 = vpop.permute.xlu1 %2810 }
 0x4cf   :  { %v6944_v27 = vpop.permute.xlu0 %4155  ;;  %v6948_v15 = vld [vmem:[#allocation3 + $0x10] sm:$0xff]  ;;  %v2814_v20 = vsel %vm137_vm14, %v2809_v51, %v2811_v2  ;;  %v2815_v32 = vsel %vm137_vm14, %v2811_v2, %v2813_v56  ;;  %v2913_v17 = vld [vmem:[#allocation3 + $0x60] sm:$0xf] }
 0x4d0   :  { %4164 = vst.msk [vmem:[#allocation3 + $0x58] sm:$0xf] %vm61_vm5, %v6944_v27  ;;  %v2914_v29 = vld [vmem:[#allocation3 + $0x68] sm:$0xf]  ;;  %4047 = vst.msk [vmem:[#allocation3 + $0x10] sm:$0xf] %vm61_vm5, %v4041_v55  ;;  %v3006_v55 = vsub.f32 %v6967_v6, %v7013_v9 }
 0x4d1   :  { %v2902_v39 = vld [vmem:[#allocation3 + $0x8] sm:$0xff]  ;;  %2819 = vst [vmem:[#allocation3 + $0x30] sm:$0xf] %v2814_v20  ;;  %2820 = vst [vmem:[#allocation3 + $0x38] sm:$0xf] %v2815_v32  ;;  %v2923_v42 = vsel %vm248_vm9, %v2914_v29, 0 }
 0x4d2   :  { %v2920_v10 = vsel %vm248_vm9, %v2913_v17, 0  ;;  %4046 = vst [vmem:[#allocation3 + $0x8] sm:$0xf] %v6876_v57  ;;  %v6958_v43 = vand.u32 4294901760, %v2923_v42  ;;  %v2772_v58 = vpop.permute.xlu1 %2771  ;;  %v6988_v53 = vand.u32 4294901760, %v2902_v39 }
 0x4d3   :  { %v6960_v48 = vand.u32 4294901760, %v2920_v10  ;;  %v6964_v4 = vpop.permute.xlu0 %4116  ;;  %v2775_v61 = vsel %vm96_vm15, %v2770_v1, %v2772_v58  ;;  %v2776_v57 = vsel %vm96_vm15, %v2772_v58, %v6914_v11  ;;  %v2911_v0 = vld [vmem:[#allocation3 + $0x50] sm:$0xff]  ;;  %v2910_v12 = vld [vmem:[#allocation3 + $0x48] sm:$0xff] }
 0x4d4   :  { %4125 = vst.msk [vmem:[#allocation3 + $0x40] sm:$0xf] %vm61_vm5, %v6964_v4  ;;  %2951 = vmatprep.subr.mxu0 %v6958_v43  ;;  %v6979_v14 = vsub.f32 %v2923_v42, %v6958_v43  ;;  %2780 = vst [vmem:[#allocation3 + $0x18] sm:$0xf] %v2775_v61  ;;  %v6982_v24 = vand.u32 4294901760, %v2911_v0  ;;  %v6984_v56 = vand.u32 4294901760, %v2910_v12  ;;  %v7022_v26 = vsub.f32 %v2902_v39, %v6988_v53 }
 0x4d5   :  { %v6976_v62 = vsub.f32 %v2920_v10, %v6960_v48  ;;  %2781 = vst [vmem:[#allocation3 + $0x20] sm:$0xf] %v2776_v57  ;;  %2953 = vmatpush1.msra.mxu0 %v6960_v48 }
 0x4d6   :  { %v3038_v35 = vand.u32 4294901760, %v6979_v14  ;;  %2955 = vmatprep.subr.mxu0 %v6982_v24  ;;  %v2751_v18 = vpop.permute.xlu1 %2750  ;;  %v6996_v40 = vsub.f32 %v2911_v0, %v6982_v24  ;;  %v6999_v49 = vsub.f32 %v2910_v12, %v6984_v56  ;;  %v3086_v57 = vand.u32 4294901760, %v7022_v26 }
 0x4d7   :  { %v3044_v11 = vand.u32 4294901760, %v6976_v62  ;;  %v6992_v60 = vpop.permute.xlu0 %4077  ;;  %v2756_v37 = vsel %vm75_vm0, %v2751_v18, %v6926_v28  ;;  %2957 = vmatpush1.msra.mxu0 %v6984_v56 }
 0x4d8   :  { %4086 = vst.msk [vmem:[#allocation3 + $0x28] sm:$0xf] %vm61_vm5, %v6992_v60  ;;  %v2908_v50 = vld [vmem:[#allocation3 + $0x38] sm:$0xff]  ;;  %v2907_v51 = vld [vmem:[#allocation3 + $0x30] sm:$0xff]  ;;  %v3039_v34 = vsub.f32 %v6979_v14, %v3038_v35  ;;  %2761 = vst [vmem:[#allocation3] sm:$0xf0] %v2756_v37 }
 0x4d9   :  { %v3045_v38 = vsub.f32 %v6976_v62, %v3044_v11  ;;  %v7015_v44 = vand.u32 4294901760, %v2908_v50  ;;  %v7017_v54 = vand.u32 4294901760, %v2907_v51  ;;  %v3050_v1 = vand.u32 4294901760, %v6996_v40 }
 0x4da   :  { %v3056_v21 = vand.u32 4294901760, %v6999_v49  ;;  %v3040_v63 = vand.u32 4294901760, %v3039_v34  ;;  %v4195_v16 = vpop.permute.xlu1 %4194 }
 0x4db   :  { %v3046_v28 = vand.u32 4294901760, %v3045_v38  ;;  %v4193_v41 = vpop.permute.xlu0 %4192  ;;  %2959 = vmatprep.subr.mxu0 %v7015_v44  ;;  %v3051_v23 = vsub.f32 %v6996_v40, %v3050_v1  ;;  %v7034_v22 = vsub.f32 %v2908_v50, %v7015_v44  ;;  %v7037_v7 = vsub.f32 %v2907_v51, %v7017_v54  ;;  %4203 = vst.msk [vmem:[#allocation3 + $0x70] sm:$0xf] %vm61_vm5, %v4195_v16  ;;  %v2904_v2 = vld [vmem:[#allocation3 + $0x18] sm:$0xff] }
 0x4dc   :  { %v3057_v25 = vsub.f32 %v6999_v49, %v3056_v21  ;;  %v4196_v8 = vsel %vm219_vm6, %v6937_v33, %v4193_v41  ;;  %v4197_v45 = vsel %vm219_vm6, %v4193_v41, %v4195_v16  ;;  %2961 = vmatpush1.msra.mxu0 %v7017_v54  ;;  %3041 = vmatprep.subr.mxu1 %v3040_v63  ;;  %v2905_v36 = vld [vmem:[#allocation3 + $0x20] sm:$0xff]  ;;  %v7048_v29 = vand.u32 4294901760, %v2904_v2 }
 0x4dd   :  { %4201 = vst [vmem:[#allocation3 + $0x60] sm:$0xf] %v4196_v8  ;;  %4202 = vst [vmem:[#allocation3 + $0x68] sm:$0xf] %v4197_v45  ;;  %3047 = vmatpush1.msra.mxu1 %v3046_v28  ;;  %v7046_v20 = vand.u32 4294901760, %v2905_v36  ;;  %v3052_v32 = vand.u32 4294901760, %v3051_v23 }
 0x4de   :  { %v3058_v33 = vand.u32 4294901760, %v3057_v25  ;;  %v3062_v17 = vand.u32 4294901760, %v7034_v22  ;;  %v3068_v39 = vand.u32 4294901760, %v7037_v7  ;;  %v4174_v10 = vpop.permute.xlu1 %4173  ;;  %v7057_v61 = vsub.f32 %v2904_v2, %v7048_v29 }
 0x4df   :  { %v4176_v42 = vpop.permute.xlu0 %4175  ;;  %2963 = vmatprep.subr.mxu0 %v7046_v20  ;;  %3053 = vmatprep.subr.mxu1 %v3052_v32  ;;  %v7054_v58 = vsub.f32 %v2905_v36, %v7046_v20  ;;  %v2901_v12 = vld [vmem:[#allocation3] sm:$0xff]  ;;  %v7073_v51 = vand.u32 4294901760, %v3006_v55  ;;  %v3087_v25 = vsub.f32 %v7022_v26, %v3086_v57 }
 0x4e0   :  { %4184 = vst.msk [vmem:[#allocation3 + $0x58] sm:$0xf0] %vm83_vm7, %v4176_v42  ;;  %v4178_v0 = vsel %vm199_vm8, %v4174_v10, %v4176_v42  ;;  %2965 = vmatpush1.msra.mxu0 %v7048_v29  ;;  %3059 = vmatpush1.msra.mxu1 %v3058_v33  ;;  %v3063_v18 = vsub.f32 %v7034_v22, %v3062_v17  ;;  %v7070_v50 = vand.u32 4294901760, %v2901_v12  ;;  %4045 = vst [vmem:[#allocation3] sm:$0xf] %v6863_v46 }
 0x4e1   :  { %v3069_v37 = vsub.f32 %v7037_v7, %v3068_v39  ;;  %4183 = vst [vmem:[#allocation3 + $0x50] sm:$0xf0] %v4178_v0  ;;  %2967 = vmatprep.subr.mxu0 %v6988_v53  ;;  %v3074_v34 = vand.u32 4294901760, %v7054_v58  ;;  %v3080_v38 = vand.u32 4294901760, %v7057_v61  ;;  %v3088_v42 = vand.u32 4294901760, %v3087_v25 }
 0x4e2   :  { %v3064_v63 = vand.u32 4294901760, %v3063_v18  ;;  %2969 = vmatpush1.msra.mxu0 %v7070_v50  ;;  %v7078_v16 = vpop.permute.xlu1 %4151  ;;  %v7090_v8 = vsub.f32 %v2901_v12, %v7070_v50 }
 0x4e3   :  { %v3070_v28 = vand.u32 4294901760, %v3069_v37  ;;  %v4172_v41 = vpop.permute.xlu0 %4171  ;;  %v3075_v23 = vsub.f32 %v7054_v58, %v3074_v34  ;;  %v3081_v46 = vsub.f32 %v7057_v61, %v3080_v38  ;;  %3160 = vmatprep.subr.mxu0 %v6979_v14  ;;  %3008 = vmatmul.mubr.f32.vlgmr.msra.gmra.mxu0 %v7073_v51 }
 0x4e4   :  { %v4177_v45 = vsel %vm199_vm8, %v4172_v41, %v4174_v10  ;;  %3065 = vmatprep.subr.mxu1 %v3064_v63  ;;  %v3092_v55 = vand.u32 4294901760, %v7090_v8  ;;  %3163 = vmatpush1.msra.mxu0 %v6976_v62 }
 0x4e5   :  { %4182 = vst [vmem:[#allocation3 + $0x48] sm:$0xf0] %v4177_v45  ;;  %3071 = vmatpush1.msra.mxu1 %v3070_v28  ;;  %v3076_v36 = vand.u32 4294901760, %v3075_v23  ;;  %v3082_v2 = vand.u32 4294901760, %v3081_v46  ;;  %3220 = vmatprep.mubr.f32.mxu0 %v5878_v3  ;;  %v2926_v46 = vsel %vm248_vm9, %v7025_v31, 0 }
 0x4e6   :  { %3166 = vmatprep.subr.mxu0 %v6996_v40  ;;  %v4135_v33 = vpop.permute.xlu1 %4134  ;;  %v3093_v10 = vsub.f32 %v7090_v8, %v3092_v55  ;;  %v7137_v31 = vand.u32 4294901760, %v2926_v46 }
 0x4e7   :  { %v4137_v32 = vpop.permute.xlu0 %4136  ;;  %3077 = vmatprep.subr.mxu1 %v3076_v36  ;;  %3169 = vmatpush1.msra.mxu0 %v6999_v49 }
 0x4e8   :  { %4145 = vst.msk [vmem:[#allocation3 + $0x40] sm:$0xf0] %vm83_vm7, %v4137_v32  ;;  %v4139_v0 = vsel %vm158_vm10, %v4135_v33, %v4137_v32  ;;  %3083 = vmatpush1.msra.mxu1 %v3082_v2  ;;  %3172 = vmatprep.subr.mxu0 %v7034_v22  ;;  %v3094_v12 = vand.u32 4294901760, %v3093_v10  ;;  %v7167_v22 = vand.u32 4294901760, %v6962_v47  ;;  %v4217_v32 = vld [vmem:[#allocation3 + $0x60] sm:$0xf] }
 0x4e9   :  { %4144 = vst [vmem:[#allocation3 + $0x38] sm:$0xf0] %v4139_v0  ;;  %3089 = vmatprep.subr.mxu1 %v3088_v42  ;;  %3175 = vmatpush1.msra.mxu0 %v7037_v7  ;;  %v4224_v42 = vsel %vm248_vm9, %v4217_v32, 0 }
 0x4ea   :  { %3178 = vmatprep.subr.mxu0 %v7054_v58  ;;  %3095 = vmatpush1.msra.mxu1 %v3094_v12  ;;  %v7108_v37 = vpop.permute.xlu1 %4112  ;;  %v7195_v58 = vsub.f32 %v6962_v47, %v7167_v22 }
 0x4eb   :  { %v4133_v18 = vpop.permute.xlu0 %4132  ;;  %3181 = vmatpush1.msra.mxu0 %v7057_v61  ;;  %3130 = vmatmul.mubr.f32.vlgmr.msra.gmra.mxu1 %v6946_v30 }
 0x4ec   :  { %v4138_v63 = vsel %vm158_vm10, %v4133_v18, %v4135_v33  ;;  %3184 = vmatprep.subr.mxu0 %v7022_v26  ;;  %3252 = vmatprep.subr.mxu1 %v6958_v43  ;;  %v7175_v26 = vand.u32 4294901760, %v6990_v59  ;;  %v7294_v18 = vand.u32 4294901760, %v4224_v42 }
 0x4ed   :  { %4143 = vst [vmem:[#allocation3 + $0x30] sm:$0xf0] %v4138_v63  ;;  %3187 = vmatpush1.msra.mxu0 %v7090_v8  ;;  %3254 = vmatpush1.msra.mxu1 %v6960_v48 }
 0x4ee   :  { %3223 = vmatmul.mubr.f32.vlgmr.msra.gmra.mxu0 %v6967_v6  ;;  %3256 = vmatprep.subr.mxu1 %v6982_v24  ;;  %v4096_v41 = vpop.permute.xlu1 %4095 }
 0x4ef   :  { %v4098_v28 = vpop.permute.xlu0 %4097  ;;  %3338 = vmatprep.subr.mxu0 %v3038_v35  ;;  %3258 = vmatpush1.msra.mxu1 %v6984_v56 }
 0x4f0   :  { %4106 = vst.msk [vmem:[#allocation3 + $0x28] sm:$0xf0] %vm83_vm7, %v4098_v28  ;;  %v4100_v23 = vsel %vm117_vm13, %v4096_v41, %v4098_v28  ;;  %3342 = vmatpush1.msra.mxu0 %v3044_v11  ;;  %3260 = vmatprep.subr.mxu1 %v7015_v44  ;;  %v7150_v11 = vand.u32 4294901760, %v6942_v13 }
 0x4f1   :  { %4105 = vst [vmem:[#allocation3 + $0x20] sm:$0xf0] %v4100_v23  ;;  %3346 = vmatprep.subr.mxu0 %v3050_v1  ;;  %3262 = vmatpush1.msra.mxu1 %v7017_v54  ;;  %v7158_v1 = vsub.f32 %v2926_v46, %v7137_v31 }
 0x4f2   :  { %3350 = vmatpush1.msra.mxu0 %v3056_v21  ;;  %3264 = vmatprep.subr.mxu1 %v7046_v20  ;;  %v7135_v35 = vpop.permute.xlu1 %4073  ;;  %v7179_v7 = vsub.f32 %v6942_v13, %v7150_v11  ;;  %v7191_v13 = vand.u32 4294901760, %v6948_v15 }
 0x4f3   :  { %v4094_v14 = vpop.permute.xlu0 %4093  ;;  %3354 = vmatprep.subr.mxu0 %v3062_v17  ;;  %3266 = vmatpush1.msra.mxu1 %v7048_v29  ;;  %v3602_v17 = vand.u32 4294901760, %v7158_v1 }
 0x4f4   :  { %v4099_v62 = vsel %vm117_vm13, %v4094_v14, %v4096_v41  ;;  %3358 = vmatpush1.msra.mxu0 %v3068_v39  ;;  %3268 = vmatprep.subr.mxu1 %v6988_v53 }
 0x4f5   :  { %4104 = vst [vmem:[#allocation3 + $0x18] sm:$0xf0] %v4099_v62  ;;  %3362 = vmatprep.subr.mxu0 %v3074_v34  ;;  %3270 = vmatpush1.msra.mxu1 %v7070_v50  ;;  %v7317_v62 = vsub.f32 %v4224_v42, %v7294_v18 }
 0x4f6   :  { %3303 = vmatprep.mubr.f32.mxu1 %v5878_v3  ;;  %3366 = vmatpush1.msra.mxu0 %v3080_v38  ;;  %v7155_v49 = vpop.permute.xlu1 %4056 }
 0x4f7   :  { %v4059_v40 = vpop.permute.xlu0 %4058  ;;  %3307 = vmatmul.mubr.f32.vlgmr.msra.gmra.mxu1 %v7013_v9  ;;  %3370 = vmatprep.subr.mxu0 %v3086_v57 }
 0x4f8   :  { %4067 = vst.msk [vmem:[#allocation3 + $0x10] sm:$0xf0] %vm83_vm7, %v4059_v40  ;;  %v4061_v21 = vsel %vm75_vm0, %v7155_v49, %v4059_v40  ;;  %3438 = vmatprep.subr.mxu1 %v6958_v43  ;;  %3374 = vmatpush1.msra.mxu0 %v3092_v55  ;;  %v4218_v55 = vld [vmem:[#allocation3 + $0x68] sm:$0xf] }
 0x4f9   :  { %4066 = vst [vmem:[#allocation3 + $0x8] sm:$0xf0] %v4061_v21  ;;  %3407 = vmatprep.mubr.f32.mxu0 %v5878_v3  ;;  %3440 = vmatpush1.msra.mxu1 %v6960_v48  ;;  %v4227_v33 = vsel %vm248_vm9, %v4218_v55, 0 }
 0x4fa   :  { %3409 = vmatmul.mubr.f32.vlgmr.msra.gmra.mxu0 %v6946_v30  ;;  %3442 = vmatprep.subr.mxu1 %v6982_v24  ;;  %v4154_v43 = vpop.permute.xlu1 %4153  ;;  %v3609_v24 = vand.u32 4294901760, %v7179_v7  ;;  %v7290_v0 = vand.u32 4294901760, %v4227_v33 }
 0x4fb   :  { %5681 = vmatprep.subr.mxu0 %v5878_v3  ;;  %3444 = vmatpush1.msra.mxu1 %v6984_v56  ;;  %v4157_v48 = vsel %vm178_vm11, %v7078_v16, %v4154_v43  ;;  %v4158_v39 = vsel %vm178_vm11, %v4154_v43, %v6944_v27  ;;  %v7204_v27 = vsub.f32 %v6990_v59, %v7175_v26 }
 0x4fc   :  { %5682 = vmatpush3.msra.mxu0 %v7137_v31  ;;  %3446 = vmatprep.subr.mxu1 %v7015_v44  ;;  %4162 = vst [vmem:[#allocation3 + $0x48] sm:$0xf] %v4157_v48  ;;  %4163 = vst [vmem:[#allocation3 + $0x50] sm:$0xf] %v4158_v39  ;;  %v3603_v56 = vsub.f32 %v7158_v1, %v3602_v17 }
 0x4fd   :  { %5683 = vmatprep.subr.mxu0 %v5878_v3  ;;  %3448 = vmatpush1.msra.mxu1 %v7017_v54  ;;  %v3616_v54 = vand.u32 4294901760, %v7195_v58 }
 0x4fe   :  { %5684 = vmatpush3.msra.mxu0 %v7150_v11  ;;  %3450 = vmatprep.subr.mxu1 %v7046_v20  ;;  %v4115_v47 = vpop.permute.xlu1 %4114  ;;  %v7220_v20 = vsub.f32 %v6948_v15, %v7191_v13  ;;  %v3604_v15 = vand.u32 4294901760, %v3603_v56 }
 0x4ff   :  { %5685 = vmatprep.subr.mxu0 %v5878_v3  ;;  %3452 = vmatpush1.msra.mxu1 %v7048_v29  ;;  %v4118_v44 = vsel %vm137_vm14, %v7108_v37, %v4115_v47  ;;  %v4119_v59 = vsel %vm137_vm14, %v4115_v47, %v6964_v4  ;;  %v3610_v4 = vsub.f32 %v7179_v7, %v3609_v24  ;;  %v3623_v29 = vand.u32 4294901760, %v7204_v27 }
 0x500   :  { %5686 = vmatpush3.msra.mxu0 %v7167_v22  ;;  %3454 = vmatprep.subr.mxu1 %v6988_v53  ;;  %4123 = vst [vmem:[#allocation3 + $0x30] sm:$0xf] %v4118_v44  ;;  %4124 = vst [vmem:[#allocation3 + $0x38] sm:$0xf] %v4119_v59  ;;  %v3630_v34 = vand.u32 4294901760, %v7220_v20 }
 0x501   :  { %5687 = vmatprep.subr.mxu0 %v5878_v3  ;;  %3456 = vmatpush1.msra.mxu1 %v7070_v50  ;;  %v3617_v50 = vsub.f32 %v7195_v58, %v3616_v54  ;;  %v3611_v38 = vand.u32 4294901760, %v3610_v4 }
 0x502   :  { %3489 = vmatprep.mubr.f32.mxu1 %v5878_v3  ;;  %5688 = vmatpush3.msra.mxu0 %v7175_v26  ;;  %v4076_v61 = vpop.permute.xlu1 %4075  ;;  %v3631_v45 = vsub.f32 %v7220_v20, %v3630_v34 }
 0x503   :  { %3491 = vmatmul.mubr.f32.vlgmr.msra.gmra.mxu1 %v6946_v30  ;;  %5689 = vmatprep.subr.mxu0 %v5878_v3  ;;  %v4079_v53 = vsel %vm96_vm15, %v7135_v35, %v4076_v61  ;;  %v4080_v57 = vsel %vm96_vm15, %v4076_v61, %v6992_v60  ;;  %v3624_v60 = vsub.f32 %v7204_v27, %v3623_v29  ;;  %v3618_v25 = vand.u32 4294901760, %v3617_v50  ;;  %v4215_v10 = vld [vmem:[#allocation3 + $0x50] sm:$0xff]  ;;  %v4214_v12 = vld [vmem:[#allocation3 + $0x48] sm:$0xff] }
 0x504   :  { %5694 = vmatprep.subr.mxu1 %v5878_v3  ;;  %5690 = vmatpush3.msra.mxu0 %v7191_v13  ;;  %4084 = vst [vmem:[#allocation3 + $0x18] sm:$0xf] %v4079_v53  ;;  %4085 = vst [vmem:[#allocation3 + $0x20] sm:$0xf] %v4080_v57  ;;  %v3632_v2 = vand.u32 4294901760, %v3631_v45  ;;  %v7299_v63 = vand.u32 4294901760, %v4215_v10  ;;  %v7312_v35 = vsub.f32 %v4227_v33, %v7290_v0 }
 0x505   :  { %5695 = vmatpush3.msra.mxu1 %v3604_v15  ;;  %5691 = vmatprep.mubr.msk.f32.mxu0 %vm5888_vm1, %v5878_v3  ;;  %v3625_v36 = vand.u32 4294901760, %v3624_v60  ;;  %v7303_v41 = vand.u32 4294901760, %v4214_v12 }
 0x506   :  { %5696 = vmatprep.subr.mxu1 %v5878_v3  ;;  %5707 = vmatprep.subr.mxu0 %v5878_v3  ;;  %v4055_v16 = vpop.permute.xlu1 %4054  ;;  %v4342_v39 = vand.u32 4294901760, %v7312_v35 }
 0x507   :  { %5692 = vmatmul.mubr.f32.vlgmr.msra.gmra.mxu0 %v7073_v51  ;;  %5697 = vmatpush3.msra.mxu1 %v3611_v38  ;;  %v4060_v8 = vsel %vm75_vm0, %v4055_v16, %v7155_v49  ;;  %v4212_v37 = vld [vmem:[#allocation3 + $0x38] sm:$0xff]  ;;  %v4211_v28 = vld [vmem:[#allocation3 + $0x30] sm:$0xff]  ;;  %v4206_v49 = vld [vmem:[#allocation3 + $0x8] sm:$0xff]  ;;  %v7333_v43 = vsub.f32 %v4214_v12, %v7303_v41 }
 0x508   :  { %5708 = vmatpush3.msra.mxu0 %v7158_v1  ;;  %5698 = vmatprep.subr.mxu1 %v5878_v3  ;;  %4065 = vst [vmem:[#allocation3] sm:$0xf0] %v4060_v8  ;;  %v7309_v46 = vand.u32 4294901760, %v4212_v37  ;;  %v7319_v40 = vand.u32 4294901760, %v4211_v28  ;;  %v7339_v48 = vand.u32 4294901760, %v4206_v49  ;;  %v4343_v59 = vsub.f32 %v7312_v35, %v4342_v39 }
 0x509   :  { %5709 = vmatprep.subr.mxu0 %v5878_v3  ;;  %5699 = vmatpush3.msra.mxu1 %v3618_v25  ;;  %v4360_v44 = vand.u32 4294901760, %v7333_v43 }
 0x50a   :  { %5710 = vmatpush3.msra.mxu0 %v7179_v7  ;;  %5700 = vmatprep.subr.mxu1 %v5878_v3  ;;  %v7327_v7 = vsub.f32 %v4215_v10, %v7299_v63  ;;  %v4344_v57 = vand.u32 4294901760, %v4343_v59 }
 0x50b   :  { %5711 = vmatprep.subr.mxu0 %v5878_v3  ;;  %5701 = vmatpush3.msra.mxu1 %v3625_v36  ;;  %v4209_v23 = vld [vmem:[#allocation3 + $0x20] sm:$0xff]  ;;  %v4208_v14 = vld [vmem:[#allocation3 + $0x18] sm:$0xff] }
 0x50c   :  { %5712 = vmatpush3.msra.mxu0 %v7195_v58  ;;  %5702 = vmatprep.subr.mxu1 %v5878_v3  ;;  %v7324_v1 = vand.u32 4294901760, %v4209_v23  ;;  %v7343_v58 = vsub.f32 %v4212_v37, %v7309_v46  ;;  %v4354_v47 = vand.u32 4294901760, %v7327_v7  ;;  %v4219_v37 = vld [vmem:[#allocation3 + $0x70] sm:$0xf] }
 0x50d   :  { %5713 = vmatprep.subr.mxu0 %v5878_v3  ;;  %5703 = vmatpush3.msra.mxu1 %v3632_v2 }
 0x50e   :  { %5704 = vmatprep.mubr.msk.f32.mxu1 %vm5888_vm1, %v5878_v3  ;;  %5714 = vmatpush3.msra.mxu0 %v7204_v27  ;;  %v4348_v27 = vand.u32 4294901760, %v7317_v62  ;;  %v7357_v56 = vsub.f32 %v4209_v23, %v7324_v1  ;;  %v4355_v15 = vsub.f32 %v7327_v7, %v4354_v47  ;;  %v4216_v23 = vld [vmem:[#allocation3 + $0x58] sm:$0xff] }
 0x50f   :  { %5705 = vmatmul.mubr.f32.vlgmr.msra.gmra.mxu1 %v6946_v30  ;;  %5715 = vmatprep.subr.mxu0 %v5878_v3  ;;  %v4205_v21 = vld [vmem:[#allocation3] sm:$0xff] }
 0x510   :  { %5720 = vmatprep.subr.mxu1 %v5878_v3  ;;  %5716 = vmatpush3.msra.mxu0 %v7220_v20  ;;  %v7372_v20 = vsub.f32 %v4206_v49, %v7339_v48  ;;  %v4349_v4 = vsub.f32 %v7317_v62, %v4348_v27  ;;  %v4378_v61 = vand.u32 4294901760, %v7357_v56  ;;  %v4356_v16 = vand.u32 4294901760, %v4355_v15  ;;  %v4210_v49 = vld [vmem:[#allocation3 + $0x28] sm:$0xff] }
 0x511   :  { %5717 = vmatprep.mubr.msk.f32.mxu0 %vm5888_vm1, %v5878_v3  ;;  %5721 = vmatpush3.msra.mxu1 %v7137_v31 }
 0x512   :  { %5718 = vmatmul.mubr.f32.vlgmr.msra.gmra.mxu0 %v6967_v6  ;;  %5722 = vmatprep.subr.mxu1 %v5878_v3  ;;  %v4379_v25 = vsub.f32 %v7357_v56, %v4378_v61 }
 0x513   :  { %5733 = vmatprep.subr.mxu0 %v5878_v3  ;;  %5723 = vmatpush3.msra.mxu1 %v7150_v11 }
 0x514   :  { %5734 = vmatpush3.msra.mxu0 %v3602_v17  ;;  %5724 = vmatprep.subr.mxu1 %v5878_v3  ;;  %v7335_v17 = vand.u32 4294901760, %v4208_v14  ;;  %v4380_v33 = vand.u32 4294901760, %v4379_v25 }
 0x515   :  { %5735 = vmatprep.subr.mxu0 %v5878_v3  ;;  %5725 = vmatpush3.msra.mxu1 %v7167_v22 }
 0x516   :  { %5736 = vmatpush3.msra.mxu0 %v3609_v24  ;;  %5726 = vmatprep.subr.mxu1 %v5878_v3  ;;  %v7350_v24 = vand.u32 4294901760, %v4205_v21 }
 0x517   :  { %5737 = vmatprep.subr.mxu0 %v5878_v3  ;;  %5727 = vmatpush3.msra.mxu1 %v7175_v26 }
 0x518   :  { %5738 = vmatpush3.msra.mxu0 %v3616_v54  ;;  %5728 = vmatprep.subr.mxu1 %v5878_v3  ;;  %v4366_v54 = vand.u32 4294901760, %v7343_v58 }
 0x519   :  { %5739 = vmatprep.subr.mxu0 %v5878_v3  ;;  %5729 = vmatpush3.msra.mxu1 %v7191_v13 }
 0x51a   :  { %5730 = vmatprep.mubr.msk.f32.mxu1 %vm5888_vm1, %v5878_v3  ;;  %5740 = vmatpush3.msra.mxu0 %v3623_v29  ;;  %v4367_v50 = vsub.f32 %v7343_v58, %v4366_v54 }
 0x51b   :  { %5731 = vmatmul.mubr.f32.vlgmr.msra.gmra.mxu1 %v7013_v9  ;;  %5741 = vmatprep.subr.mxu0 %v5878_v3 }
 0x51c   :  { %5746 = vmatprep.subr.mxu1 %v5878_v3  ;;  %5742 = vmatpush3.msra.mxu0 %v3630_v34  ;;  %v4390_v34 = vand.u32 4294901760, %v7372_v20  ;;  %v4368_v36 = vand.u32 4294901760, %v4367_v50 }
 0x51d   :  { %5743 = vmatprep.mubr.msk.f32.mxu0 %vm5888_vm1, %v5878_v3  ;;  %5747 = vmatpush3.msra.mxu1 %v7137_v31  ;;  %v7348_v31 = vsub.f32 %v4211_v28, %v7319_v40  ;;  %v4230_v28 = vsel %vm248_vm9, %v4219_v37, 0 }
 0x51e   :  { %5744 = vmatmul.mubr.f32.vlgmr.msra.gmra.mxu0 %v6946_v30  ;;  %5748 = vmatprep.subr.mxu1 %v5878_v3  ;;  %v4391_v2 = vsub.f32 %v7372_v20, %v4390_v34 }
 0x51f   :  { %4255 = vmatprep.subr.mxu0 %v7290_v0  ;;  %5749 = vmatpush3.msra.mxu1 %v7150_v11  ;;  %v7362_v11 = vsub.f32 %v4208_v14, %v7335_v17  ;;  %v4372_v29 = vand.u32 4294901760, %v7348_v31  ;;  %v7456_v14 = vand.u32 4294901760, %v4230_v28 }
 0x520   :  { %4257 = vmatpush1.msra.mxu0 %v7294_v18  ;;  %5750 = vmatprep.subr.mxu1 %v5878_v3  ;;  %v4392_v10 = vand.u32 4294901760, %v4391_v2 }
 0x521   :  { %4259 = vmatprep.subr.mxu0 %v7299_v63  ;;  %5751 = vmatpush3.msra.mxu1 %v7167_v22  ;;  %v7377_v22 = vsub.f32 %v4205_v21, %v7350_v24  ;;  %v4384_v53 = vand.u32 4294901760, %v7362_v11  ;;  %v4373_v38 = vsub.f32 %v7348_v31, %v4372_v29  ;;  %v7473_v21 = vsub.f32 %v4230_v28, %v7456_v14 }
 0x522   :  { %4261 = vmatpush1.msra.mxu0 %v7303_v41  ;;  %5752 = vmatprep.subr.mxu1 %v5878_v3 }
 0x523   :  { %4263 = vmatprep.subr.mxu0 %v7309_v46  ;;  %5753 = vmatpush3.msra.mxu1 %v7175_v26  ;;  %v4361_v26 = vsub.f32 %v7333_v43, %v4360_v44  ;;  %v4396_v60 = vand.u32 4294901760, %v7377_v22  ;;  %v4385_v45 = vsub.f32 %v7362_v11, %v4384_v53  ;;  %v4374_v55 = vand.u32 4294901760, %v4373_v38 }
 0x524   :  { %4265 = vmatpush1.msra.mxu0 %v7319_v40  ;;  %5754 = vmatprep.subr.mxu1 %v5878_v3 }
 0x525   :  { %4267 = vmatprep.subr.mxu0 %v7324_v1  ;;  %5755 = vmatpush3.msra.mxu1 %v7191_v13  ;;  %v4350_v13 = vand.u32 4294901760, %v4349_v4  ;;  %v4362_v8 = vand.u32 4294901760, %v4361_v26  ;;  %v4397_v32 = vsub.f32 %v7377_v22, %v4396_v60  ;;  %v4386_v42 = vand.u32 4294901760, %v4385_v45 }
 0x526   :  { %5756 = vmatprep.mubr.msk.f32.mxu1 %vm5888_vm1, %v5878_v3  ;;  %4269 = vmatpush1.msra.mxu0 %v7335_v17 }
 0x527   :  { %5757 = vmatmul.mubr.f32.vlgmr.msra.gmra.mxu1 %v6946_v30  ;;  %4271 = vmatprep.subr.mxu0 %v7339_v48  ;;  %v4398_v12 = vand.u32 4294901760, %v4397_v32 }
 0x528   :  { %4345 = vmatprep.subr.mxu1 %v4344_v57  ;;  %4273 = vmatpush1.msra.mxu0 %v7350_v24 }
 0x529   :  { %4351 = vmatpush1.msra.mxu1 %v4350_v13  ;;  %4306 = vmatprep.mubr.f32.mxu0 %v5878_v3 }
 0x52a   :  { %4357 = vmatprep.subr.mxu1 %v4356_v16  ;;  %4464 = vmatprep.subr.mxu0 %v7312_v35  ;;  %v4213_v35 = vld [vmem:[#allocation3 + $0x40] sm:$0xff] }
 0x52b   :  { %4312 = vmatmul.mubr.f32.vlgmr.msra.gmra.mxu0 %v7073_v51  ;;  %4363 = vmatpush1.msra.mxu1 %v4362_v8 }
 0x52c   :  { %4467 = vmatpush1.msra.mxu0 %v7317_v62  ;;  %4369 = vmatprep.subr.mxu1 %v4368_v36  ;;  %v7464_v62 = vand.u32 4294901760, %v4216_v23 }
 0x52d   :  { %4470 = vmatprep.subr.mxu0 %v7327_v7  ;;  %4375 = vmatpush1.msra.mxu1 %v4374_v55  ;;  %v7475_v7 = vand.u32 4294901760, %v4213_v35 }
 0x52e   :  { %4473 = vmatpush1.msra.mxu0 %v7333_v43  ;;  %4381 = vmatprep.subr.mxu1 %v4380_v33  ;;  %v4207_v43 = vld [vmem:[#allocation3 + $0x10] sm:$0xff] }
 0x52f   :  { %4476 = vmatprep.subr.mxu0 %v7343_v58  ;;  %4387 = vmatpush1.msra.mxu1 %v4386_v42  ;;  %v7485_v58 = vand.u32 4294901760, %v4210_v49 }
 0x530   :  { %4479 = vmatpush1.msra.mxu0 %v7348_v31  ;;  %4393 = vmatprep.subr.mxu1 %v4392_v10  ;;  %v7494_v31 = vand.u32 4294901760, %v4207_v43 }
 0x531   :  { %4482 = vmatprep.subr.mxu0 %v7357_v56  ;;  %4399 = vmatpush1.msra.mxu1 %v4398_v12 }
 0x532   :  { %4432 = vmatprep.mubr.f32.mxu1 %v5878_v3  ;;  %4485 = vmatpush1.msra.mxu0 %v7362_v11 }
 0x533   :  { %4434 = vmatmul.mubr.f32.vlgmr.msra.gmra.mxu1 %v6946_v30  ;;  %4488 = vmatprep.subr.mxu0 %v7372_v20 }
 0x534   :  { %4556 = vmatprep.subr.mxu1 %v7290_v0  ;;  %4491 = vmatpush1.msra.mxu0 %v7377_v22 }
 0x535   :  { %4524 = vmatprep.mubr.f32.mxu0 %v5878_v3  ;;  %4558 = vmatpush1.msra.mxu1 %v7294_v18 }
 0x536   :  { %4527 = vmatmul.mubr.f32.vlgmr.msra.gmra.mxu0 %v6967_v6  ;;  %4560 = vmatprep.subr.mxu1 %v7299_v63 }
 0x537   :  { %4642 = vmatprep.subr.mxu0 %v4342_v39  ;;  %4562 = vmatpush1.msra.mxu1 %v7303_v41  ;;  %v7483_v39 = vsub.f32 %v4216_v23, %v7464_v62 }
 0x538   :  { %4646 = vmatpush1.msra.mxu0 %v4348_v27  ;;  %4564 = vmatprep.subr.mxu1 %v7309_v46  ;;  %v7510_v27 = vsub.f32 %v4207_v43, %v7494_v31 }
 0x539   :  { %4650 = vmatprep.subr.mxu0 %v4354_v47  ;;  %4566 = vmatpush1.msra.mxu1 %v7319_v40 }
 0x53a   :  { %4654 = vmatpush1.msra.mxu0 %v4360_v44  ;;  %4568 = vmatprep.subr.mxu1 %v7324_v1 }
 0x53b   :  { %4658 = vmatprep.subr.mxu0 %v4366_v54  ;;  %4570 = vmatpush1.msra.mxu1 %v7335_v17 }
 0x53c   :  { %4662 = vmatpush1.msra.mxu0 %v4372_v29  ;;  %4572 = vmatprep.subr.mxu1 %v7339_v48 }
 0x53d   :  { %4666 = vmatprep.subr.mxu0 %v4378_v61  ;;  %4574 = vmatpush1.msra.mxu1 %v7350_v24 }
 0x53e   :  { %4607 = vmatprep.mubr.f32.mxu1 %v5878_v3  ;;  %4670 = vmatpush1.msra.mxu0 %v4384_v53 }
 0x53f   :  { %4611 = vmatmul.mubr.f32.vlgmr.msra.gmra.mxu1 %v7013_v9  ;;  %4674 = vmatprep.subr.mxu0 %v4390_v34 }
 0x540   :  { %4742 = vmatprep.subr.mxu1 %v7290_v0  ;;  %4678 = vmatpush1.msra.mxu0 %v4396_v60  ;;  %v7492_v0 = vsub.f32 %v4213_v35, %v7475_v7 }
 0x541   :  { %4711 = vmatprep.mubr.f32.mxu0 %v5878_v3  ;;  %4744 = vmatpush1.msra.mxu1 %v7294_v18  ;;  %v4906_v18 = vand.u32 4294901760, %v7473_v21 }
 0x542   :  { %4713 = vmatmul.mubr.f32.vlgmr.msra.gmra.mxu0 %v6946_v30  ;;  %4746 = vmatprep.subr.mxu1 %v7299_v63  ;;  %v7502_v63 = vsub.f32 %v4210_v49, %v7485_v58 }
 0x543   :  { %5759 = vmatprep.subr.mxu0 %v5878_v3  ;;  %4748 = vmatpush1.msra.mxu1 %v7303_v41  ;;  %v4913_v41 = vand.u32 4294901760, %v7483_v39 }
 0x544   :  { %5760 = vmatpush3.msra.mxu0 %v7456_v14  ;;  %4750 = vmatprep.subr.mxu1 %v7309_v46  ;;  %v4907_v46 = vsub.f32 %v7473_v21, %v4906_v18 }
 0x545   :  { %5761 = vmatprep.subr.mxu0 %v5878_v3  ;;  %4752 = vmatpush1.msra.mxu1 %v7319_v40  ;;  %v4920_v40 = vand.u32 4294901760, %v7492_v0 }
 0x546   :  { %5762 = vmatpush3.msra.mxu0 %v7464_v62  ;;  %4754 = vmatprep.subr.mxu1 %v7324_v1  ;;  %v4914_v1 = vsub.f32 %v7483_v39, %v4913_v41  ;;  %v4908_v47 = vand.u32 4294901760, %v4907_v46 }
 0x547   :  { %5763 = vmatprep.subr.mxu0 %v5878_v3  ;;  %4756 = vmatpush1.msra.mxu1 %v7335_v17  ;;  %v4927_v17 = vand.u32 4294901760, %v7502_v63  ;;  %v4921_v56 = vsub.f32 %v7492_v0, %v4920_v40 }
 0x548   :  { %5764 = vmatpush3.msra.mxu0 %v7475_v7  ;;  %4758 = vmatprep.subr.mxu1 %v7339_v48  ;;  %v4934_v48 = vand.u32 4294901760, %v7510_v27 }
 0x549   :  { %5765 = vmatprep.subr.mxu0 %v5878_v3  ;;  %4760 = vmatpush1.msra.mxu1 %v7350_v24  ;;  %v4915_v24 = vand.u32 4294901760, %v4914_v1  ;;  %v4928_v11 = vsub.f32 %v7502_v63, %v4927_v17  ;;  %v4922_v44 = vand.u32 4294901760, %v4921_v56 }
 0x54a   :  { %4793 = vmatprep.mubr.f32.mxu1 %v5878_v3  ;;  %5766 = vmatpush3.msra.mxu0 %v7485_v58  ;;  %v4935_v59 = vsub.f32 %v7510_v27, %v4934_v48 }
 0x54b   :  { %4795 = vmatmul.mubr.f32.vlgmr.msra.gmra.mxu1 %v6946_v30  ;;  %5767 = vmatprep.subr.mxu0 %v5878_v3  ;;  %v4929_v54 = vand.u32 4294901760, %v4928_v11 }
 0x54c   :  { %5772 = vmatprep.subr.mxu1 %v5878_v3  ;;  %5768 = vmatpush3.msra.mxu0 %v7494_v31 }
 0x54d   :  { %5773 = vmatpush3.msra.mxu1 %v4908_v47  ;;  %5769 = vmatprep.mubr.msk.f32.mxu0 %vm5888_vm1, %v5878_v3 }
 0x54e   :  { %5774 = vmatprep.subr.mxu1 %v5878_v3  ;;  %5785 = vmatprep.subr.mxu0 %v5878_v3 }
 0x54f   :  { %5770 = vmatmul.mubr.f32.vlgmr.msra.gmra.mxu0 %v7073_v51  ;;  %5775 = vmatpush3.msra.mxu1 %v4915_v24  ;;  %v4936_v51 = vand.u32 4294901760, %v4935_v59 }
 0x550   :  { %5786 = vmatpush3.msra.mxu0 %v7473_v21  ;;  %5776 = vmatprep.subr.mxu1 %v5878_v3 }
 0x551   :  { %5787 = vmatprep.subr.mxu0 %v5878_v3  ;;  %5777 = vmatpush3.msra.mxu1 %v4922_v44 }
 0x552   :  { %5788 = vmatpush3.msra.mxu0 %v7483_v39  ;;  %5778 = vmatprep.subr.mxu1 %v5878_v3 }
 0x553   :  { %5789 = vmatprep.subr.mxu0 %v5878_v3  ;;  %5779 = vmatpush3.msra.mxu1 %v4929_v54 }
 0x554   :  { %5790 = vmatpush3.msra.mxu0 %v7492_v0  ;;  %5780 = vmatprep.subr.mxu1 %v5878_v3 }
 0x555   :  { %5791 = vmatprep.subr.mxu0 %v5878_v3  ;;  %5781 = vmatpush3.msra.mxu1 %v4936_v51 }
 0x556   :  { %5782 = vmatprep.mubr.msk.f32.mxu1 %vm5888_vm1, %v5878_v3  ;;  %5792 = vmatpush3.msra.mxu0 %v7502_v63 }
 0x557   :  { %5783 = vmatmul.mubr.f32.vlgmr.msra.gmra.mxu1 %v6946_v30  ;;  %5793 = vmatprep.subr.mxu0 %v5878_v3 }
 0x558   :  { %5798 = vmatprep.subr.mxu1 %v5878_v3  ;;  %5794 = vmatpush3.msra.mxu0 %v7510_v27 }
 0x559   :  { %5795 = vmatprep.mubr.msk.f32.mxu0 %vm5888_vm1, %v5878_v3  ;;  %5799 = vmatpush3.msra.mxu1 %v7456_v14 }
 0x55a   :  { %5796 = vmatmul.mubr.f32.vlgmr.msra.gmra.mxu0 %v6967_v6  ;;  %5800 = vmatprep.subr.mxu1 %v5878_v3 }
 0x55b   :  { %5811 = vmatprep.subr.mxu0 %v5878_v3  ;;  %5801 = vmatpush3.msra.mxu1 %v7464_v62 }
 0x55c   :  { %5812 = vmatpush3.msra.mxu0 %v4906_v18  ;;  %5802 = vmatprep.subr.mxu1 %v5878_v3 }
 0x55d   :  { %5813 = vmatprep.subr.mxu0 %v5878_v3  ;;  %5803 = vmatpush3.msra.mxu1 %v7475_v7 }
 0x55e   :  { %5814 = vmatpush3.msra.mxu0 %v4913_v41  ;;  %5804 = vmatprep.subr.mxu1 %v5878_v3 }
 0x55f   :  { %5815 = vmatprep.subr.mxu0 %v5878_v3  ;;  %5805 = vmatpush3.msra.mxu1 %v7485_v58 }
 0x560   :  { %5816 = vmatpush3.msra.mxu0 %v4920_v40  ;;  %5806 = vmatprep.subr.mxu1 %v5878_v3 }
 0x561   :  { %5817 = vmatprep.subr.mxu0 %v5878_v3  ;;  %5807 = vmatpush3.msra.mxu1 %v7494_v31 }
 0x562   :  { %5808 = vmatprep.mubr.msk.f32.mxu1 %vm5888_vm1, %v5878_v3  ;;  %5818 = vmatpush3.msra.mxu0 %v4927_v17 }
 0x563   :  { %5809 = vmatmul.mubr.f32.vlgmr.msra.gmra.mxu1 %v7013_v9  ;;  %5819 = vmatprep.subr.mxu0 %v5878_v3 }
 0x564   :  { %5824 = vmatprep.subr.mxu1 %v5878_v3  ;;  %5820 = vmatpush3.msra.mxu0 %v4934_v48 }
 0x565   :  { %5821 = vmatprep.mubr.msk.f32.mxu0 %vm5888_vm1, %v5878_v3  ;;  %5825 = vmatpush3.msra.mxu1 %v7456_v14 }
 0x566   :  { %5822 = vmatmul.mubr.f32.vlgmr.msra.gmra.mxu0 %v6946_v30  ;;  %5826 = vmatprep.subr.mxu1 %v5878_v3 }
 0x567   :  { %5827 = vmatpush3.msra.mxu1 %v7464_v62  ;;  %5834 = vmatprep.mubr.msk.f32.mxu1 %vm5888_vm1, %v5878_v3 }
 0x568   :  { %5828 = vmatprep.subr.mxu1 %v5878_v3 }
 0x569   :  { %5829 = vmatpush3.msra.mxu1 %v7475_v7 }
 0x56a   :  { %5830 = vmatprep.subr.mxu1 %v5878_v3 }
 0x56b   :  { %5831 = vmatpush3.msra.mxu1 %v7485_v58 }
 0x56c   :  { %5832 = vmatprep.subr.mxu1 %v5878_v3 }
 0x56d   :  { %5833 = vmatpush3.msra.mxu1 %v7494_v31 }
 0x56e   :  { %5835 = vmatmul.mubr.f32.vlgmr.msra.gmra.mxu1 %v6946_v30 }
 0x5a3   :  { %v3009_v6 = vpop.f32.mrf.mxu0 }
 0x5a5   :  { %v3011_v9 = vpop.f32.mrf.mxu0 }
 0x5ab   :  { %v3131_v22 = vpop.f32.mrf.mxu1 }
 0x5ac   :  { %v3132_v30 = vadd.f32 %v3131_v22, %v3009_v6 }
 0x5ad   :  { %v3133_v29 = vpop.f32.mrf.mxu1 }
 0x5ae   :  { %v3224_v20 = vpop.f32.mrf.mxu0  ;;  %v3134_v25 = vadd.f32 %v3133_v29, %v3011_v9 }
 0x5af   :  { %v3225_v2 = vadd.f32 %v3224_v20, %v3132_v30 }
 0x5b0   :  { %v3226_v4 = vpop.f32.mrf.mxu0 }
 0x5b1   :  { %v3227_v8 = vadd.f32 %v3226_v4, %v3134_v25 }
 0x5b7   :  { %v3308_v61 = vpop.f32.mrf.mxu1 }
 0x5b8   :  { %v3309_v42 = vadd.f32 %v3308_v61, %v3225_v2 }
 0x5b9   :  { %v3310_v53 = vpop.f32.mrf.mxu1 }
 0x5ba   :  { %v3410_v15 = vpop.f32.mrf.mxu0  ;;  %v3311_v55 = vadd.f32 %v3310_v53, %v3227_v8 }
 0x5bb   :  { %v3411_v23 = vadd.f32 %v3410_v15, %v3309_v42 }
 0x5bc   :  { %v3412_v26 = vpop.f32.mrf.mxu0 }
 0x5bd   :  { %v3413_v37 = vadd.f32 %v3412_v26, %v3311_v55 }
 0x5c3   :  { %v3492_v50 = vpop.f32.mrf.mxu1 }
 0x5c4   :  { %v7593_v35 = vadd.f32 %v3492_v50, %v3411_v23 }
 0x5c5   :  { %v3494_v13 = vpop.f32.mrf.mxu1 }
 0x5c6   :  { %v7591_v14 = vadd.f32 %v3494_v13, %v3413_v37  ;;  %v3999_v43 = vmul.f32 %v7593_v35, %v6772_v5 }
 0x5c7   :  { %v3573_v57 = vpop.f32.mrf.mxu0 }
 0x5c8   :  { %v4000_v49 = vmul.f32 %v7591_v14, %v6770_v19  ;;  %v4008_v41 = vmul.f32 %v3999_v43, %v7593_v35 }
 0x5c9   :  { %v5693_v34 = vpop.f32.mrf.mxu0 }
 0x5ca   :  { %v4009_v0 = vmul.f32 %v4000_v49, %v7591_v14  ;;  %v4002_v31 = vadd.f32 %v4000_v49, %v3999_v43 }
 0x5cc   :  { %v4011_v40 = vadd.f32 %v4009_v0, %v4008_v41 }
 0x5cf   :  { %v3669_v38 = vpop.f32.mrf.mxu1 }
 0x5d0   :  { %v3670_v36 = vadd.f32 %v3669_v38, %v3573_v57 }
 0x5d1   :  { %v5706_v3 = vpop.f32.mrf.mxu1 }
 0x5d2   :  { %v3751_v60 = vpop.f32.mrf.mxu0 }
 0x5d3   :  { %v3752_v10 = vadd.f32 %v3751_v60, %v3670_v36 }
 0x5d4   :  { %v5719_v16 = vpop.f32.mrf.mxu0 }
 0x5db   :  { %v3829_v45 = vpop.f32.mrf.mxu1 }
 0x5dc   :  { %v3830_v28 = vadd.f32 %v3829_v45, %v3752_v10 }
 0x5dd   :  { %v5732_v32 = vpop.f32.mrf.mxu1 }
 0x5de   :  { %v3915_v33 = vpop.f32.mrf.mxu0 }
 0x5df   :  { %v3916_v62 = vadd.f32 %v3915_v33, %v3830_v28 }
 0x5e0   :  { %v5745_v12 = vpop.f32.mrf.mxu0 }
 0x5e7   :  { %v3991_v21 = vpop.f32.mrf.mxu1 }
 0x5e8   :  { %v3992_v7 = vadd.f32 %v3991_v21, %v3916_v62 }
 0x5e9   :  { %v5758_v39 = vpop.f32.mrf.mxu1 }
 0x5ea   :  { %3998 = vst.msk [vmem:[%s7657_s8 + $0x10] sm:$0xff] %vm3997_vm2, %v3992_v7  ;;  %v4001_v58 = vmul.f32 %v3992_v7, %v6777_v52 }
 0x5eb   :  { %v4313_v17 = vpop.f32.mrf.mxu0 }
 0x5ec   :  { %v4010_v18 = vmul.f32 %v4001_v58, %v3992_v7  ;;  %v4003_v63 = vsel %vm3997_vm2, %v4001_v58, 0.0 }
 0x5ed   :  { %v4004_v27 = vadd.f32 %v4003_v63, %v4002_v31  ;;  %v4315_v47 = vpop.f32.mrf.mxu0 }
 0x5ee   :  { %v4012_v46 = vsel %vm3997_vm2, %v4010_v18, 0.0 }
 0x5ef   :  { %4005 = vadd.xlane.f32.xlu0 %v4004_v27  ;;  %v4013_v1 = vadd.f32 %v4012_v46, %v4011_v40 }
 0x5f3   :  { %4014 = vadd.xlane.f32.xlu0 %v4013_v1  ;;  %v4435_v48 = vpop.f32.mrf.mxu1 }
 0x5f4   :  { %v4436_v53 = vadd.f32 %v4435_v48, %v4313_v17  ;;  %v5325_v17 = vld [vmem:[%s7658_s6] sm:$0xff] }
 0x5f5   :  { %v4437_v11 = vpop.f32.mrf.mxu1  ;;  %v5329_v48 = vld [vmem:[%s7659_s7] sm:$0xff] }
 0x5f6   :  { %v4528_v56 = vpop.f32.mrf.mxu0  ;;  %v4438_v61 = vadd.f32 %v4437_v11, %v4315_v47 }
 0x5f7   :  { %v4529_v50 = vadd.f32 %v4528_v56, %v4436_v53 }
 0x5f8   :  { %v4530_v24 = vpop.f32.mrf.mxu0 }
 0x5f9   :  { %v4531_v57 = vadd.f32 %v4530_v24, %v4438_v61 }
 0x5ff   :  { %v4612_v59 = vpop.f32.mrf.mxu1 }
 0x600   :  { %v4613_v3 = vadd.f32 %v4612_v59, %v4529_v50  ;;  %v5334_v59 = vld [vmem:[%s7657_s8 + $0x10] sm:$0xff] }
 0x601   :  { %v4614_v51 = vpop.f32.mrf.mxu1 }
 0x602   :  { %v4714_v44 = vpop.f32.mrf.mxu0  ;;  %v4615_v34 = vadd.f32 %v4614_v51, %v4531_v57 }
 0x603   :  { %v4715_v8 = vadd.f32 %v4714_v44, %v4613_v3 }
 0x604   :  { %v4716_v54 = vpop.f32.mrf.mxu0 }
 0x605   :  { %v4717_v16 = vadd.f32 %v4716_v54, %v4615_v34 }
 0x60b   :  { %v4796_v9 = vpop.f32.mrf.mxu1 }
 0x60c   :  { %v4797_v55 = vadd.f32 %v4796_v9, %v4715_v8 }
 0x60d   :  { %v4798_v22 = vpop.f32.mrf.mxu1 }
 0x60e   :  { %v4799_v45 = vadd.f32 %v4798_v22, %v4717_v16  ;;  %v5303_v42 = vmul.f32 %v4797_v55, %v6772_v5 }
 0x60f   :  { %v4877_v6 = vpop.f32.mrf.mxu0 }
 0x610   :  { %v5304_v32 = vmul.f32 %v4799_v45, %v6770_v19  ;;  %v5312_v62 = vmul.f32 %v5303_v42, %v4797_v55 }
 0x611   :  { %v5771_v20 = vpop.f32.mrf.mxu0 }
 0x612   :  { %v5313_v37 = vmul.f32 %v5304_v32, %v4799_v45  ;;  %v5306_v49 = vadd.f32 %v5304_v32, %v5303_v42 }
 0x614   :  { %v5315_v43 = vadd.f32 %v5313_v37, %v5312_v62 }
 0x617   :  { %v4973_v4 = vpop.f32.mrf.mxu1 }
 0x618   :  { %v4974_v13 = vadd.f32 %v4973_v4, %v4877_v6 }
 0x619   :  { %v5784_v29 = vpop.f32.mrf.mxu1 }
 0x61a   :  { %v5055_v15 = vpop.f32.mrf.mxu0 }
 0x61b   :  { %v5056_v30 = vadd.f32 %v5055_v15, %v4974_v13 }
 0x61c   :  { %v5797_v26 = vpop.f32.mrf.mxu0 }
 0x623   :  { %v5133_v38 = vpop.f32.mrf.mxu1 }
 0x624   :  { %v5134_v2 = vadd.f32 %v5133_v38, %v5056_v30 }
 0x625   :  { %v5810_v60 = vpop.f32.mrf.mxu1 }
 0x626   :  { %v5219_v25 = vpop.f32.mrf.mxu0 }
 0x627   :  { %v5220_v33 = vadd.f32 %v5219_v25, %v5134_v2 }
 0x628   :  { %v5823_v36 = vpop.f32.mrf.mxu0 }
 0x62e   :  { %v5295_v10 = vpop.f32.mrf.mxu1 }
 0x62f   :  { %v5296_v12 = vadd.f32 %v5295_v10, %v5220_v33 }
 0x630   :  { %v5836_v28 = vpop.f32.mrf.mxu1 }
 0x631   :  { %5374 = vst.msk [vmem:[%s7657_s8 + $0x28] sm:$0xff] %vm3997_vm2, %v5296_v12  ;;  %v5305_v23 = vmul.f32 %v5296_v12, %v6777_v52 }
 0x633   :  { %v5314_v21 = vmul.f32 %v5305_v23, %v5296_v12  ;;  %v5307_v7 = vsel %vm3997_vm2, %v5305_v23, 0.0 }
 0x634   :  { %v5308_v19 = vadd.f32 %v5307_v7, %v5306_v49 }
 0x635   :  { %v5316_v5 = vsel %vm3997_vm2, %v5314_v21, 0.0 }
 0x636   :  { %5309 = vadd.xlane.f32.xlu1 %v5308_v19  ;;  %v5317_v39 = vadd.f32 %v5316_v5, %v5315_v43 }
 0x638   :  { %5318 = vadd.xlane.f32.xlu0 %v5317_v39  ;;  %v5377_v54 = vld [vmem:[%s7657_s8 + $0x28] sm:$0xff] }
 0x678   :  { %v4006_v58 = vpop.xlane.xlu0 %4005 }
 0x67c   :  { %v4015_v0 = vpop.xlane.xlu0 %4014 }
 0x6bf   :  { %v5310_v31 = vpop.xlane.xlu1 %5309 }
 0x6c0   :  { %v5311_v18 = vadd.f32 %v5310_v31, %v4006_v58 }
 0x6c1   :  { %v5319_v63 = vpop.xlane.xlu0 %5318 }
 0x6c2   :  { %v5321_v41 = vmul.f32 0.001953125, %v5311_v18  ;;  %v5320_v27 = vadd.f32 %v5319_v63, %v4015_v0 }
 0x6c4   :  { %v5323_v52 = vmul.f32 %v5321_v41, %v5321_v41  ;;  %v5322_v46 = vmul.f32 0.001953125, %v5320_v27 }
 0x6c6   :  { %v5324_v40 = vsub.f32 %v5322_v46, %v5323_v52 }
 0x6c8   :  { %v5326_v1 = vadd.f32 1e-05, %v5324_v40 }
 0x6ca   :  { %5876 = vrsqrt.f32 %v5326_v1 }
 0x6d7   :  { %v5877_v47 = vpop.eup %5876 }
 0x6d8   :  { %v5328_v56 = vmul.f32 %v5877_v47, %v5325_v17 }
 0x6da   :  { %5337 = vperm.xlu1 %5850, %v5328_v56   ;;  %v5330_v24 = vmul.f32 %v5328_v56, %v5321_v41 }
 0x6dc   :  { %v5331_v11 = vsub.f32 %v5329_v48, %v5330_v24 }
 0x6de   :  { %5345 = vperm.xlu0 %5851, %v5331_v11  }
 0x755   :  { %v5338_v44 = vpop.permute.xlu1 %5337 }
 0x756   :  { %v5340_v51 = vmul.f32 %v5338_v44, %v7593_v35  ;;  %v5341_v6 = vmul.f32 %v5338_v44, %v7591_v14  ;;  %v5342_v9 = vmul.f32 %v5338_v44, %v5334_v59  ;;  %v5357_v20 = vmul.f32 %v5338_v44, %v4797_v55 }
 0x757   :  { %v5358_v22 = vmul.f32 %v5338_v44, %v4799_v45  ;;  %v5359_v4 = vmul.f32 %v5377_v54, %v5338_v44 }
 0x759   :  { %v5346_v29 = vpop.permute.xlu0 %5345 }
 0x75a   :  { %v5348_v15 = vadd.f32 %v5346_v29, %v5340_v51  ;;  %v5349_v61 = vadd.f32 %v5346_v29, %v5341_v6  ;;  %v5350_v26 = vadd.f32 %v5346_v29, %v5342_v9  ;;  %v5360_v53 = vadd.f32 %v5357_v20, %v5346_v29 }
 0x75b   :  { %v5361_v57 = vadd.f32 %v5358_v22, %v5346_v29  ;;  %v5362_v50 = vadd.f32 %v5359_v4, %v5346_v29 }
 0x75c   :  { %5351 = vst [vmem:[%s7657_s8] sm:$0xff] %v5348_v15  ;;  %5352 = vst [vmem:[%s7657_s8 + $0x8] sm:$0xff] %v5349_v61 }
 0x75d   :  { %5353 = vst.msk [vmem:[%s7657_s8 + $0x10] sm:$0xff] %vm3997_vm2, %v5350_v26  ;;  %5378 = vst [vmem:[%s7657_s8 + $0x18] sm:$0xff] %v5360_v53 }
 0x75e   :  { %5379 = vst [vmem:[%s7657_s8 + $0x20] sm:$0xff] %v5361_v57  ;;  %5380 = vst.msk [vmem:[%s7657_s8 + $0x28] sm:$0xff] %vm3997_vm2, %v5362_v50 }

</bundles_post_ra>
